<compile_context>
chip_gen: v7x
topology: tpu7x:2x2x1
jax: 0.10.0
libtpu: 0.0.40
codegen_flags: <defaults>
</compile_context>

<pallas_src>
import functools

import jax
import jax.numpy as jnp
from jax.experimental import pallas as pl
from jax.experimental.pallas import tpu as pltpu


def _conv_bn_relu_kernel(x_ref, w_ref, scale_ref, bias_ref, o_ref, *,
                         kh, kw, dh, dw, th, wout):
    # x_ref:     (Hp, Cin, Wp)       compute dtype; whole padded image of batch n
    # w_ref:     (kh*kw, Cout, Cin)  compute dtype (unscaled conv weights)
    # scale_ref: (Cout, 1)  f32      fused BN scale  = gamma / sqrt(var + eps)
    # bias_ref:  (Cout, 1)  f32      fused BN bias   = beta - mean * scale
    # o_ref:     (Cout, th, wout)    one NCHW row tile of the output
    t = pl.program_id(1)
    r0 = pl.multiple_of(t * th, th)            # first output row of this tile
    scale = scale_ref[...]
    bias = bias_ref[...]
    for r in range(th):                        # static unroll over rows in the tile
        acc = None
        for ik in range(kh):
            x_row = x_ref[r0 + r + ik * dh]    # (Cin, Wp): dynamic leading-dim index
            for jk in range(kw):
                tap = x_row[:, jk * dw: jk * dw + wout]          # (Cin, wout)
                p = jnp.dot(w_ref[ik * kw + jk], tap,
                            preferred_element_type=jnp.float32)  # (Cout, wout) f32
                acc = p if acc is None else acc + p
        y = jnp.maximum(acc * scale + bias, 0.0)                 # f32 epilogue (v5e-safe)
        o_ref[:, r, :] = y.astype(o_ref.dtype)


def _pick_row_tile(hout, n):
    """Row-tile size: divides Hout, sublane friendly, and gives >=4 grid steps if possible."""
    divisors = [d for d in range(1, hout + 1) if hout % d == 0]
    cands = [d for d in divisors if d % 8 == 0 or d == hout]
    good = [d for d in cands if n * (hout // d) >= 4]
    if good:
        return max(good)          # biggest tile that still gives >= 4 steps (v7x 2 TCs)
    return min(cands)             # otherwise maximize step count


def network_block_forward(x, w, gamma, beta, running_mean, running_var,
                          dilation=(2, 2), padding=(2, 2), eps=1e-5,
                          compute_dtype=jnp.bfloat16, out_dtype=None):
    N, Cin, H, W = x.shape
    Cout, Cin_w, kh, kw = w.shape
    assert Cin_w == Cin
    dh, dw = dilation
    ph, pw = padding
    Hp, Wp = H + 2 * ph, W + 2 * pw
    Hout = Hp - dh * (kh - 1)
    Wout = Wp - dw * (kw - 1)
    out_dtype = x.dtype if out_dtype is None else out_dtype

    # ---- fused BatchNorm2d (inference): y = scale * conv(x) + bias
    inv_std = jax.lax.rsqrt(running_var.astype(jnp.float32) + eps)
    scale_vec = gamma.astype(jnp.float32) * inv_std
    bias_vec = beta.astype(jnp.float32) - running_mean.astype(jnp.float32) * scale_vec
    scale = scale_vec.reshape(Cout, 1)
    bias = bias_vec.reshape(Cout, 1)

    # ---- weights: (Cout, Cin, kh, kw) -> (kh*kw, Cout, Cin); BN scale stays in epilogue
    w_taps = jnp.transpose(w, (2, 3, 0, 1)).reshape(kh * kw, Cout, Cin).astype(compute_dtype)

    # ---- pad spatially and put H leading so each output row is a cheap leading-dim index;
    #      compute dtype halves the single HBM read of x.
    xp = jnp.pad(x.astype(compute_dtype), ((0, 0), (0, 0), (ph, ph), (pw, pw)))
    xp = jnp.transpose(xp, (0, 2, 1, 3))       # (N, Hp, Cin, Wp)

    th = _pick_row_tile(Hout, N)
    T = Hout // th

    out = pl.pallas_call(
        functools.partial(_conv_bn_relu_kernel,
                          kh=kh, kw=kw, dh=dh, dw=dw, th=th, wout=Wout),
        out_shape=jax.ShapeDtypeStruct((N, Cout, Hout, Wout), out_dtype),
        grid_spec=pltpu.PrefetchScalarGridSpec(
            num_scalar_prefetch=0,
            grid=(N, T),
            in_specs=[
                # whole padded image of batch n; index ignores t -> DMA'd once per n
                pl.BlockSpec((None, Hp, Cin, Wp), lambda n, t: (n, 0, 0, 0)),
                # grid-invariant weights / BN params (fetched once)
                pl.BlockSpec((kh * kw, Cout, Cin), lambda n, t: (0, 0, 0)),
                pl.BlockSpec((Cout, 1), lambda n, t: (0, 0)),
                pl.BlockSpec((Cout, 1), lambda n, t: (0, 0)),
            ],
            # NCHW output row tile: only real bytes, no channel padding, no post-transpose
            out_specs=pl.BlockSpec((None, Cout, th, Wout), lambda n, t: (n, 0, t, 0)),
        ),
        compiler_params=pltpu.CompilerParams(
            dimension_semantics=("parallel", "parallel"),
            vmem_limit_bytes=32 * 1024 * 1024,
        ),
    )(xp, w_taps, scale, bias)
    return out
    # TODO(synk): optional `pool` module (e.g. MaxPool2d) not exercised since pool=None.


if __name__ == "__main__":
    key = jax.random.PRNGKey(0)
    k_x, k_w, k_g, k_b, k_m, k_v = jax.random.split(key, 6)

    # NetworkBlock(ch_in=4, ch_out=8, kernel_size=(3,3), dilation=(2,2),
    #              norm=BatchNorm2d, padding=(2,2), pool=None, bias=False)
    N, Cin, H, W = 2, 4, 16, 16
    Cout, kh, kw = 8, 3, 3
    dilation, padding = (2, 2), (2, 2)

    x = jax.random.normal(k_x, (N, Cin, H, W), dtype=jnp.float32)
    w = jax.random.normal(k_w, (Cout, Cin, kh, kw), dtype=jnp.float32) * 0.1
    gamma = 1.0 + 0.1 * jax.random.normal(k_g, (Cout,), dtype=jnp.float32)
    beta = 0.1 * jax.random.normal(k_b, (Cout,), dtype=jnp.float32)
    running_mean = 0.1 * jax.random.normal(k_m, (Cout,), dtype=jnp.float32)
    running_var = jnp.abs(jax.random.normal(k_v, (Cout,), dtype=jnp.float32)) + 0.5

    out = network_block_forward(x, w, gamma, beta, running_mean, running_var,
                                dilation=dilation, padding=padding)
    out = jax.block_until_ready(out)

    # pure-JAX f32 reference (conv -> BN(eval) -> ReLU)
    ref = jax.lax.conv_general_dilated(
        x, w, window_strides=(1, 1),
        padding=[(padding[0], padding[0]), (padding[1], padding[1])],
        rhs_dilation=dilation,
        dimension_numbers=("NCHW", "OIHW", "NCHW"))
    inv_std = 1.0 / jnp.sqrt(running_var + 1e-5)
    ref = (ref - running_mean[None, :, None, None]) * (gamma * inv_std)[None, :, None, None] \
        + beta[None, :, None, None]
    ref = jnp.maximum(ref, 0.0)

    assert out.shape == ref.shape, (out.shape, ref.shape)
    # tolerance vs f32 reference: matmul inputs are bf16 (accumulation/epilogue f32)
    assert jnp.allclose(out, ref, atol=5e-2, rtol=5e-2), float(jnp.max(jnp.abs(out - ref)))

    print("KERNEL_OK")
</pallas_src>

<mosaic_0001>
module attributes {stable_mosaic.version = 11 : i64} {
  func.func @_conv_bn_relu_kernel(%arg0: i32, %arg1: i32, %arg2: memref<1x20x4x20xbf16, #tpu.memory_space<vmem>>, %arg3: memref<9x8x4xbf16, #tpu.memory_space<vmem>>, %arg4: memref<8x1xf32, #tpu.memory_space<vmem>>, %arg5: memref<8x1xf32, #tpu.memory_space<vmem>>, %arg6: memref<1x8x8x16xf32, #tpu.memory_space<vmem>>) attributes {dimension_semantics = [#tpu.dimension_semantics<parallel>, #tpu.dimension_semantics<parallel>], iteration_bounds = array<i64: 2, 2>, scalar_prefetch = 0 : i64, scratch_operands = 0 : i64, tpu.core_type = #tpu.core_type<tc>, window_params = [{transform_indices = @transform_0, window_bounds = array<i64: 1, 20, 4, 20>}, {pipeline_mode = #tpu.pipeline_mode<synchronous>, transform_indices = @transform_1, window_bounds = array<i64: 9, 8, 4>}, {pipeline_mode = #tpu.pipeline_mode<synchronous>, transform_indices = @transform_2, window_bounds = array<i64: 8, 1>}, {pipeline_mode = #tpu.pipeline_mode<synchronous>, transform_indices = @transform_3, window_bounds = array<i64: 8, 1>}, {transform_indices = @transform_4, window_bounds = array<i64: 1, 8, 8, 16>}]} {
    %c8_i32 = arith.constant 8 : i32
    %0 = arith.muli %arg1, %c8_i32 : i32
    %1 = tpu.assume_multiple %0, 8 : i32
    %c0 = arith.constant 0 : index
    %c0_0 = arith.constant 0 : index
    %2 = vector.load %arg4[%c0, %c0_0] : memref<8x1xf32, #tpu.memory_space<vmem>>, vector<8x1xf32>
    %c0_1 = arith.constant 0 : index
    %c0_2 = arith.constant 0 : index
    %3 = vector.load %arg5[%c0_1, %c0_2] : memref<8x1xf32, #tpu.memory_space<vmem>>, vector<8x1xf32>
    %c0_i32 = arith.constant 0 : i32
    %4 = arith.addi %1, %c0_i32 : i32
    %c0_i32_3 = arith.constant 0 : i32
    %5 = arith.addi %4, %c0_i32_3 : i32
    %c0_4 = arith.constant 0 : index
    %6 = arith.index_cast %5 : i32 to index
    %c0_5 = arith.constant 0 : index
    %c0_6 = arith.constant 0 : index
    %7 = vector.load %arg2[%c0_4, %6, %c0_5, %c0_6] : memref<1x20x4x20xbf16, #tpu.memory_space<vmem>>, vector<1x1x4x20xbf16>
    %8 = vector.shape_cast %7 : vector<1x1x4x20xbf16> to vector<4x20xbf16>
    %9 = vector.extract_strided_slice %8 {offsets = [0, 0], sizes = [4, 16], strides = [1, 1]} : vector<4x20xbf16> to vector<4x16xbf16>
    %c0_7 = arith.constant 0 : index
    %c0_8 = arith.constant 0 : index
    %c0_9 = arith.constant 0 : index
    %10 = vector.load %arg3[%c0_7, %c0_8, %c0_9] : memref<9x8x4xbf16, #tpu.memory_space<vmem>>, vector<1x8x4xbf16>
    %11 = vector.shape_cast %10 : vector<1x8x4xbf16> to vector<8x4xbf16>
    %cst = arith.constant dense<0.000000e+00> : vector<8x16xf32>
    %12 = tpu.matmul %11, %9, %cst {dimension_numbers = #tpu.dot_dimension_numbers<[1], [0], [0], [1], [0, 0, 1, 1], [], []>} : vector<8x4xbf16>, vector<4x16xbf16>, vector<8x16xf32> -> vector<8x16xf32>
    %13 = vector.extract_strided_slice %8 {offsets = [0, 2], sizes = [4, 16], strides = [1, 1]} : vector<4x20xbf16> to vector<4x16xbf16>
    %c1 = arith.constant 1 : index
    %c0_10 = arith.constant 0 : index
    %c0_11 = arith.constant 0 : index
    %14 = vector.load %arg3[%c1, %c0_10, %c0_11] : memref<9x8x4xbf16, #tpu.memory_space<vmem>>, vector<1x8x4xbf16>
    %15 = vector.shape_cast %14 : vector<1x8x4xbf16> to vector<8x4xbf16>
    %cst_12 = arith.constant dense<0.000000e+00> : vector<8x16xf32>
    %16 = tpu.matmul %15, %13, %cst_12 {dimension_numbers = #tpu.dot_dimension_numbers<[1], [0], [0], [1], [0, 0, 1, 1], [], []>} : vector<8x4xbf16>, vector<4x16xbf16>, vector<8x16xf32> -> vector<8x16xf32>
    %17 = arith.addf %12, %16 : vector<8x16xf32>
    %18 = vector.extract_strided_slice %8 {offsets = [0, 4], sizes = [4, 16], strides = [1, 1]} : vector<4x20xbf16> to vector<4x16xbf16>
    %c2 = arith.constant 2 : index
    %c0_13 = arith.constant 0 : index
    %c0_14 = arith.constant 0 : index
    %19 = vector.load %arg3[%c2, %c0_13, %c0_14] : memref<9x8x4xbf16, #tpu.memory_space<vmem>>, vector<1x8x4xbf16>
    %20 = vector.shape_cast %19 : vector<1x8x4xbf16> to vector<8x4xbf16>
    %cst_15 = arith.constant dense<0.000000e+00> : vector<8x16xf32>
    %21 = tpu.matmul %20, %18, %cst_15 {dimension_numbers = #tpu.dot_dimension_numbers<[1], [0], [0], [1], [0, 0, 1, 1], [], []>} : vector<8x4xbf16>, vector<4x16xbf16>, vector<8x16xf32> -> vector<8x16xf32>
    %22 = arith.addf %17, %21 : vector<8x16xf32>
    %c0_i32_16 = arith.constant 0 : i32
    %23 = arith.addi %1, %c0_i32_16 : i32
    %c2_i32 = arith.constant 2 : i32
    %24 = arith.addi %23, %c2_i32 : i32
    %c0_17 = arith.constant 0 : index
    %25 = arith.index_cast %24 : i32 to index
    %c0_18 = arith.constant 0 : index
    %c0_19 = arith.constant 0 : index
    %26 = vector.load %arg2[%c0_17, %25, %c0_18, %c0_19] : memref<1x20x4x20xbf16, #tpu.memory_space<vmem>>, vector<1x1x4x20xbf16>
    %27 = vector.shape_cast %26 : vector<1x1x4x20xbf16> to vector<4x20xbf16>
    %28 = vector.extract_strided_slice %27 {offsets = [0, 0], sizes = [4, 16], strides = [1, 1]} : vector<4x20xbf16> to vector<4x16xbf16>
    %c3 = arith.constant 3 : index
    %c0_20 = arith.constant 0 : index
    %c0_21 = arith.constant 0 : index
    %29 = vector.load %arg3[%c3, %c0_20, %c0_21] : memref<9x8x4xbf16, #tpu.memory_space<vmem>>, vector<1x8x4xbf16>
    %30 = vector.shape_cast %29 : vector<1x8x4xbf16> to vector<8x4xbf16>
    %cst_22 = arith.constant dense<0.000000e+00> : vector<8x16xf32>
    %31 = tpu.matmul %30, %28, %cst_22 {dimension_numbers = #tpu.dot_dimension_numbers<[1], [0], [0], [1], [0, 0, 1, 1], [], []>} : vector<8x4xbf16>, vector<4x16xbf16>, vector<8x16xf32> -> vector<8x16xf32>
    %32 = arith.addf %22, %31 : vector<8x16xf32>
    %33 = vector.extract_strided_slice %27 {offsets = [0, 2], sizes = [4, 16], strides = [1, 1]} : vector<4x20xbf16> to vector<4x16xbf16>
    %c4 = arith.constant 4 : index
    %c0_23 = arith.constant 0 : index
    %c0_24 = arith.constant 0 : index
    %34 = vector.load %arg3[%c4, %c0_23, %c0_24] : memref<9x8x4xbf16, #tpu.memory_space<vmem>>, vector<1x8x4xbf16>
    %35 = vector.shape_cast %34 : vector<1x8x4xbf16> to vector<8x4xbf16>
    %cst_25 = arith.constant dense<0.000000e+00> : vector<8x16xf32>
    %36 = tpu.matmul %35, %33, %cst_25 {dimension_numbers = #tpu.dot_dimension_numbers<[1], [0], [0], [1], [0, 0, 1, 1], [], []>} : vector<8x4xbf16>, vector<4x16xbf16>, vector<8x16xf32> -> vector<8x16xf32>
    %37 = arith.addf %32, %36 : vector<8x16xf32>
    %38 = vector.extract_strided_slice %27 {offsets = [0, 4], sizes = [4, 16], strides = [1, 1]} : vector<4x20xbf16> to vector<4x16xbf16>
    %c5 = arith.constant 5 : index
    %c0_26 = arith.constant 0 : index
    %c0_27 = arith.constant 0 : index
    %39 = vector.load %arg3[%c5, %c0_26, %c0_27] : memref<9x8x4xbf16, #tpu.memory_space<vmem>>, vector<1x8x4xbf16>
    %40 = vector.shape_cast %39 : vector<1x8x4xbf16> to vector<8x4xbf16>
    %cst_28 = arith.constant dense<0.000000e+00> : vector<8x16xf32>
    %41 = tpu.matmul %40, %38, %cst_28 {dimension_numbers = #tpu.dot_dimension_numbers<[1], [0], [0], [1], [0, 0, 1, 1], [], []>} : vector<8x4xbf16>, vector<4x16xbf16>, vector<8x16xf32> -> vector<8x16xf32>
    %42 = arith.addf %37, %41 : vector<8x16xf32>
    %c0_i32_29 = arith.constant 0 : i32
    %43 = arith.addi %1, %c0_i32_29 : i32
    %c4_i32 = arith.constant 4 : i32
    %44 = arith.addi %43, %c4_i32 : i32
    %c0_30 = arith.constant 0 : index
    %45 = arith.index_cast %44 : i32 to index
    %c0_31 = arith.constant 0 : index
    %c0_32 = arith.constant 0 : index
    %46 = vector.load %arg2[%c0_30, %45, %c0_31, %c0_32] : memref<1x20x4x20xbf16, #tpu.memory_space<vmem>>, vector<1x1x4x20xbf16>
    %47 = vector.shape_cast %46 : vector<1x1x4x20xbf16> to vector<4x20xbf16>
    %48 = vector.extract_strided_slice %47 {offsets = [0, 0], sizes = [4, 16], strides = [1, 1]} : vector<4x20xbf16> to vector<4x16xbf16>
    %c6 = arith.constant 6 : index
    %c0_33 = arith.constant 0 : index
    %c0_34 = arith.constant 0 : index
    %49 = vector.load %arg3[%c6, %c0_33, %c0_34] : memref<9x8x4xbf16, #tpu.memory_space<vmem>>, vector<1x8x4xbf16>
    %50 = vector.shape_cast %49 : vector<1x8x4xbf16> to vector<8x4xbf16>
    %cst_35 = arith.constant dense<0.000000e+00> : vector<8x16xf32>
    %51 = tpu.matmul %50, %48, %cst_35 {dimension_numbers = #tpu.dot_dimension_numbers<[1], [0], [0], [1], [0, 0, 1, 1], [], []>} : vector<8x4xbf16>, vector<4x16xbf16>, vector<8x16xf32> -> vector<8x16xf32>
    %52 = arith.addf %42, %51 : vector<8x16xf32>
    %53 = vector.extract_strided_slice %47 {offsets = [0, 2], sizes = [4, 16], strides = [1, 1]} : vector<4x20xbf16> to vector<4x16xbf16>
    %c7 = arith.constant 7 : index
    %c0_36 = arith.constant 0 : index
    %c0_37 = arith.constant 0 : index
    %54 = vector.load %arg3[%c7, %c0_36, %c0_37] : memref<9x8x4xbf16, #tpu.memory_space<vmem>>, vector<1x8x4xbf16>
    %55 = vector.shape_cast %54 : vector<1x8x4xbf16> to vector<8x4xbf16>
    %cst_38 = arith.constant dense<0.000000e+00> : vector<8x16xf32>
    %56 = tpu.matmul %55, %53, %cst_38 {dimension_numbers = #tpu.dot_dimension_numbers<[1], [0], [0], [1], [0, 0, 1, 1], [], []>} : vector<8x4xbf16>, vector<4x16xbf16>, vector<8x16xf32> -> vector<8x16xf32>
    %57 = arith.addf %52, %56 : vector<8x16xf32>
    %58 = vector.extract_strided_slice %47 {offsets = [0, 4], sizes = [4, 16], strides = [1, 1]} : vector<4x20xbf16> to vector<4x16xbf16>
    %c8 = arith.constant 8 : index
    %c0_39 = arith.constant 0 : index
    %c0_40 = arith.constant 0 : index
    %59 = vector.load %arg3[%c8, %c0_39, %c0_40] : memref<9x8x4xbf16, #tpu.memory_space<vmem>>, vector<1x8x4xbf16>
    %60 = vector.shape_cast %59 : vector<1x8x4xbf16> to vector<8x4xbf16>
    %cst_41 = arith.constant dense<0.000000e+00> : vector<8x16xf32>
    %61 = tpu.matmul %60, %58, %cst_41 {dimension_numbers = #tpu.dot_dimension_numbers<[1], [0], [0], [1], [0, 0, 1, 1], [], []>} : vector<8x4xbf16>, vector<4x16xbf16>, vector<8x16xf32> -> vector<8x16xf32>
    %62 = arith.addf %57, %61 : vector<8x16xf32>
    %63 = vector.broadcast %2 : vector<8x1xf32> to vector<8x16xf32>
    %64 = arith.mulf %62, %63 : vector<8x16xf32>
    %65 = vector.broadcast %3 : vector<8x1xf32> to vector<8x16xf32>
    %66 = arith.addf %64, %65 : vector<8x16xf32>
    %cst_42 = arith.constant 0.000000e+00 : f32
    %67 = vector.broadcast %cst_42 : f32 to vector<8x16xf32>
    %68 = arith.maximumf %66, %67 : vector<8x16xf32>
    %c0_43 = arith.constant 0 : index
    %c0_44 = arith.constant 0 : index
    %c0_45 = arith.constant 0 : index
    %c0_46 = arith.constant 0 : index
    %69 = vector.load %arg6[%c0_43, %c0_44, %c0_45, %c0_46] : memref<1x8x8x16xf32, #tpu.memory_space<vmem>>, vector<1x8x1x16xf32>
    %70 = vector.shape_cast %69 : vector<1x8x1x16xf32> to vector<8x16xf32>
    %71 = vector.shape_cast %68 : vector<8x16xf32> to vector<1x8x1x16xf32>
    tpu.vector_store %arg6[%c0_43, %c0_44, %c0_45, %c0_46], %71 {strides = array<i32>} : memref<1x8x8x16xf32, #tpu.memory_space<vmem>>, vector<1x8x1x16xf32>,
    %c1_i32 = arith.constant 1 : i32
    %72 = arith.addi %1, %c1_i32 : i32
    %c0_i32_47 = arith.constant 0 : i32
    %73 = arith.addi %72, %c0_i32_47 : i32
    %c0_48 = arith.constant 0 : index
    %74 = arith.index_cast %73 : i32 to index
    %c0_49 = arith.constant 0 : index
    %c0_50 = arith.constant 0 : index
    %75 = vector.load %arg2[%c0_48, %74, %c0_49, %c0_50] : memref<1x20x4x20xbf16, #tpu.memory_space<vmem>>, vector<1x1x4x20xbf16>
    %76 = vector.shape_cast %75 : vector<1x1x4x20xbf16> to vector<4x20xbf16>
    %77 = vector.extract_strided_slice %76 {offsets = [0, 0], sizes = [4, 16], strides = [1, 1]} : vector<4x20xbf16> to vector<4x16xbf16>
    %c0_51 = arith.constant 0 : index
    %c0_52 = arith.constant 0 : index
    %c0_53 = arith.constant 0 : index
    %78 = vector.load %arg3[%c0_51, %c0_52, %c0_53] : memref<9x8x4xbf16, #tpu.memory_space<vmem>>, vector<1x8x4xbf16>
    %79 = vector.shape_cast %78 : vector<1x8x4xbf16> to vector<8x4xbf16>
    %cst_54 = arith.constant dense<0.000000e+00> : vector<8x16xf32>
    %80 = tpu.matmul %79, %77, %cst_54 {dimension_numbers = #tpu.dot_dimension_numbers<[1], [0], [0], [1], [0, 0, 1, 1], [], []>} : vector<8x4xbf16>, vector<4x16xbf16>, vector<8x16xf32> -> vector<8x16xf32>
    %81 = vector.extract_strided_slice %76 {offsets = [0, 2], sizes = [4, 16], strides = [1, 1]} : vector<4x20xbf16> to vector<4x16xbf16>
    %c1_55 = arith.constant 1 : index
    %c0_56 = arith.constant 0 : index
    %c0_57 = arith.constant 0 : index
    %82 = vector.load %arg3[%c1_55, %c0_56, %c0_57] : memref<9x8x4xbf16, #tpu.memory_space<vmem>>, vector<1x8x4xbf16>
    %83 = vector.shape_cast %82 : vector<1x8x4xbf16> to vector<8x4xbf16>
    %cst_58 = arith.constant dense<0.000000e+00> : vector<8x16xf32>
    %84 = tpu.matmul %83, %81, %cst_58 {dimension_numbers = #tpu.dot_dimension_numbers<[1], [0], [0], [1], [0, 0, 1, 1], [], []>} : vector<8x4xbf16>, vector<4x16xbf16>, vector<8x16xf32> -> vector<8x16xf32>
    %85 = arith.addf %80, %84 : vector<8x16xf32>
    %86 = vector.extract_strided_slice %76 {offsets = [0, 4], sizes = [4, 16], strides = [1, 1]} : vector<4x20xbf16> to vector<4x16xbf16>
    %c2_59 = arith.constant 2 : index
    %c0_60 = arith.constant 0 : index
    %c0_61 = arith.constant 0 : index
    %87 = vector.load %arg3[%c2_59, %c0_60, %c0_61] : memref<9x8x4xbf16, #tpu.memory_space<vmem>>, vector<1x8x4xbf16>
    %88 = vector.shape_cast %87 : vector<1x8x4xbf16> to vector<8x4xbf16>
    %cst_62 = arith.constant dense<0.000000e+00> : vector<8x16xf32>
    %89 = tpu.matmul %88, %86, %cst_62 {dimension_numbers = #tpu.dot_dimension_numbers<[1], [0], [0], [1], [0, 0, 1, 1], [], []>} : vector<8x4xbf16>, vector<4x16xbf16>, vector<8x16xf32> -> vector<8x16xf32>
    %90 = arith.addf %85, %89 : vector<8x16xf32>
    %c1_i32_63 = arith.constant 1 : i32
    %91 = arith.addi %1, %c1_i32_63 : i32
    %c2_i32_64 = arith.constant 2 : i32
    %92 = arith.addi %91, %c2_i32_64 : i32
    %c0_65 = arith.constant 0 : index
    %93 = arith.index_cast %92 : i32 to index
    %c0_66 = arith.constant 0 : index
    %c0_67 = arith.constant 0 : index
    %94 = vector.load %arg2[%c0_65, %93, %c0_66, %c0_67] : memref<1x20x4x20xbf16, #tpu.memory_space<vmem>>, vector<1x1x4x20xbf16>
    %95 = vector.shape_cast %94 : vector<1x1x4x20xbf16> to vector<4x20xbf16>
    %96 = vector.extract_strided_slice %95 {offsets = [0, 0], sizes = [4, 16], strides = [1, 1]} : vector<4x20xbf16> to vector<4x16xbf16>
    %c3_68 = arith.constant 3 : index
    %c0_69 = arith.constant 0 : index
    %c0_70 = arith.constant 0 : index
    %97 = vector.load %arg3[%c3_68, %c0_69, %c0_70] : memref<9x8x4xbf16, #tpu.memory_space<vmem>>, vector<1x8x4xbf16>
    %98 = vector.shape_cast %97 : vector<1x8x4xbf16> to vector<8x4xbf16>
    %cst_71 = arith.constant dense<0.000000e+00> : vector<8x16xf32>
    %99 = tpu.matmul %98, %96, %cst_71 {dimension_numbers = #tpu.dot_dimension_numbers<[1], [0], [0], [1], [0, 0, 1, 1], [], []>} : vector<8x4xbf16>, vector<4x16xbf16>, vector<8x16xf32> -> vector<8x16xf32>
    %100 = arith.addf %90, %99 : vector<8x16xf32>
    %101 = vector.extract_strided_slice %95 {offsets = [0, 2], sizes = [4, 16], strides = [1, 1]} : vector<4x20xbf16> to vector<4x16xbf16>
    %c4_72 = arith.constant 4 : index
    %c0_73 = arith.constant 0 : index
    %c0_74 = arith.constant 0 : index
    %102 = vector.load %arg3[%c4_72, %c0_73, %c0_74] : memref<9x8x4xbf16, #tpu.memory_space<vmem>>, vector<1x8x4xbf16>
    %103 = vector.shape_cast %102 : vector<1x8x4xbf16> to vector<8x4xbf16>
    %cst_75 = arith.constant dense<0.000000e+00> : vector<8x16xf32>
    %104 = tpu.matmul %103, %101, %cst_75 {dimension_numbers = #tpu.dot_dimension_numbers<[1], [0], [0], [1], [0, 0, 1, 1], [], []>} : vector<8x4xbf16>, vector<4x16xbf16>, vector<8x16xf32> -> vector<8x16xf32>
    %105 = arith.addf %100, %104 : vector<8x16xf32>
    %106 = vector.extract_strided_slice %95 {offsets = [0, 4], sizes = [4, 16], strides = [1, 1]} : vector<4x20xbf16> to vector<4x16xbf16>
    %c5_76 = arith.constant 5 : index
    %c0_77 = arith.constant 0 : index
    %c0_78 = arith.constant 0 : index
    %107 = vector.load %arg3[%c5_76, %c0_77, %c0_78] : memref<9x8x4xbf16, #tpu.memory_space<vmem>>, vector<1x8x4xbf16>
    %108 = vector.shape_cast %107 : vector<1x8x4xbf16> to vector<8x4xbf16>
    %cst_79 = arith.constant dense<0.000000e+00> : vector<8x16xf32>
    %109 = tpu.matmul %108, %106, %cst_79 {dimension_numbers = #tpu.dot_dimension_numbers<[1], [0], [0], [1], [0, 0, 1, 1], [], []>} : vector<8x4xbf16>, vector<4x16xbf16>, vector<8x16xf32> -> vector<8x16xf32>
    %110 = arith.addf %105, %109 : vector<8x16xf32>
    %c1_i32_80 = arith.constant 1 : i32
    %111 = arith.addi %1, %c1_i32_80 : i32
    %c4_i32_81 = arith.constant 4 : i32
    %112 = arith.addi %111, %c4_i32_81 : i32
    %c0_82 = arith.constant 0 : index
    %113 = arith.index_cast %112 : i32 to index
    %c0_83 = arith.constant 0 : index
    %c0_84 = arith.constant 0 : index
    %114 = vector.load %arg2[%c0_82, %113, %c0_83, %c0_84] : memref<1x20x4x20xbf16, #tpu.memory_space<vmem>>, vector<1x1x4x20xbf16>
    %115 = vector.shape_cast %114 : vector<1x1x4x20xbf16> to vector<4x20xbf16>
    %116 = vector.extract_strided_slice %115 {offsets = [0, 0], sizes = [4, 16], strides = [1, 1]} : vector<4x20xbf16> to vector<4x16xbf16>
    %c6_85 = arith.constant 6 : index
    %c0_86 = arith.constant 0 : index
    %c0_87 = arith.constant 0 : index
    %117 = vector.load %arg3[%c6_85, %c0_86, %c0_87] : memref<9x8x4xbf16, #tpu.memory_space<vmem>>, vector<1x8x4xbf16>
    %118 = vector.shape_cast %117 : vector<1x8x4xbf16> to vector<8x4xbf16>
    %cst_88 = arith.constant dense<0.000000e+00> : vector<8x16xf32>
    %119 = tpu.matmul %118, %116, %cst_88 {dimension_numbers = #tpu.dot_dimension_numbers<[1], [0], [0], [1], [0, 0, 1, 1], [], []>} : vector<8x4xbf16>, vector<4x16xbf16>, vector<8x16xf32> -> vector<8x16xf32>
    %120 = arith.addf %110, %119 : vector<8x16xf32>
    %121 = vector.extract_strided_slice %115 {offsets = [0, 2], sizes = [4, 16], strides = [1, 1]} : vector<4x20xbf16> to vector<4x16xbf16>
    %c7_89 = arith.constant 7 : index
    %c0_90 = arith.constant 0 : index
    %c0_91 = arith.constant 0 : index
    %122 = vector.load %arg3[%c7_89, %c0_90, %c0_91] : memref<9x8x4xbf16, #tpu.memory_space<vmem>>, vector<1x8x4xbf16>
    %123 = vector.shape_cast %122 : vector<1x8x4xbf16> to vector<8x4xbf16>
    %cst_92 = arith.constant dense<0.000000e+00> : vector<8x16xf32>
    %124 = tpu.matmul %123, %121, %cst_92 {dimension_numbers = #tpu.dot_dimension_numbers<[1], [0], [0], [1], [0, 0, 1, 1], [], []>} : vector<8x4xbf16>, vector<4x16xbf16>, vector<8x16xf32> -> vector<8x16xf32>
    %125 = arith.addf %120, %124 : vector<8x16xf32>
    %126 = vector.extract_strided_slice %115 {offsets = [0, 4], sizes = [4, 16], strides = [1, 1]} : vector<4x20xbf16> to vector<4x16xbf16>
    %c8_93 = arith.constant 8 : index
    %c0_94 = arith.constant 0 : index
    %c0_95 = arith.constant 0 : index
    %127 = vector.load %arg3[%c8_93, %c0_94, %c0_95] : memref<9x8x4xbf16, #tpu.memory_space<vmem>>, vector<1x8x4xbf16>
    %128 = vector.shape_cast %127 : vector<1x8x4xbf16> to vector<8x4xbf16>
    %cst_96 = arith.constant dense<0.000000e+00> : vector<8x16xf32>
    %129 = tpu.matmul %128, %126, %cst_96 {dimension_numbers = #tpu.dot_dimension_numbers<[1], [0], [0], [1], [0, 0, 1, 1], [], []>} : vector<8x4xbf16>, vector<4x16xbf16>, vector<8x16xf32> -> vector<8x16xf32>
    %130 = arith.addf %125, %129 : vector<8x16xf32>
    %131 = vector.broadcast %2 : vector<8x1xf32> to vector<8x16xf32>
    %132 = arith.mulf %130, %131 : vector<8x16xf32>
    %133 = vector.broadcast %3 : vector<8x1xf32> to vector<8x16xf32>
    %134 = arith.addf %132, %133 : vector<8x16xf32>
    %cst_97 = arith.constant 0.000000e+00 : f32
    %135 = vector.broadcast %cst_97 : f32 to vector<8x16xf32>
    %136 = arith.maximumf %134, %135 : vector<8x16xf32>
    %c0_98 = arith.constant 0 : index
    %c0_99 = arith.constant 0 : index
    %c1_100 = arith.constant 1 : index
    %c0_101 = arith.constant 0 : index
    %137 = vector.load %arg6[%c0_98, %c0_99, %c1_100, %c0_101] : memref<1x8x8x16xf32, #tpu.memory_space<vmem>>, vector<1x8x1x16xf32>
    %138 = vector.shape_cast %137 : vector<1x8x1x16xf32> to vector<8x16xf32>
    %139 = vector.shape_cast %136 : vector<8x16xf32> to vector<1x8x1x16xf32>
    tpu.vector_store %arg6[%c0_98, %c0_99, %c1_100, %c0_101], %139 {strides = array<i32>} : memref<1x8x8x16xf32, #tpu.memory_space<vmem>>, vector<1x8x1x16xf32>,
    %c2_i32_102 = arith.constant 2 : i32
    %140 = arith.addi %1, %c2_i32_102 : i32
    %c0_i32_103 = arith.constant 0 : i32
    %141 = arith.addi %140, %c0_i32_103 : i32
    %c0_104 = arith.constant 0 : index
    %142 = arith.index_cast %141 : i32 to index
    %c0_105 = arith.constant 0 : index
    %c0_106 = arith.constant 0 : index
    %143 = vector.load %arg2[%c0_104, %142, %c0_105, %c0_106] : memref<1x20x4x20xbf16, #tpu.memory_space<vmem>>, vector<1x1x4x20xbf16>
    %144 = vector.shape_cast %143 : vector<1x1x4x20xbf16> to vector<4x20xbf16>
    %145 = vector.extract_strided_slice %144 {offsets = [0, 0], sizes = [4, 16], strides = [1, 1]} : vector<4x20xbf16> to vector<4x16xbf16>
    %c0_107 = arith.constant 0 : index
    %c0_108 = arith.constant 0 : index
    %c0_109 = arith.constant 0 : index
    %146 = vector.load %arg3[%c0_107, %c0_108, %c0_109] : memref<9x8x4xbf16, #tpu.memory_space<vmem>>, vector<1x8x4xbf16>
    %147 = vector.shape_cast %146 : vector<1x8x4xbf16> to vector<8x4xbf16>
    %cst_110 = arith.constant dense<0.000000e+00> : vector<8x16xf32>
    %148 = tpu.matmul %147, %145, %cst_110 {dimension_numbers = #tpu.dot_dimension_numbers<[1], [0], [0], [1], [0, 0, 1, 1], [], []>} : vector<8x4xbf16>, vector<4x16xbf16>, vector<8x16xf32> -> vector<8x16xf32>
    %149 = vector.extract_strided_slice %144 {offsets = [0, 2], sizes = [4, 16], strides = [1, 1]} : vector<4x20xbf16> to vector<4x16xbf16>
    %c1_111 = arith.constant 1 : index
    %c0_112 = arith.constant 0 : index
    %c0_113 = arith.constant 0 : index
    %150 = vector.load %arg3[%c1_111, %c0_112, %c0_113] : memref<9x8x4xbf16, #tpu.memory_space<vmem>>, vector<1x8x4xbf16>
    %151 = vector.shape_cast %150 : vector<1x8x4xbf16> to vector<8x4xbf16>
    %cst_114 = arith.constant dense<0.000000e+00> : vector<8x16xf32>
    %152 = tpu.matmul %151, %149, %cst_114 {dimension_numbers = #tpu.dot_dimension_numbers<[1], [0], [0], [1], [0, 0, 1, 1], [], []>} : vector<8x4xbf16>, vector<4x16xbf16>, vector<8x16xf32> -> vector<8x16xf32>
    %153 = arith.addf %148, %152 : vector<8x16xf32>
    %154 = vector.extract_strided_slice %144 {offsets = [0, 4], sizes = [4, 16], strides = [1, 1]} : vector<4x20xbf16> to vector<4x16xbf16>
    %c2_115 = arith.constant 2 : index
    %c0_116 = arith.constant 0 : index
    %c0_117 = arith.constant 0 : index
    %155 = vector.load %arg3[%c2_115, %c0_116, %c0_117] : memref<9x8x4xbf16, #tpu.memory_space<vmem>>, vector<1x8x4xbf16>
    %156 = vector.shape_cast %155 : vector<1x8x4xbf16> to vector<8x4xbf16>
    %cst_118 = arith.constant dense<0.000000e+00> : vector<8x16xf32>
    %157 = tpu.matmul %156, %154, %cst_118 {dimension_numbers = #tpu.dot_dimension_numbers<[1], [0], [0], [1], [0, 0, 1, 1], [], []>} : vector<8x4xbf16>, vector<4x16xbf16>, vector<8x16xf32> -> vector<8x16xf32>
    %158 = arith.addf %153, %157 : vector<8x16xf32>
    %c2_i32_119 = arith.constant 2 : i32
    %159 = arith.addi %1, %c2_i32_119 : i32
    %c2_i32_120 = arith.constant 2 : i32
    %160 = arith.addi %159, %c2_i32_120 : i32
    %c0_121 = arith.constant 0 : index
    %161 = arith.index_cast %160 : i32 to index
    %c0_122 = arith.constant 0 : index
    %c0_123 = arith.constant 0 : index
    %162 = vector.load %arg2[%c0_121, %161, %c0_122, %c0_123] : memref<1x20x4x20xbf16, #tpu.memory_space<vmem>>, vector<1x1x4x20xbf16>
    %163 = vector.shape_cast %162 : vector<1x1x4x20xbf16> to vector<4x20xbf16>
    %164 = vector.extract_strided_slice %163 {offsets = [0, 0], sizes = [4, 16], strides = [1, 1]} : vector<4x20xbf16> to vector<4x16xbf16>
    %c3_124 = arith.constant 3 : index
    %c0_125 = arith.constant 0 : index
    %c0_126 = arith.constant 0 : index
    %165 = vector.load %arg3[%c3_124, %c0_125, %c0_126] : memref<9x8x4xbf16, #tpu.memory_space<vmem>>, vector<1x8x4xbf16>
    %166 = vector.shape_cast %165 : vector<1x8x4xbf16> to vector<8x4xbf16>
    %cst_127 = arith.constant dense<0.000000e+00> : vector<8x16xf32>
    %167 = tpu.matmul %166, %164, %cst_127 {dimension_numbers = #tpu.dot_dimension_numbers<[1], [0], [0], [1], [0, 0, 1, 1], [], []>} : vector<8x4xbf16>, vector<4x16xbf16>, vector<8x16xf32> -> vector<8x16xf32>
    %168 = arith.addf %158, %167 : vector<8x16xf32>
    %169 = vector.extract_strided_slice %163 {offsets = [0, 2], sizes = [4, 16], strides = [1, 1]} : vector<4x20xbf16> to vector<4x16xbf16>
    %c4_128 = arith.constant 4 : index
    %c0_129 = arith.constant 0 : index
    %c0_130 = arith.constant 0 : index
    %170 = vector.load %arg3[%c4_128, %c0_129, %c0_130] : memref<9x8x4xbf16, #tpu.memory_space<vmem>>, vector<1x8x4xbf16>
    %171 = vector.shape_cast %170 : vector<1x8x4xbf16> to vector<8x4xbf16>
    %cst_131 = arith.constant dense<0.000000e+00> : vector<8x16xf32>
    %172 = tpu.matmul %171, %169, %cst_131 {dimension_numbers = #tpu.dot_dimension_numbers<[1], [0], [0], [1], [0, 0, 1, 1], [], []>} : vector<8x4xbf16>, vector<4x16xbf16>, vector<8x16xf32> -> vector<8x16xf32>
    %173 = arith.addf %168, %172 : vector<8x16xf32>
    %174 = vector.extract_strided_slice %163 {offsets = [0, 4], sizes = [4, 16], strides = [1, 1]} : vector<4x20xbf16> to vector<4x16xbf16>
    %c5_132 = arith.constant 5 : index
    %c0_133 = arith.constant 0 : index
    %c0_134 = arith.constant 0 : index
    %175 = vector.load %arg3[%c5_132, %c0_133, %c0_134] : memref<9x8x4xbf16, #tpu.memory_space<vmem>>, vector<1x8x4xbf16>
    %176 = vector.shape_cast %175 : vector<1x8x4xbf16> to vector<8x4xbf16>
    %cst_135 = arith.constant dense<0.000000e+00> : vector<8x16xf32>
    %177 = tpu.matmul %176, %174, %cst_135 {dimension_numbers = #tpu.dot_dimension_numbers<[1], [0], [0], [1], [0, 0, 1, 1], [], []>} : vector<8x4xbf16>, vector<4x16xbf16>, vector<8x16xf32> -> vector<8x16xf32>
    %178 = arith.addf %173, %177 : vector<8x16xf32>
    %c2_i32_136 = arith.constant 2 : i32
    %179 = arith.addi %1, %c2_i32_136 : i32
    %c4_i32_137 = arith.constant 4 : i32
    %180 = arith.addi %179, %c4_i32_137 : i32
    %c0_138 = arith.constant 0 : index
    %181 = arith.index_cast %180 : i32 to index
    %c0_139 = arith.constant 0 : index
    %c0_140 = arith.constant 0 : index
    %182 = vector.load %arg2[%c0_138, %181, %c0_139, %c0_140] : memref<1x20x4x20xbf16, #tpu.memory_space<vmem>>, vector<1x1x4x20xbf16>
    %183 = vector.shape_cast %182 : vector<1x1x4x20xbf16> to vector<4x20xbf16>
    %184 = vector.extract_strided_slice %183 {offsets = [0, 0], sizes = [4, 16], strides = [1, 1]} : vector<4x20xbf16> to vector<4x16xbf16>
    %c6_141 = arith.constant 6 : index
    %c0_142 = arith.constant 0 : index
    %c0_143 = arith.constant 0 : index
    %185 = vector.load %arg3[%c6_141, %c0_142, %c0_143] : memref<9x8x4xbf16, #tpu.memory_space<vmem>>, vector<1x8x4xbf16>
    %186 = vector.shape_cast %185 : vector<1x8x4xbf16> to vector<8x4xbf16>
    %cst_144 = arith.constant dense<0.000000e+00> : vector<8x16xf32>
    %187 = tpu.matmul %186, %184, %cst_144 {dimension_numbers = #tpu.dot_dimension_numbers<[1], [0], [0], [1], [0, 0, 1, 1], [], []>} : vector<8x4xbf16>, vector<4x16xbf16>, vector<8x16xf32> -> vector<8x16xf32>
    %188 = arith.addf %178, %187 : vector<8x16xf32>
    %189 = vector.extract_strided_slice %183 {offsets = [0, 2], sizes = [4, 16], strides = [1, 1]} : vector<4x20xbf16> to vector<4x16xbf16>
    %c7_145 = arith.constant 7 : index
    %c0_146 = arith.constant 0 : index
    %c0_147 = arith.constant 0 : index
    %190 = vector.load %arg3[%c7_145, %c0_146, %c0_147] : memref<9x8x4xbf16, #tpu.memory_space<vmem>>, vector<1x8x4xbf16>
    %191 = vector.shape_cast %190 : vector<1x8x4xbf16> to vector<8x4xbf16>
    %cst_148 = arith.constant dense<0.000000e+00> : vector<8x16xf32>
    %192 = tpu.matmul %191, %189, %cst_148 {dimension_numbers = #tpu.dot_dimension_numbers<[1], [0], [0], [1], [0, 0, 1, 1], [], []>} : vector<8x4xbf16>, vector<4x16xbf16>, vector<8x16xf32> -> vector<8x16xf32>
    %193 = arith.addf %188, %192 : vector<8x16xf32>
    %194 = vector.extract_strided_slice %183 {offsets = [0, 4], sizes = [4, 16], strides = [1, 1]} : vector<4x20xbf16> to vector<4x16xbf16>
    %c8_149 = arith.constant 8 : index
    %c0_150 = arith.constant 0 : index
    %c0_151 = arith.constant 0 : index
    %195 = vector.load %arg3[%c8_149, %c0_150, %c0_151] : memref<9x8x4xbf16, #tpu.memory_space<vmem>>, vector<1x8x4xbf16>
    %196 = vector.shape_cast %195 : vector<1x8x4xbf16> to vector<8x4xbf16>
    %cst_152 = arith.constant dense<0.000000e+00> : vector<8x16xf32>
    %197 = tpu.matmul %196, %194, %cst_152 {dimension_numbers = #tpu.dot_dimension_numbers<[1], [0], [0], [1], [0, 0, 1, 1], [], []>} : vector<8x4xbf16>, vector<4x16xbf16>, vector<8x16xf32> -> vector<8x16xf32>
    %198 = arith.addf %193, %197 : vector<8x16xf32>
    %199 = vector.broadcast %2 : vector<8x1xf32> to vector<8x16xf32>
    %200 = arith.mulf %198, %199 : vector<8x16xf32>
    %201 = vector.broadcast %3 : vector<8x1xf32> to vector<8x16xf32>
    %202 = arith.addf %200, %201 : vector<8x16xf32>
    %cst_153 = arith.constant 0.000000e+00 : f32
    %203 = vector.broadcast %cst_153 : f32 to vector<8x16xf32>
    %204 = arith.maximumf %202, %203 : vector<8x16xf32>
    %c0_154 = arith.constant 0 : index
    %c0_155 = arith.constant 0 : index
    %c2_156 = arith.constant 2 : index
    %c0_157 = arith.constant 0 : index
    %205 = vector.load %arg6[%c0_154, %c0_155, %c2_156, %c0_157] : memref<1x8x8x16xf32, #tpu.memory_space<vmem>>, vector<1x8x1x16xf32>
    %206 = vector.shape_cast %205 : vector<1x8x1x16xf32> to vector<8x16xf32>
    %207 = vector.shape_cast %204 : vector<8x16xf32> to vector<1x8x1x16xf32>
    tpu.vector_store %arg6[%c0_154, %c0_155, %c2_156, %c0_157], %207 {strides = array<i32>} : memref<1x8x8x16xf32, #tpu.memory_space<vmem>>, vector<1x8x1x16xf32>,
    %c3_i32 = arith.constant 3 : i32
    %208 = arith.addi %1, %c3_i32 : i32
    %c0_i32_158 = arith.constant 0 : i32
    %209 = arith.addi %208, %c0_i32_158 : i32
    %c0_159 = arith.constant 0 : index
    %210 = arith.index_cast %209 : i32 to index
    %c0_160 = arith.constant 0 : index
    %c0_161 = arith.constant 0 : index
    %211 = vector.load %arg2[%c0_159, %210, %c0_160, %c0_161] : memref<1x20x4x20xbf16, #tpu.memory_space<vmem>>, vector<1x1x4x20xbf16>
    %212 = vector.shape_cast %211 : vector<1x1x4x20xbf16> to vector<4x20xbf16>
    %213 = vector.extract_strided_slice %212 {offsets = [0, 0], sizes = [4, 16], strides = [1, 1]} : vector<4x20xbf16> to vector<4x16xbf16>
    %c0_162 = arith.constant 0 : index
    %c0_163 = arith.constant 0 : index
    %c0_164 = arith.constant 0 : index
    %214 = vector.load %arg3[%c0_162, %c0_163, %c0_164] : memref<9x8x4xbf16, #tpu.memory_space<vmem>>, vector<1x8x4xbf16>
    %215 = vector.shape_cast %214 : vector<1x8x4xbf16> to vector<8x4xbf16>
    %cst_165 = arith.constant dense<0.000000e+00> : vector<8x16xf32>
    %216 = tpu.matmul %215, %213, %cst_165 {dimension_numbers = #tpu.dot_dimension_numbers<[1], [0], [0], [1], [0, 0, 1, 1], [], []>} : vector<8x4xbf16>, vector<4x16xbf16>, vector<8x16xf32> -> vector<8x16xf32>
    %217 = vector.extract_strided_slice %212 {offsets = [0, 2], sizes = [4, 16], strides = [1, 1]} : vector<4x20xbf16> to vector<4x16xbf16>
    %c1_166 = arith.constant 1 : index
    %c0_167 = arith.constant 0 : index
    %c0_168 = arith.constant 0 : index
    %218 = vector.load %arg3[%c1_166, %c0_167, %c0_168] : memref<9x8x4xbf16, #tpu.memory_space<vmem>>, vector<1x8x4xbf16>
    %219 = vector.shape_cast %218 : vector<1x8x4xbf16> to vector<8x4xbf16>
    %cst_169 = arith.constant dense<0.000000e+00> : vector<8x16xf32>
    %220 = tpu.matmul %219, %217, %cst_169 {dimension_numbers = #tpu.dot_dimension_numbers<[1], [0], [0], [1], [0, 0, 1, 1], [], []>} : vector<8x4xbf16>, vector<4x16xbf16>, vector<8x16xf32> -> vector<8x16xf32>
    %221 = arith.addf %216, %220 : vector<8x16xf32>
    %222 = vector.extract_strided_slice %212 {offsets = [0, 4], sizes = [4, 16], strides = [1, 1]} : vector<4x20xbf16> to vector<4x16xbf16>
    %c2_170 = arith.constant 2 : index
    %c0_171 = arith.constant 0 : index
    %c0_172 = arith.constant 0 : index
    %223 = vector.load %arg3[%c2_170, %c0_171, %c0_172] : memref<9x8x4xbf16, #tpu.memory_space<vmem>>, vector<1x8x4xbf16>
    %224 = vector.shape_cast %223 : vector<1x8x4xbf16> to vector<8x4xbf16>
    %cst_173 = arith.constant dense<0.000000e+00> : vector<8x16xf32>
    %225 = tpu.matmul %224, %222, %cst_173 {dimension_numbers = #tpu.dot_dimension_numbers<[1], [0], [0], [1], [0, 0, 1, 1], [], []>} : vector<8x4xbf16>, vector<4x16xbf16>, vector<8x16xf32> -> vector<8x16xf32>
    %226 = arith.addf %221, %225 : vector<8x16xf32>
    %c3_i32_174 = arith.constant 3 : i32
    %227 = arith.addi %1, %c3_i32_174 : i32
    %c2_i32_175 = arith.constant 2 : i32
    %228 = arith.addi %227, %c2_i32_175 : i32
    %c0_176 = arith.constant 0 : index
    %229 = arith.index_cast %228 : i32 to index
    %c0_177 = arith.constant 0 : index
    %c0_178 = arith.constant 0 : index
    %230 = vector.load %arg2[%c0_176, %229, %c0_177, %c0_178] : memref<1x20x4x20xbf16, #tpu.memory_space<vmem>>, vector<1x1x4x20xbf16>
    %231 = vector.shape_cast %230 : vector<1x1x4x20xbf16> to vector<4x20xbf16>
    %232 = vector.extract_strided_slice %231 {offsets = [0, 0], sizes = [4, 16], strides = [1, 1]} : vector<4x20xbf16> to vector<4x16xbf16>
    %c3_179 = arith.constant 3 : index
    %c0_180 = arith.constant 0 : index
    %c0_181 = arith.constant 0 : index
    %233 = vector.load %arg3[%c3_179, %c0_180, %c0_181] : memref<9x8x4xbf16, #tpu.memory_space<vmem>>, vector<1x8x4xbf16>
    %234 = vector.shape_cast %233 : vector<1x8x4xbf16> to vector<8x4xbf16>
    %cst_182 = arith.constant dense<0.000000e+00> : vector<8x16xf32>
    %235 = tpu.matmul %234, %232, %cst_182 {dimension_numbers = #tpu.dot_dimension_numbers<[1], [0], [0], [1], [0, 0, 1, 1], [], []>} : vector<8x4xbf16>, vector<4x16xbf16>, vector<8x16xf32> -> vector<8x16xf32>
    %236 = arith.addf %226, %235 : vector<8x16xf32>
    %237 = vector.extract_strided_slice %231 {offsets = [0, 2], sizes = [4, 16], strides = [1, 1]} : vector<4x20xbf16> to vector<4x16xbf16>
    %c4_183 = arith.constant 4 : index
    %c0_184 = arith.constant 0 : index
    %c0_185 = arith.constant 0 : index
    %238 = vector.load %arg3[%c4_183, %c0_184, %c0_185] : memref<9x8x4xbf16, #tpu.memory_space<vmem>>, vector<1x8x4xbf16>
    %239 = vector.shape_cast %238 : vector<1x8x4xbf16> to vector<8x4xbf16>
    %cst_186 = arith.constant dense<0.000000e+00> : vector<8x16xf32>
    %240 = tpu.matmul %239, %237, %cst_186 {dimension_numbers = #tpu.dot_dimension_numbers<[1], [0], [0], [1], [0, 0, 1, 1], [], []>} : vector<8x4xbf16>, vector<4x16xbf16>, vector<8x16xf32> -> vector<8x16xf32>
    %241 = arith.addf %236, %240 : vector<8x16xf32>
    %242 = vector.extract_strided_slice %231 {offsets = [0, 4], sizes = [4, 16], strides = [1, 1]} : vector<4x20xbf16> to vector<4x16xbf16>
    %c5_187 = arith.constant 5 : index
    %c0_188 = arith.constant 0 : index
    %c0_189 = arith.constant 0 : index
    %243 = vector.load %arg3[%c5_187, %c0_188, %c0_189] : memref<9x8x4xbf16, #tpu.memory_space<vmem>>, vector<1x8x4xbf16>
    %244 = vector.shape_cast %243 : vector<1x8x4xbf16> to vector<8x4xbf16>
    %cst_190 = arith.constant dense<0.000000e+00> : vector<8x16xf32>
    %245 = tpu.matmul %244, %242, %cst_190 {dimension_numbers = #tpu.dot_dimension_numbers<[1], [0], [0], [1], [0, 0, 1, 1], [], []>} : vector<8x4xbf16>, vector<4x16xbf16>, vector<8x16xf32> -> vector<8x16xf32>
    %246 = arith.addf %241, %245 : vector<8x16xf32>
    %c3_i32_191 = arith.constant 3 : i32
    %247 = arith.addi %1, %c3_i32_191 : i32
    %c4_i32_192 = arith.constant 4 : i32
    %248 = arith.addi %247, %c4_i32_192 : i32
    %c0_193 = arith.constant 0 : index
    %249 = arith.index_cast %248 : i32 to index
    %c0_194 = arith.constant 0 : index
    %c0_195 = arith.constant 0 : index
    %250 = vector.load %arg2[%c0_193, %249, %c0_194, %c0_195] : memref<1x20x4x20xbf16, #tpu.memory_space<vmem>>, vector<1x1x4x20xbf16>
    %251 = vector.shape_cast %250 : vector<1x1x4x20xbf16> to vector<4x20xbf16>
    %252 = vector.extract_strided_slice %251 {offsets = [0, 0], sizes = [4, 16], strides = [1, 1]} : vector<4x20xbf16> to vector<4x16xbf16>
    %c6_196 = arith.constant 6 : index
    %c0_197 = arith.constant 0 : index
    %c0_198 = arith.constant 0 : index
    %253 = vector.load %arg3[%c6_196, %c0_197, %c0_198] : memref<9x8x4xbf16, #tpu.memory_space<vmem>>, vector<1x8x4xbf16>
    %254 = vector.shape_cast %253 : vector<1x8x4xbf16> to vector<8x4xbf16>
    %cst_199 = arith.constant dense<0.000000e+00> : vector<8x16xf32>
    %255 = tpu.matmul %254, %252, %cst_199 {dimension_numbers = #tpu.dot_dimension_numbers<[1], [0], [0], [1], [0, 0, 1, 1], [], []>} : vector<8x4xbf16>, vector<4x16xbf16>, vector<8x16xf32> -> vector<8x16xf32>
    %256 = arith.addf %246, %255 : vector<8x16xf32>
    %257 = vector.extract_strided_slice %251 {offsets = [0, 2], sizes = [4, 16], strides = [1, 1]} : vector<4x20xbf16> to vector<4x16xbf16>
    %c7_200 = arith.constant 7 : index
    %c0_201 = arith.constant 0 : index
    %c0_202 = arith.constant 0 : index
    %258 = vector.load %arg3[%c7_200, %c0_201, %c0_202] : memref<9x8x4xbf16, #tpu.memory_space<vmem>>, vector<1x8x4xbf16>
    %259 = vector.shape_cast %258 : vector<1x8x4xbf16> to vector<8x4xbf16>
    %cst_203 = arith.constant dense<0.000000e+00> : vector<8x16xf32>
    %260 = tpu.matmul %259, %257, %cst_203 {dimension_numbers = #tpu.dot_dimension_numbers<[1], [0], [0], [1], [0, 0, 1, 1], [], []>} : vector<8x4xbf16>, vector<4x16xbf16>, vector<8x16xf32> -> vector<8x16xf32>
    %261 = arith.addf %256, %260 : vector<8x16xf32>
    %262 = vector.extract_strided_slice %251 {offsets = [0, 4], sizes = [4, 16], strides = [1, 1]} : vector<4x20xbf16> to vector<4x16xbf16>
    %c8_204 = arith.constant 8 : index
    %c0_205 = arith.constant 0 : index
    %c0_206 = arith.constant 0 : index
    %263 = vector.load %arg3[%c8_204, %c0_205, %c0_206] : memref<9x8x4xbf16, #tpu.memory_space<vmem>>, vector<1x8x4xbf16>
    %264 = vector.shape_cast %263 : vector<1x8x4xbf16> to vector<8x4xbf16>
    %cst_207 = arith.constant dense<0.000000e+00> : vector<8x16xf32>
    %265 = tpu.matmul %264, %262, %cst_207 {dimension_numbers = #tpu.dot_dimension_numbers<[1], [0], [0], [1], [0, 0, 1, 1], [], []>} : vector<8x4xbf16>, vector<4x16xbf16>, vector<8x16xf32> -> vector<8x16xf32>
    %266 = arith.addf %261, %265 : vector<8x16xf32>
    %267 = vector.broadcast %2 : vector<8x1xf32> to vector<8x16xf32>
    %268 = arith.mulf %266, %267 : vector<8x16xf32>
    %269 = vector.broadcast %3 : vector<8x1xf32> to vector<8x16xf32>
    %270 = arith.addf %268, %269 : vector<8x16xf32>
    %cst_208 = arith.constant 0.000000e+00 : f32
    %271 = vector.broadcast %cst_208 : f32 to vector<8x16xf32>
    %272 = arith.maximumf %270, %271 : vector<8x16xf32>
    %c0_209 = arith.constant 0 : index
    %c0_210 = arith.constant 0 : index
    %c3_211 = arith.constant 3 : index
    %c0_212 = arith.constant 0 : index
    %273 = vector.load %arg6[%c0_209, %c0_210, %c3_211, %c0_212] : memref<1x8x8x16xf32, #tpu.memory_space<vmem>>, vector<1x8x1x16xf32>
    %274 = vector.shape_cast %273 : vector<1x8x1x16xf32> to vector<8x16xf32>
    %275 = vector.shape_cast %272 : vector<8x16xf32> to vector<1x8x1x16xf32>
    tpu.vector_store %arg6[%c0_209, %c0_210, %c3_211, %c0_212], %275 {strides = array<i32>} : memref<1x8x8x16xf32, #tpu.memory_space<vmem>>, vector<1x8x1x16xf32>,
    %c4_i32_213 = arith.constant 4 : i32
    %276 = arith.addi %1, %c4_i32_213 : i32
    %c0_i32_214 = arith.constant 0 : i32
    %277 = arith.addi %276, %c0_i32_214 : i32
    %c0_215 = arith.constant 0 : index
    %278 = arith.index_cast %277 : i32 to index
    %c0_216 = arith.constant 0 : index
    %c0_217 = arith.constant 0 : index
    %279 = vector.load %arg2[%c0_215, %278, %c0_216, %c0_217] : memref<1x20x4x20xbf16, #tpu.memory_space<vmem>>, vector<1x1x4x20xbf16>
    %280 = vector.shape_cast %279 : vector<1x1x4x20xbf16> to vector<4x20xbf16>
    %281 = vector.extract_strided_slice %280 {offsets = [0, 0], sizes = [4, 16], strides = [1, 1]} : vector<4x20xbf16> to vector<4x16xbf16>
    %c0_218 = arith.constant 0 : index
    %c0_219 = arith.constant 0 : index
    %c0_220 = arith.constant 0 : index
    %282 = vector.load %arg3[%c0_218, %c0_219, %c0_220] : memref<9x8x4xbf16, #tpu.memory_space<vmem>>, vector<1x8x4xbf16>
    %283 = vector.shape_cast %282 : vector<1x8x4xbf16> to vector<8x4xbf16>
    %cst_221 = arith.constant dense<0.000000e+00> : vector<8x16xf32>
    %284 = tpu.matmul %283, %281, %cst_221 {dimension_numbers = #tpu.dot_dimension_numbers<[1], [0], [0], [1], [0, 0, 1, 1], [], []>} : vector<8x4xbf16>, vector<4x16xbf16>, vector<8x16xf32> -> vector<8x16xf32>
    %285 = vector.extract_strided_slice %280 {offsets = [0, 2], sizes = [4, 16], strides = [1, 1]} : vector<4x20xbf16> to vector<4x16xbf16>
    %c1_222 = arith.constant 1 : index
    %c0_223 = arith.constant 0 : index
    %c0_224 = arith.constant 0 : index
    %286 = vector.load %arg3[%c1_222, %c0_223, %c0_224] : memref<9x8x4xbf16, #tpu.memory_space<vmem>>, vector<1x8x4xbf16>
    %287 = vector.shape_cast %286 : vector<1x8x4xbf16> to vector<8x4xbf16>
    %cst_225 = arith.constant dense<0.000000e+00> : vector<8x16xf32>
    %288 = tpu.matmul %287, %285, %cst_225 {dimension_numbers = #tpu.dot_dimension_numbers<[1], [0], [0], [1], [0, 0, 1, 1], [], []>} : vector<8x4xbf16>, vector<4x16xbf16>, vector<8x16xf32> -> vector<8x16xf32>
    %289 = arith.addf %284, %288 : vector<8x16xf32>
    %290 = vector.extract_strided_slice %280 {offsets = [0, 4], sizes = [4, 16], strides = [1, 1]} : vector<4x20xbf16> to vector<4x16xbf16>
    %c2_226 = arith.constant 2 : index
    %c0_227 = arith.constant 0 : index
    %c0_228 = arith.constant 0 : index
    %291 = vector.load %arg3[%c2_226, %c0_227, %c0_228] : memref<9x8x4xbf16, #tpu.memory_space<vmem>>, vector<1x8x4xbf16>
    %292 = vector.shape_cast %291 : vector<1x8x4xbf16> to vector<8x4xbf16>
    %cst_229 = arith.constant dense<0.000000e+00> : vector<8x16xf32>
    %293 = tpu.matmul %292, %290, %cst_229 {dimension_numbers = #tpu.dot_dimension_numbers<[1], [0], [0], [1], [0, 0, 1, 1], [], []>} : vector<8x4xbf16>, vector<4x16xbf16>, vector<8x16xf32> -> vector<8x16xf32>
    %294 = arith.addf %289, %293 : vector<8x16xf32>
    %c4_i32_230 = arith.constant 4 : i32
    %295 = arith.addi %1, %c4_i32_230 : i32
    %c2_i32_231 = arith.constant 2 : i32
    %296 = arith.addi %295, %c2_i32_231 : i32
    %c0_232 = arith.constant 0 : index
    %297 = arith.index_cast %296 : i32 to index
    %c0_233 = arith.constant 0 : index
    %c0_234 = arith.constant 0 : index
    %298 = vector.load %arg2[%c0_232, %297, %c0_233, %c0_234] : memref<1x20x4x20xbf16, #tpu.memory_space<vmem>>, vector<1x1x4x20xbf16>
    %299 = vector.shape_cast %298 : vector<1x1x4x20xbf16> to vector<4x20xbf16>
    %300 = vector.extract_strided_slice %299 {offsets = [0, 0], sizes = [4, 16], strides = [1, 1]} : vector<4x20xbf16> to vector<4x16xbf16>
    %c3_235 = arith.constant 3 : index
    %c0_236 = arith.constant 0 : index
    %c0_237 = arith.constant 0 : index
    %301 = vector.load %arg3[%c3_235, %c0_236, %c0_237] : memref<9x8x4xbf16, #tpu.memory_space<vmem>>, vector<1x8x4xbf16>
    %302 = vector.shape_cast %301 : vector<1x8x4xbf16> to vector<8x4xbf16>
    %cst_238 = arith.constant dense<0.000000e+00> : vector<8x16xf32>
    %303 = tpu.matmul %302, %300, %cst_238 {dimension_numbers = #tpu.dot_dimension_numbers<[1], [0], [0], [1], [0, 0, 1, 1], [], []>} : vector<8x4xbf16>, vector<4x16xbf16>, vector<8x16xf32> -> vector<8x16xf32>
    %304 = arith.addf %294, %303 : vector<8x16xf32>
    %305 = vector.extract_strided_slice %299 {offsets = [0, 2], sizes = [4, 16], strides = [1, 1]} : vector<4x20xbf16> to vector<4x16xbf16>
    %c4_239 = arith.constant 4 : index
    %c0_240 = arith.constant 0 : index
    %c0_241 = arith.constant 0 : index
    %306 = vector.load %arg3[%c4_239, %c0_240, %c0_241] : memref<9x8x4xbf16, #tpu.memory_space<vmem>>, vector<1x8x4xbf16>
    %307 = vector.shape_cast %306 : vector<1x8x4xbf16> to vector<8x4xbf16>
    %cst_242 = arith.constant dense<0.000000e+00> : vector<8x16xf32>
    %308 = tpu.matmul %307, %305, %cst_242 {dimension_numbers = #tpu.dot_dimension_numbers<[1], [0], [0], [1], [0, 0, 1, 1], [], []>} : vector<8x4xbf16>, vector<4x16xbf16>, vector<8x16xf32> -> vector<8x16xf32>
    %309 = arith.addf %304, %308 : vector<8x16xf32>
    %310 = vector.extract_strided_slice %299 {offsets = [0, 4], sizes = [4, 16], strides = [1, 1]} : vector<4x20xbf16> to vector<4x16xbf16>
    %c5_243 = arith.constant 5 : index
    %c0_244 = arith.constant 0 : index
    %c0_245 = arith.constant 0 : index
    %311 = vector.load %arg3[%c5_243, %c0_244, %c0_245] : memref<9x8x4xbf16, #tpu.memory_space<vmem>>, vector<1x8x4xbf16>
    %312 = vector.shape_cast %311 : vector<1x8x4xbf16> to vector<8x4xbf16>
    %cst_246 = arith.constant dense<0.000000e+00> : vector<8x16xf32>
    %313 = tpu.matmul %312, %310, %cst_246 {dimension_numbers = #tpu.dot_dimension_numbers<[1], [0], [0], [1], [0, 0, 1, 1], [], []>} : vector<8x4xbf16>, vector<4x16xbf16>, vector<8x16xf32> -> vector<8x16xf32>
    %314 = arith.addf %309, %313 : vector<8x16xf32>
    %c4_i32_247 = arith.constant 4 : i32
    %315 = arith.addi %1, %c4_i32_247 : i32
    %c4_i32_248 = arith.constant 4 : i32
    %316 = arith.addi %315, %c4_i32_248 : i32
    %c0_249 = arith.constant 0 : index
    %317 = arith.index_cast %316 : i32 to index
    %c0_250 = arith.constant 0 : index
    %c0_251 = arith.constant 0 : index
    %318 = vector.load %arg2[%c0_249, %317, %c0_250, %c0_251] : memref<1x20x4x20xbf16, #tpu.memory_space<vmem>>, vector<1x1x4x20xbf16>
    %319 = vector.shape_cast %318 : vector<1x1x4x20xbf16> to vector<4x20xbf16>
    %320 = vector.extract_strided_slice %319 {offsets = [0, 0], sizes = [4, 16], strides = [1, 1]} : vector<4x20xbf16> to vector<4x16xbf16>
    %c6_252 = arith.constant 6 : index
    %c0_253 = arith.constant 0 : index
    %c0_254 = arith.constant 0 : index
    %321 = vector.load %arg3[%c6_252, %c0_253, %c0_254] : memref<9x8x4xbf16, #tpu.memory_space<vmem>>, vector<1x8x4xbf16>
    %322 = vector.shape_cast %321 : vector<1x8x4xbf16> to vector<8x4xbf16>
    %cst_255 = arith.constant dense<0.000000e+00> : vector<8x16xf32>
    %323 = tpu.matmul %322, %320, %cst_255 {dimension_numbers = #tpu.dot_dimension_numbers<[1], [0], [0], [1], [0, 0, 1, 1], [], []>} : vector<8x4xbf16>, vector<4x16xbf16>, vector<8x16xf32> -> vector<8x16xf32>
    %324 = arith.addf %314, %323 : vector<8x16xf32>
    %325 = vector.extract_strided_slice %319 {offsets = [0, 2], sizes = [4, 16], strides = [1, 1]} : vector<4x20xbf16> to vector<4x16xbf16>
    %c7_256 = arith.constant 7 : index
    %c0_257 = arith.constant 0 : index
    %c0_258 = arith.constant 0 : index
    %326 = vector.load %arg3[%c7_256, %c0_257, %c0_258] : memref<9x8x4xbf16, #tpu.memory_space<vmem>>, vector<1x8x4xbf16>
    %327 = vector.shape_cast %326 : vector<1x8x4xbf16> to vector<8x4xbf16>
    %cst_259 = arith.constant dense<0.000000e+00> : vector<8x16xf32>
    %328 = tpu.matmul %327, %325, %cst_259 {dimension_numbers = #tpu.dot_dimension_numbers<[1], [0], [0], [1], [0, 0, 1, 1], [], []>} : vector<8x4xbf16>, vector<4x16xbf16>, vector<8x16xf32> -> vector<8x16xf32>
    %329 = arith.addf %324, %328 : vector<8x16xf32>
    %330 = vector.extract_strided_slice %319 {offsets = [0, 4], sizes = [4, 16], strides = [1, 1]} : vector<4x20xbf16> to vector<4x16xbf16>
    %c8_260 = arith.constant 8 : index
    %c0_261 = arith.constant 0 : index
    %c0_262 = arith.constant 0 : index
    %331 = vector.load %arg3[%c8_260, %c0_261, %c0_262] : memref<9x8x4xbf16, #tpu.memory_space<vmem>>, vector<1x8x4xbf16>
    %332 = vector.shape_cast %331 : vector<1x8x4xbf16> to vector<8x4xbf16>
    %cst_263 = arith.constant dense<0.000000e+00> : vector<8x16xf32>
    %333 = tpu.matmul %332, %330, %cst_263 {dimension_numbers = #tpu.dot_dimension_numbers<[1], [0], [0], [1], [0, 0, 1, 1], [], []>} : vector<8x4xbf16>, vector<4x16xbf16>, vector<8x16xf32> -> vector<8x16xf32>
    %334 = arith.addf %329, %333 : vector<8x16xf32>
    %335 = vector.broadcast %2 : vector<8x1xf32> to vector<8x16xf32>
    %336 = arith.mulf %334, %335 : vector<8x16xf32>
    %337 = vector.broadcast %3 : vector<8x1xf32> to vector<8x16xf32>
    %338 = arith.addf %336, %337 : vector<8x16xf32>
    %cst_264 = arith.constant 0.000000e+00 : f32
    %339 = vector.broadcast %cst_264 : f32 to vector<8x16xf32>
    %340 = arith.maximumf %338, %339 : vector<8x16xf32>
    %c0_265 = arith.constant 0 : index
    %c0_266 = arith.constant 0 : index
    %c4_267 = arith.constant 4 : index
    %c0_268 = arith.constant 0 : index
    %341 = vector.load %arg6[%c0_265, %c0_266, %c4_267, %c0_268] : memref<1x8x8x16xf32, #tpu.memory_space<vmem>>, vector<1x8x1x16xf32>
    %342 = vector.shape_cast %341 : vector<1x8x1x16xf32> to vector<8x16xf32>
    %343 = vector.shape_cast %340 : vector<8x16xf32> to vector<1x8x1x16xf32>
    tpu.vector_store %arg6[%c0_265, %c0_266, %c4_267, %c0_268], %343 {strides = array<i32>} : memref<1x8x8x16xf32, #tpu.memory_space<vmem>>, vector<1x8x1x16xf32>,
    %c5_i32 = arith.constant 5 : i32
    %344 = arith.addi %1, %c5_i32 : i32
    %c0_i32_269 = arith.constant 0 : i32
    %345 = arith.addi %344, %c0_i32_269 : i32
    %c0_270 = arith.constant 0 : index
    %346 = arith.index_cast %345 : i32 to index
    %c0_271 = arith.constant 0 : index
    %c0_272 = arith.constant 0 : index
    %347 = vector.load %arg2[%c0_270, %346, %c0_271, %c0_272] : memref<1x20x4x20xbf16, #tpu.memory_space<vmem>>, vector<1x1x4x20xbf16>
    %348 = vector.shape_cast %347 : vector<1x1x4x20xbf16> to vector<4x20xbf16>
    %349 = vector.extract_strided_slice %348 {offsets = [0, 0], sizes = [4, 16], strides = [1, 1]} : vector<4x20xbf16> to vector<4x16xbf16>
    %c0_273 = arith.constant 0 : index
    %c0_274 = arith.constant 0 : index
    %c0_275 = arith.constant 0 : index
    %350 = vector.load %arg3[%c0_273, %c0_274, %c0_275] : memref<9x8x4xbf16, #tpu.memory_space<vmem>>, vector<1x8x4xbf16>
    %351 = vector.shape_cast %350 : vector<1x8x4xbf16> to vector<8x4xbf16>
    %cst_276 = arith.constant dense<0.000000e+00> : vector<8x16xf32>
    %352 = tpu.matmul %351, %349, %cst_276 {dimension_numbers = #tpu.dot_dimension_numbers<[1], [0], [0], [1], [0, 0, 1, 1], [], []>} : vector<8x4xbf16>, vector<4x16xbf16>, vector<8x16xf32> -> vector<8x16xf32>
    %353 = vector.extract_strided_slice %348 {offsets = [0, 2], sizes = [4, 16], strides = [1, 1]} : vector<4x20xbf16> to vector<4x16xbf16>
    %c1_277 = arith.constant 1 : index
    %c0_278 = arith.constant 0 : index
    %c0_279 = arith.constant 0 : index
    %354 = vector.load %arg3[%c1_277, %c0_278, %c0_279] : memref<9x8x4xbf16, #tpu.memory_space<vmem>>, vector<1x8x4xbf16>
    %355 = vector.shape_cast %354 : vector<1x8x4xbf16> to vector<8x4xbf16>
    %cst_280 = arith.constant dense<0.000000e+00> : vector<8x16xf32>
    %356 = tpu.matmul %355, %353, %cst_280 {dimension_numbers = #tpu.dot_dimension_numbers<[1], [0], [0], [1], [0, 0, 1, 1], [], []>} : vector<8x4xbf16>, vector<4x16xbf16>, vector<8x16xf32> -> vector<8x16xf32>
    %357 = arith.addf %352, %356 : vector<8x16xf32>
    %358 = vector.extract_strided_slice %348 {offsets = [0, 4], sizes = [4, 16], strides = [1, 1]} : vector<4x20xbf16> to vector<4x16xbf16>
    %c2_281 = arith.constant 2 : index
    %c0_282 = arith.constant 0 : index
    %c0_283 = arith.constant 0 : index
    %359 = vector.load %arg3[%c2_281, %c0_282, %c0_283] : memref<9x8x4xbf16, #tpu.memory_space<vmem>>, vector<1x8x4xbf16>
    %360 = vector.shape_cast %359 : vector<1x8x4xbf16> to vector<8x4xbf16>
    %cst_284 = arith.constant dense<0.000000e+00> : vector<8x16xf32>
    %361 = tpu.matmul %360, %358, %cst_284 {dimension_numbers = #tpu.dot_dimension_numbers<[1], [0], [0], [1], [0, 0, 1, 1], [], []>} : vector<8x4xbf16>, vector<4x16xbf16>, vector<8x16xf32> -> vector<8x16xf32>
    %362 = arith.addf %357, %361 : vector<8x16xf32>
    %c5_i32_285 = arith.constant 5 : i32
    %363 = arith.addi %1, %c5_i32_285 : i32
    %c2_i32_286 = arith.constant 2 : i32
    %364 = arith.addi %363, %c2_i32_286 : i32
    %c0_287 = arith.constant 0 : index
    %365 = arith.index_cast %364 : i32 to index
    %c0_288 = arith.constant 0 : index
    %c0_289 = arith.constant 0 : index
    %366 = vector.load %arg2[%c0_287, %365, %c0_288, %c0_289] : memref<1x20x4x20xbf16, #tpu.memory_space<vmem>>, vector<1x1x4x20xbf16>
    %367 = vector.shape_cast %366 : vector<1x1x4x20xbf16> to vector<4x20xbf16>
    %368 = vector.extract_strided_slice %367 {offsets = [0, 0], sizes = [4, 16], strides = [1, 1]} : vector<4x20xbf16> to vector<4x16xbf16>
    %c3_290 = arith.constant 3 : index
    %c0_291 = arith.constant 0 : index
    %c0_292 = arith.constant 0 : index
    %369 = vector.load %arg3[%c3_290, %c0_291, %c0_292] : memref<9x8x4xbf16, #tpu.memory_space<vmem>>, vector<1x8x4xbf16>
    %370 = vector.shape_cast %369 : vector<1x8x4xbf16> to vector<8x4xbf16>
    %cst_293 = arith.constant dense<0.000000e+00> : vector<8x16xf32>
    %371 = tpu.matmul %370, %368, %cst_293 {dimension_numbers = #tpu.dot_dimension_numbers<[1], [0], [0], [1], [0, 0, 1, 1], [], []>} : vector<8x4xbf16>, vector<4x16xbf16>, vector<8x16xf32> -> vector<8x16xf32>
    %372 = arith.addf %362, %371 : vector<8x16xf32>
    %373 = vector.extract_strided_slice %367 {offsets = [0, 2], sizes = [4, 16], strides = [1, 1]} : vector<4x20xbf16> to vector<4x16xbf16>
    %c4_294 = arith.constant 4 : index
    %c0_295 = arith.constant 0 : index
    %c0_296 = arith.constant 0 : index
    %374 = vector.load %arg3[%c4_294, %c0_295, %c0_296] : memref<9x8x4xbf16, #tpu.memory_space<vmem>>, vector<1x8x4xbf16>
    %375 = vector.shape_cast %374 : vector<1x8x4xbf16> to vector<8x4xbf16>
    %cst_297 = arith.constant dense<0.000000e+00> : vector<8x16xf32>
    %376 = tpu.matmul %375, %373, %cst_297 {dimension_numbers = #tpu.dot_dimension_numbers<[1], [0], [0], [1], [0, 0, 1, 1], [], []>} : vector<8x4xbf16>, vector<4x16xbf16>, vector<8x16xf32> -> vector<8x16xf32>
    %377 = arith.addf %372, %376 : vector<8x16xf32>
    %378 = vector.extract_strided_slice %367 {offsets = [0, 4], sizes = [4, 16], strides = [1, 1]} : vector<4x20xbf16> to vector<4x16xbf16>
    %c5_298 = arith.constant 5 : index
    %c0_299 = arith.constant 0 : index
    %c0_300 = arith.constant 0 : index
    %379 = vector.load %arg3[%c5_298, %c0_299, %c0_300] : memref<9x8x4xbf16, #tpu.memory_space<vmem>>, vector<1x8x4xbf16>
    %380 = vector.shape_cast %379 : vector<1x8x4xbf16> to vector<8x4xbf16>
    %cst_301 = arith.constant dense<0.000000e+00> : vector<8x16xf32>
    %381 = tpu.matmul %380, %378, %cst_301 {dimension_numbers = #tpu.dot_dimension_numbers<[1], [0], [0], [1], [0, 0, 1, 1], [], []>} : vector<8x4xbf16>, vector<4x16xbf16>, vector<8x16xf32> -> vector<8x16xf32>
    %382 = arith.addf %377, %381 : vector<8x16xf32>
    %c5_i32_302 = arith.constant 5 : i32
    %383 = arith.addi %1, %c5_i32_302 : i32
    %c4_i32_303 = arith.constant 4 : i32
    %384 = arith.addi %383, %c4_i32_303 : i32
    %c0_304 = arith.constant 0 : index
    %385 = arith.index_cast %384 : i32 to index
    %c0_305 = arith.constant 0 : index
    %c0_306 = arith.constant 0 : index
    %386 = vector.load %arg2[%c0_304, %385, %c0_305, %c0_306] : memref<1x20x4x20xbf16, #tpu.memory_space<vmem>>, vector<1x1x4x20xbf16>
    %387 = vector.shape_cast %386 : vector<1x1x4x20xbf16> to vector<4x20xbf16>
    %388 = vector.extract_strided_slice %387 {offsets = [0, 0], sizes = [4, 16], strides = [1, 1]} : vector<4x20xbf16> to vector<4x16xbf16>
    %c6_307 = arith.constant 6 : index
    %c0_308 = arith.constant 0 : index
    %c0_309 = arith.constant 0 : index
    %389 = vector.load %arg3[%c6_307, %c0_308, %c0_309] : memref<9x8x4xbf16, #tpu.memory_space<vmem>>, vector<1x8x4xbf16>
    %390 = vector.shape_cast %389 : vector<1x8x4xbf16> to vector<8x4xbf16>
    %cst_310 = arith.constant dense<0.000000e+00> : vector<8x16xf32>
    %391 = tpu.matmul %390, %388, %cst_310 {dimension_numbers = #tpu.dot_dimension_numbers<[1], [0], [0], [1], [0, 0, 1, 1], [], []>} : vector<8x4xbf16>, vector<4x16xbf16>, vector<8x16xf32> -> vector<8x16xf32>
    %392 = arith.addf %382, %391 : vector<8x16xf32>
    %393 = vector.extract_strided_slice %387 {offsets = [0, 2], sizes = [4, 16], strides = [1, 1]} : vector<4x20xbf16> to vector<4x16xbf16>
    %c7_311 = arith.constant 7 : index
    %c0_312 = arith.constant 0 : index
    %c0_313 = arith.constant 0 : index
    %394 = vector.load %arg3[%c7_311, %c0_312, %c0_313] : memref<9x8x4xbf16, #tpu.memory_space<vmem>>, vector<1x8x4xbf16>
    %395 = vector.shape_cast %394 : vector<1x8x4xbf16> to vector<8x4xbf16>
    %cst_314 = arith.constant dense<0.000000e+00> : vector<8x16xf32>
    %396 = tpu.matmul %395, %393, %cst_314 {dimension_numbers = #tpu.dot_dimension_numbers<[1], [0], [0], [1], [0, 0, 1, 1], [], []>} : vector<8x4xbf16>, vector<4x16xbf16>, vector<8x16xf32> -> vector<8x16xf32>
    %397 = arith.addf %392, %396 : vector<8x16xf32>
    %398 = vector.extract_strided_slice %387 {offsets = [0, 4], sizes = [4, 16], strides = [1, 1]} : vector<4x20xbf16> to vector<4x16xbf16>
    %c8_315 = arith.constant 8 : index
    %c0_316 = arith.constant 0 : index
    %c0_317 = arith.constant 0 : index
    %399 = vector.load %arg3[%c8_315, %c0_316, %c0_317] : memref<9x8x4xbf16, #tpu.memory_space<vmem>>, vector<1x8x4xbf16>
    %400 = vector.shape_cast %399 : vector<1x8x4xbf16> to vector<8x4xbf16>
    %cst_318 = arith.constant dense<0.000000e+00> : vector<8x16xf32>
    %401 = tpu.matmul %400, %398, %cst_318 {dimension_numbers = #tpu.dot_dimension_numbers<[1], [0], [0], [1], [0, 0, 1, 1], [], []>} : vector<8x4xbf16>, vector<4x16xbf16>, vector<8x16xf32> -> vector<8x16xf32>
    %402 = arith.addf %397, %401 : vector<8x16xf32>
    %403 = vector.broadcast %2 : vector<8x1xf32> to vector<8x16xf32>
    %404 = arith.mulf %402, %403 : vector<8x16xf32>
    %405 = vector.broadcast %3 : vector<8x1xf32> to vector<8x16xf32>
    %406 = arith.addf %404, %405 : vector<8x16xf32>
    %cst_319 = arith.constant 0.000000e+00 : f32
    %407 = vector.broadcast %cst_319 : f32 to vector<8x16xf32>
    %408 = arith.maximumf %406, %407 : vector<8x16xf32>
    %c0_320 = arith.constant 0 : index
    %c0_321 = arith.constant 0 : index
    %c5_322 = arith.constant 5 : index
    %c0_323 = arith.constant 0 : index
    %409 = vector.load %arg6[%c0_320, %c0_321, %c5_322, %c0_323] : memref<1x8x8x16xf32, #tpu.memory_space<vmem>>, vector<1x8x1x16xf32>
    %410 = vector.shape_cast %409 : vector<1x8x1x16xf32> to vector<8x16xf32>
    %411 = vector.shape_cast %408 : vector<8x16xf32> to vector<1x8x1x16xf32>
    tpu.vector_store %arg6[%c0_320, %c0_321, %c5_322, %c0_323], %411 {strides = array<i32>} : memref<1x8x8x16xf32, #tpu.memory_space<vmem>>, vector<1x8x1x16xf32>,
    %c6_i32 = arith.constant 6 : i32
    %412 = arith.addi %1, %c6_i32 : i32
    %c0_i32_324 = arith.constant 0 : i32
    %413 = arith.addi %412, %c0_i32_324 : i32
    %c0_325 = arith.constant 0 : index
    %414 = arith.index_cast %413 : i32 to index
    %c0_326 = arith.constant 0 : index
    %c0_327 = arith.constant 0 : index
    %415 = vector.load %arg2[%c0_325, %414, %c0_326, %c0_327] : memref<1x20x4x20xbf16, #tpu.memory_space<vmem>>, vector<1x1x4x20xbf16>
    %416 = vector.shape_cast %415 : vector<1x1x4x20xbf16> to vector<4x20xbf16>
    %417 = vector.extract_strided_slice %416 {offsets = [0, 0], sizes = [4, 16], strides = [1, 1]} : vector<4x20xbf16> to vector<4x16xbf16>
    %c0_328 = arith.constant 0 : index
    %c0_329 = arith.constant 0 : index
    %c0_330 = arith.constant 0 : index
    %418 = vector.load %arg3[%c0_328, %c0_329, %c0_330] : memref<9x8x4xbf16, #tpu.memory_space<vmem>>, vector<1x8x4xbf16>
    %419 = vector.shape_cast %418 : vector<1x8x4xbf16> to vector<8x4xbf16>
    %cst_331 = arith.constant dense<0.000000e+00> : vector<8x16xf32>
    %420 = tpu.matmul %419, %417, %cst_331 {dimension_numbers = #tpu.dot_dimension_numbers<[1], [0], [0], [1], [0, 0, 1, 1], [], []>} : vector<8x4xbf16>, vector<4x16xbf16>, vector<8x16xf32> -> vector<8x16xf32>
    %421 = vector.extract_strided_slice %416 {offsets = [0, 2], sizes = [4, 16], strides = [1, 1]} : vector<4x20xbf16> to vector<4x16xbf16>
    %c1_332 = arith.constant 1 : index
    %c0_333 = arith.constant 0 : index
    %c0_334 = arith.constant 0 : index
    %422 = vector.load %arg3[%c1_332, %c0_333, %c0_334] : memref<9x8x4xbf16, #tpu.memory_space<vmem>>, vector<1x8x4xbf16>
    %423 = vector.shape_cast %422 : vector<1x8x4xbf16> to vector<8x4xbf16>
    %cst_335 = arith.constant dense<0.000000e+00> : vector<8x16xf32>
    %424 = tpu.matmul %423, %421, %cst_335 {dimension_numbers = #tpu.dot_dimension_numbers<[1], [0], [0], [1], [0, 0, 1, 1], [], []>} : vector<8x4xbf16>, vector<4x16xbf16>, vector<8x16xf32> -> vector<8x16xf32>
    %425 = arith.addf %420, %424 : vector<8x16xf32>
    %426 = vector.extract_strided_slice %416 {offsets = [0, 4], sizes = [4, 16], strides = [1, 1]} : vector<4x20xbf16> to vector<4x16xbf16>
    %c2_336 = arith.constant 2 : index
    %c0_337 = arith.constant 0 : index
    %c0_338 = arith.constant 0 : index
    %427 = vector.load %arg3[%c2_336, %c0_337, %c0_338] : memref<9x8x4xbf16, #tpu.memory_space<vmem>>, vector<1x8x4xbf16>
    %428 = vector.shape_cast %427 : vector<1x8x4xbf16> to vector<8x4xbf16>
    %cst_339 = arith.constant dense<0.000000e+00> : vector<8x16xf32>
    %429 = tpu.matmul %428, %426, %cst_339 {dimension_numbers = #tpu.dot_dimension_numbers<[1], [0], [0], [1], [0, 0, 1, 1], [], []>} : vector<8x4xbf16>, vector<4x16xbf16>, vector<8x16xf32> -> vector<8x16xf32>
    %430 = arith.addf %425, %429 : vector<8x16xf32>
    %c6_i32_340 = arith.constant 6 : i32
    %431 = arith.addi %1, %c6_i32_340 : i32
    %c2_i32_341 = arith.constant 2 : i32
    %432 = arith.addi %431, %c2_i32_341 : i32
    %c0_342 = arith.constant 0 : index
    %433 = arith.index_cast %432 : i32 to index
    %c0_343 = arith.constant 0 : index
    %c0_344 = arith.constant 0 : index
    %434 = vector.load %arg2[%c0_342, %433, %c0_343, %c0_344] : memref<1x20x4x20xbf16, #tpu.memory_space<vmem>>, vector<1x1x4x20xbf16>
    %435 = vector.shape_cast %434 : vector<1x1x4x20xbf16> to vector<4x20xbf16>
    %436 = vector.extract_strided_slice %435 {offsets = [0, 0], sizes = [4, 16], strides = [1, 1]} : vector<4x20xbf16> to vector<4x16xbf16>
    %c3_345 = arith.constant 3 : index
    %c0_346 = arith.constant 0 : index
    %c0_347 = arith.constant 0 : index
    %437 = vector.load %arg3[%c3_345, %c0_346, %c0_347] : memref<9x8x4xbf16, #tpu.memory_space<vmem>>, vector<1x8x4xbf16>
    %438 = vector.shape_cast %437 : vector<1x8x4xbf16> to vector<8x4xbf16>
    %cst_348 = arith.constant dense<0.000000e+00> : vector<8x16xf32>
    %439 = tpu.matmul %438, %436, %cst_348 {dimension_numbers = #tpu.dot_dimension_numbers<[1], [0], [0], [1], [0, 0, 1, 1], [], []>} : vector<8x4xbf16>, vector<4x16xbf16>, vector<8x16xf32> -> vector<8x16xf32>
    %440 = arith.addf %430, %439 : vector<8x16xf32>
    %441 = vector.extract_strided_slice %435 {offsets = [0, 2], sizes = [4, 16], strides = [1, 1]} : vector<4x20xbf16> to vector<4x16xbf16>
    %c4_349 = arith.constant 4 : index
    %c0_350 = arith.constant 0 : index
    %c0_351 = arith.constant 0 : index
    %442 = vector.load %arg3[%c4_349, %c0_350, %c0_351] : memref<9x8x4xbf16, #tpu.memory_space<vmem>>, vector<1x8x4xbf16>
    %443 = vector.shape_cast %442 : vector<1x8x4xbf16> to vector<8x4xbf16>
    %cst_352 = arith.constant dense<0.000000e+00> : vector<8x16xf32>
    %444 = tpu.matmul %443, %441, %cst_352 {dimension_numbers = #tpu.dot_dimension_numbers<[1], [0], [0], [1], [0, 0, 1, 1], [], []>} : vector<8x4xbf16>, vector<4x16xbf16>, vector<8x16xf32> -> vector<8x16xf32>
    %445 = arith.addf %440, %444 : vector<8x16xf32>
    %446 = vector.extract_strided_slice %435 {offsets = [0, 4], sizes = [4, 16], strides = [1, 1]} : vector<4x20xbf16> to vector<4x16xbf16>
    %c5_353 = arith.constant 5 : index
    %c0_354 = arith.constant 0 : index
    %c0_355 = arith.constant 0 : index
    %447 = vector.load %arg3[%c5_353, %c0_354, %c0_355] : memref<9x8x4xbf16, #tpu.memory_space<vmem>>, vector<1x8x4xbf16>
    %448 = vector.shape_cast %447 : vector<1x8x4xbf16> to vector<8x4xbf16>
    %cst_356 = arith.constant dense<0.000000e+00> : vector<8x16xf32>
    %449 = tpu.matmul %448, %446, %cst_356 {dimension_numbers = #tpu.dot_dimension_numbers<[1], [0], [0], [1], [0, 0, 1, 1], [], []>} : vector<8x4xbf16>, vector<4x16xbf16>, vector<8x16xf32> -> vector<8x16xf32>
    %450 = arith.addf %445, %449 : vector<8x16xf32>
    %c6_i32_357 = arith.constant 6 : i32
    %451 = arith.addi %1, %c6_i32_357 : i32
    %c4_i32_358 = arith.constant 4 : i32
    %452 = arith.addi %451, %c4_i32_358 : i32
    %c0_359 = arith.constant 0 : index
    %453 = arith.index_cast %452 : i32 to index
    %c0_360 = arith.constant 0 : index
    %c0_361 = arith.constant 0 : index
    %454 = vector.load %arg2[%c0_359, %453, %c0_360, %c0_361] : memref<1x20x4x20xbf16, #tpu.memory_space<vmem>>, vector<1x1x4x20xbf16>
    %455 = vector.shape_cast %454 : vector<1x1x4x20xbf16> to vector<4x20xbf16>
    %456 = vector.extract_strided_slice %455 {offsets = [0, 0], sizes = [4, 16], strides = [1, 1]} : vector<4x20xbf16> to vector<4x16xbf16>
    %c6_362 = arith.constant 6 : index
    %c0_363 = arith.constant 0 : index
    %c0_364 = arith.constant 0 : index
    %457 = vector.load %arg3[%c6_362, %c0_363, %c0_364] : memref<9x8x4xbf16, #tpu.memory_space<vmem>>, vector<1x8x4xbf16>
    %458 = vector.shape_cast %457 : vector<1x8x4xbf16> to vector<8x4xbf16>
    %cst_365 = arith.constant dense<0.000000e+00> : vector<8x16xf32>
    %459 = tpu.matmul %458, %456, %cst_365 {dimension_numbers = #tpu.dot_dimension_numbers<[1], [0], [0], [1], [0, 0, 1, 1], [], []>} : vector<8x4xbf16>, vector<4x16xbf16>, vector<8x16xf32> -> vector<8x16xf32>
    %460 = arith.addf %450, %459 : vector<8x16xf32>
    %461 = vector.extract_strided_slice %455 {offsets = [0, 2], sizes = [4, 16], strides = [1, 1]} : vector<4x20xbf16> to vector<4x16xbf16>
    %c7_366 = arith.constant 7 : index
    %c0_367 = arith.constant 0 : index
    %c0_368 = arith.constant 0 : index
    %462 = vector.load %arg3[%c7_366, %c0_367, %c0_368] : memref<9x8x4xbf16, #tpu.memory_space<vmem>>, vector<1x8x4xbf16>
    %463 = vector.shape_cast %462 : vector<1x8x4xbf16> to vector<8x4xbf16>
    %cst_369 = arith.constant dense<0.000000e+00> : vector<8x16xf32>
    %464 = tpu.matmul %463, %461, %cst_369 {dimension_numbers = #tpu.dot_dimension_numbers<[1], [0], [0], [1], [0, 0, 1, 1], [], []>} : vector<8x4xbf16>, vector<4x16xbf16>, vector<8x16xf32> -> vector<8x16xf32>
    %465 = arith.addf %460, %464 : vector<8x16xf32>
    %466 = vector.extract_strided_slice %455 {offsets = [0, 4], sizes = [4, 16], strides = [1, 1]} : vector<4x20xbf16> to vector<4x16xbf16>
    %c8_370 = arith.constant 8 : index
    %c0_371 = arith.constant 0 : index
    %c0_372 = arith.constant 0 : index
    %467 = vector.load %arg3[%c8_370, %c0_371, %c0_372] : memref<9x8x4xbf16, #tpu.memory_space<vmem>>, vector<1x8x4xbf16>
    %468 = vector.shape_cast %467 : vector<1x8x4xbf16> to vector<8x4xbf16>
    %cst_373 = arith.constant dense<0.000000e+00> : vector<8x16xf32>
    %469 = tpu.matmul %468, %466, %cst_373 {dimension_numbers = #tpu.dot_dimension_numbers<[1], [0], [0], [1], [0, 0, 1, 1], [], []>} : vector<8x4xbf16>, vector<4x16xbf16>, vector<8x16xf32> -> vector<8x16xf32>
    %470 = arith.addf %465, %469 : vector<8x16xf32>
    %471 = vector.broadcast %2 : vector<8x1xf32> to vector<8x16xf32>
    %472 = arith.mulf %470, %471 : vector<8x16xf32>
    %473 = vector.broadcast %3 : vector<8x1xf32> to vector<8x16xf32>
    %474 = arith.addf %472, %473 : vector<8x16xf32>
    %cst_374 = arith.constant 0.000000e+00 : f32
    %475 = vector.broadcast %cst_374 : f32 to vector<8x16xf32>
    %476 = arith.maximumf %474, %475 : vector<8x16xf32>
    %c0_375 = arith.constant 0 : index
    %c0_376 = arith.constant 0 : index
    %c6_377 = arith.constant 6 : index
    %c0_378 = arith.constant 0 : index
    %477 = vector.load %arg6[%c0_375, %c0_376, %c6_377, %c0_378] : memref<1x8x8x16xf32, #tpu.memory_space<vmem>>, vector<1x8x1x16xf32>
    %478 = vector.shape_cast %477 : vector<1x8x1x16xf32> to vector<8x16xf32>
    %479 = vector.shape_cast %476 : vector<8x16xf32> to vector<1x8x1x16xf32>
    tpu.vector_store %arg6[%c0_375, %c0_376, %c6_377, %c0_378], %479 {strides = array<i32>} : memref<1x8x8x16xf32, #tpu.memory_space<vmem>>, vector<1x8x1x16xf32>,
    %c7_i32 = arith.constant 7 : i32
    %480 = arith.addi %1, %c7_i32 : i32
    %c0_i32_379 = arith.constant 0 : i32
    %481 = arith.addi %480, %c0_i32_379 : i32
    %c0_380 = arith.constant 0 : index
    %482 = arith.index_cast %481 : i32 to index
    %c0_381 = arith.constant 0 : index
    %c0_382 = arith.constant 0 : index
    %483 = vector.load %arg2[%c0_380, %482, %c0_381, %c0_382] : memref<1x20x4x20xbf16, #tpu.memory_space<vmem>>, vector<1x1x4x20xbf16>
    %484 = vector.shape_cast %483 : vector<1x1x4x20xbf16> to vector<4x20xbf16>
    %485 = vector.extract_strided_slice %484 {offsets = [0, 0], sizes = [4, 16], strides = [1, 1]} : vector<4x20xbf16> to vector<4x16xbf16>
    %c0_383 = arith.constant 0 : index
    %c0_384 = arith.constant 0 : index
    %c0_385 = arith.constant 0 : index
    %486 = vector.load %arg3[%c0_383, %c0_384, %c0_385] : memref<9x8x4xbf16, #tpu.memory_space<vmem>>, vector<1x8x4xbf16>
    %487 = vector.shape_cast %486 : vector<1x8x4xbf16> to vector<8x4xbf16>
    %cst_386 = arith.constant dense<0.000000e+00> : vector<8x16xf32>
    %488 = tpu.matmul %487, %485, %cst_386 {dimension_numbers = #tpu.dot_dimension_numbers<[1], [0], [0], [1], [0, 0, 1, 1], [], []>} : vector<8x4xbf16>, vector<4x16xbf16>, vector<8x16xf32> -> vector<8x16xf32>
    %489 = vector.extract_strided_slice %484 {offsets = [0, 2], sizes = [4, 16], strides = [1, 1]} : vector<4x20xbf16> to vector<4x16xbf16>
    %c1_387 = arith.constant 1 : index
    %c0_388 = arith.constant 0 : index
    %c0_389 = arith.constant 0 : index
    %490 = vector.load %arg3[%c1_387, %c0_388, %c0_389] : memref<9x8x4xbf16, #tpu.memory_space<vmem>>, vector<1x8x4xbf16>
    %491 = vector.shape_cast %490 : vector<1x8x4xbf16> to vector<8x4xbf16>
    %cst_390 = arith.constant dense<0.000000e+00> : vector<8x16xf32>
    %492 = tpu.matmul %491, %489, %cst_390 {dimension_numbers = #tpu.dot_dimension_numbers<[1], [0], [0], [1], [0, 0, 1, 1], [], []>} : vector<8x4xbf16>, vector<4x16xbf16>, vector<8x16xf32> -> vector<8x16xf32>
    %493 = arith.addf %488, %492 : vector<8x16xf32>
    %494 = vector.extract_strided_slice %484 {offsets = [0, 4], sizes = [4, 16], strides = [1, 1]} : vector<4x20xbf16> to vector<4x16xbf16>
    %c2_391 = arith.constant 2 : index
    %c0_392 = arith.constant 0 : index
    %c0_393 = arith.constant 0 : index
    %495 = vector.load %arg3[%c2_391, %c0_392, %c0_393] : memref<9x8x4xbf16, #tpu.memory_space<vmem>>, vector<1x8x4xbf16>
    %496 = vector.shape_cast %495 : vector<1x8x4xbf16> to vector<8x4xbf16>
    %cst_394 = arith.constant dense<0.000000e+00> : vector<8x16xf32>
    %497 = tpu.matmul %496, %494, %cst_394 {dimension_numbers = #tpu.dot_dimension_numbers<[1], [0], [0], [1], [0, 0, 1, 1], [], []>} : vector<8x4xbf16>, vector<4x16xbf16>, vector<8x16xf32> -> vector<8x16xf32>
    %498 = arith.addf %493, %497 : vector<8x16xf32>
    %c7_i32_395 = arith.constant 7 : i32
    %499 = arith.addi %1, %c7_i32_395 : i32
    %c2_i32_396 = arith.constant 2 : i32
    %500 = arith.addi %499, %c2_i32_396 : i32
    %c0_397 = arith.constant 0 : index
    %501 = arith.index_cast %500 : i32 to index
    %c0_398 = arith.constant 0 : index
    %c0_399 = arith.constant 0 : index
    %502 = vector.load %arg2[%c0_397, %501, %c0_398, %c0_399] : memref<1x20x4x20xbf16, #tpu.memory_space<vmem>>, vector<1x1x4x20xbf16>
    %503 = vector.shape_cast %502 : vector<1x1x4x20xbf16> to vector<4x20xbf16>
    %504 = vector.extract_strided_slice %503 {offsets = [0, 0], sizes = [4, 16], strides = [1, 1]} : vector<4x20xbf16> to vector<4x16xbf16>
    %c3_400 = arith.constant 3 : index
    %c0_401 = arith.constant 0 : index
    %c0_402 = arith.constant 0 : index
    %505 = vector.load %arg3[%c3_400, %c0_401, %c0_402] : memref<9x8x4xbf16, #tpu.memory_space<vmem>>, vector<1x8x4xbf16>
    %506 = vector.shape_cast %505 : vector<1x8x4xbf16> to vector<8x4xbf16>
    %cst_403 = arith.constant dense<0.000000e+00> : vector<8x16xf32>
    %507 = tpu.matmul %506, %504, %cst_403 {dimension_numbers = #tpu.dot_dimension_numbers<[1], [0], [0], [1], [0, 0, 1, 1], [], []>} : vector<8x4xbf16>, vector<4x16xbf16>, vector<8x16xf32> -> vector<8x16xf32>
    %508 = arith.addf %498, %507 : vector<8x16xf32>
    %509 = vector.extract_strided_slice %503 {offsets = [0, 2], sizes = [4, 16], strides = [1, 1]} : vector<4x20xbf16> to vector<4x16xbf16>
    %c4_404 = arith.constant 4 : index
    %c0_405 = arith.constant 0 : index
    %c0_406 = arith.constant 0 : index
    %510 = vector.load %arg3[%c4_404, %c0_405, %c0_406] : memref<9x8x4xbf16, #tpu.memory_space<vmem>>, vector<1x8x4xbf16>
    %511 = vector.shape_cast %510 : vector<1x8x4xbf16> to vector<8x4xbf16>
    %cst_407 = arith.constant dense<0.000000e+00> : vector<8x16xf32>
    %512 = tpu.matmul %511, %509, %cst_407 {dimension_numbers = #tpu.dot_dimension_numbers<[1], [0], [0], [1], [0, 0, 1, 1], [], []>} : vector<8x4xbf16>, vector<4x16xbf16>, vector<8x16xf32> -> vector<8x16xf32>
    %513 = arith.addf %508, %512 : vector<8x16xf32>
    %514 = vector.extract_strided_slice %503 {offsets = [0, 4], sizes = [4, 16], strides = [1, 1]} : vector<4x20xbf16> to vector<4x16xbf16>
    %c5_408 = arith.constant 5 : index
    %c0_409 = arith.constant 0 : index
    %c0_410 = arith.constant 0 : index
    %515 = vector.load %arg3[%c5_408, %c0_409, %c0_410] : memref<9x8x4xbf16, #tpu.memory_space<vmem>>, vector<1x8x4xbf16>
    %516 = vector.shape_cast %515 : vector<1x8x4xbf16> to vector<8x4xbf16>
    %cst_411 = arith.constant dense<0.000000e+00> : vector<8x16xf32>
    %517 = tpu.matmul %516, %514, %cst_411 {dimension_numbers = #tpu.dot_dimension_numbers<[1], [0], [0], [1], [0, 0, 1, 1], [], []>} : vector<8x4xbf16>, vector<4x16xbf16>, vector<8x16xf32> -> vector<8x16xf32>
    %518 = arith.addf %513, %517 : vector<8x16xf32>
    %c7_i32_412 = arith.constant 7 : i32
    %519 = arith.addi %1, %c7_i32_412 : i32
    %c4_i32_413 = arith.constant 4 : i32
    %520 = arith.addi %519, %c4_i32_413 : i32
    %c0_414 = arith.constant 0 : index
    %521 = arith.index_cast %520 : i32 to index
    %c0_415 = arith.constant 0 : index
    %c0_416 = arith.constant 0 : index
    %522 = vector.load %arg2[%c0_414, %521, %c0_415, %c0_416] : memref<1x20x4x20xbf16, #tpu.memory_space<vmem>>, vector<1x1x4x20xbf16>
    %523 = vector.shape_cast %522 : vector<1x1x4x20xbf16> to vector<4x20xbf16>
    %524 = vector.extract_strided_slice %523 {offsets = [0, 0], sizes = [4, 16], strides = [1, 1]} : vector<4x20xbf16> to vector<4x16xbf16>
    %c6_417 = arith.constant 6 : index
    %c0_418 = arith.constant 0 : index
    %c0_419 = arith.constant 0 : index
    %525 = vector.load %arg3[%c6_417, %c0_418, %c0_419] : memref<9x8x4xbf16, #tpu.memory_space<vmem>>, vector<1x8x4xbf16>
    %526 = vector.shape_cast %525 : vector<1x8x4xbf16> to vector<8x4xbf16>
    %cst_420 = arith.constant dense<0.000000e+00> : vector<8x16xf32>
    %527 = tpu.matmul %526, %524, %cst_420 {dimension_numbers = #tpu.dot_dimension_numbers<[1], [0], [0], [1], [0, 0, 1, 1], [], []>} : vector<8x4xbf16>, vector<4x16xbf16>, vector<8x16xf32> -> vector<8x16xf32>
    %528 = arith.addf %518, %527 : vector<8x16xf32>
    %529 = vector.extract_strided_slice %523 {offsets = [0, 2], sizes = [4, 16], strides = [1, 1]} : vector<4x20xbf16> to vector<4x16xbf16>
    %c7_421 = arith.constant 7 : index
    %c0_422 = arith.constant 0 : index
    %c0_423 = arith.constant 0 : index
    %530 = vector.load %arg3[%c7_421, %c0_422, %c0_423] : memref<9x8x4xbf16, #tpu.memory_space<vmem>>, vector<1x8x4xbf16>
    %531 = vector.shape_cast %530 : vector<1x8x4xbf16> to vector<8x4xbf16>
    %cst_424 = arith.constant dense<0.000000e+00> : vector<8x16xf32>
    %532 = tpu.matmul %531, %529, %cst_424 {dimension_numbers = #tpu.dot_dimension_numbers<[1], [0], [0], [1], [0, 0, 1, 1], [], []>} : vector<8x4xbf16>, vector<4x16xbf16>, vector<8x16xf32> -> vector<8x16xf32>
    %533 = arith.addf %528, %532 : vector<8x16xf32>
    %534 = vector.extract_strided_slice %523 {offsets = [0, 4], sizes = [4, 16], strides = [1, 1]} : vector<4x20xbf16> to vector<4x16xbf16>
    %c8_425 = arith.constant 8 : index
    %c0_426 = arith.constant 0 : index
    %c0_427 = arith.constant 0 : index
    %535 = vector.load %arg3[%c8_425, %c0_426, %c0_427] : memref<9x8x4xbf16, #tpu.memory_space<vmem>>, vector<1x8x4xbf16>
    %536 = vector.shape_cast %535 : vector<1x8x4xbf16> to vector<8x4xbf16>
    %cst_428 = arith.constant dense<0.000000e+00> : vector<8x16xf32>
    %537 = tpu.matmul %536, %534, %cst_428 {dimension_numbers = #tpu.dot_dimension_numbers<[1], [0], [0], [1], [0, 0, 1, 1], [], []>} : vector<8x4xbf16>, vector<4x16xbf16>, vector<8x16xf32> -> vector<8x16xf32>
    %538 = arith.addf %533, %537 : vector<8x16xf32>
    %539 = vector.broadcast %2 : vector<8x1xf32> to vector<8x16xf32>
    %540 = arith.mulf %538, %539 : vector<8x16xf32>
    %541 = vector.broadcast %3 : vector<8x1xf32> to vector<8x16xf32>
    %542 = arith.addf %540, %541 : vector<8x16xf32>
    %cst_429 = arith.constant 0.000000e+00 : f32
    %543 = vector.broadcast %cst_429 : f32 to vector<8x16xf32>
    %544 = arith.maximumf %542, %543 : vector<8x16xf32>
    %c0_430 = arith.constant 0 : index
    %c0_431 = arith.constant 0 : index
    %c7_432 = arith.constant 7 : index
    %c0_433 = arith.constant 0 : index
    %545 = vector.load %arg6[%c0_430, %c0_431, %c7_432, %c0_433] : memref<1x8x8x16xf32, #tpu.memory_space<vmem>>, vector<1x8x1x16xf32>
    %546 = vector.shape_cast %545 : vector<1x8x1x16xf32> to vector<8x16xf32>
    %547 = vector.shape_cast %544 : vector<8x16xf32> to vector<1x8x1x16xf32>
    tpu.vector_store %arg6[%c0_430, %c0_431, %c7_432, %c0_433], %547 {strides = array<i32>} : memref<1x8x8x16xf32, #tpu.memory_space<vmem>>, vector<1x8x1x16xf32>,
    return
  }
  func.func @transform_0(%arg0: i32, %arg1: i32) -> (i32, i32, i32, i32) {
    %c0_i32 = arith.constant 0 : i32
    %c0_i32_0 = arith.constant 0 : i32
    %c0_i32_1 = arith.constant 0 : i32
    %c0_i32_2 = arith.constant 0 : i32
    return %arg0, %c0_i32, %c0_i32_0, %c0_i32_1 : i32, i32, i32, i32
  }
  func.func @transform_1(%arg0: i32, %arg1: i32) -> (i32, i32, i32) {
    %c0_i32 = arith.constant 0 : i32
    %c0_i32_0 = arith.constant 0 : i32
    %c0_i32_1 = arith.constant 0 : i32
    %c0_i32_2 = arith.constant 0 : i32
    return %c0_i32, %c0_i32_0, %c0_i32_1 : i32, i32, i32
  }
  func.func @transform_2(%arg0: i32, %arg1: i32) -> (i32, i32) {
    %c0_i32 = arith.constant 0 : i32
    %c0_i32_0 = arith.constant 0 : i32
    %c0_i32_1 = arith.constant 0 : i32
    return %c0_i32, %c0_i32_0 : i32, i32
  }
  func.func @transform_3(%arg0: i32, %arg1: i32) -> (i32, i32) {
    %c0_i32 = arith.constant 0 : i32
    %c0_i32_0 = arith.constant 0 : i32
    %c0_i32_1 = arith.constant 0 : i32
    return %c0_i32, %c0_i32_0 : i32, i32
  }
  func.func @transform_4(%arg0: i32, %arg1: i32) -> (i32, i32, i32, i32) {
    %c0_i32 = arith.constant 0 : i32
    %c0_i32_0 = arith.constant 0 : i32
    %c0_i32_1 = arith.constant 0 : i32
    return %arg0, %c0_i32, %arg1, %c0_i32_0 : i32, i32, i32, i32
  }
}

</mosaic_0001>

<bundles_post_ra>
// kernel: tpu_custom_call.1
= control target key start
LH: loop header
LB: loop body
LE: loop exit
PB: predicated region body
PF: predicated region fallthrough
CT: control target
= control target key end

     0   :  { %9 = vsyncpa [#allocation3], 0  ;;  %s7335_s0 = inlined_call_operand.hbm [shape: bf16[2,20,4,20], index: 0, kind: input, shape index: {}]   ;;  %s7336_s1 = inlined_call_operand.vmem [shape: bf16[9,8,4], index: 1, kind: input, shape index: {}]   ;;  %s7337_s2 = inlined_call_operand.vmem [shape: f32[8,1], index: 2, kind: input, shape index: {}]   ;;  %s7338_s3 = inlined_call_operand.vmem [shape: f32[8,1], index: 3, kind: input, shape index: {}]   ;;  %s7339_s4 = inlined_call_operand.hbm [shape: f32[2,8,16,16], index: 4, kind: output, shape index: {}]  }
   0x1   :  { %11 = vsyncpa [#allocation3 + $0x1], 0 }
   0x2   :  { %12 = vsyncpa [#allocation4], 0 }
   0x3   :  { %14 = vsyncpa [#allocation4 + $0x1], 0  ;;  %s6092_s15 = smov 0   ;;  %s6094_s16 = smov 0  }
   0x4   :  { %s6096_s17 = smov 0   ;;  %s6098_s18 = smov 0  }
   0x5   :  { %s6100_s19 = smov 0   ;;  %s6102_s20 = smov 0  }
   0x6   :  { %s6104_s21 = smov 0   ;;  %s6106_s22 = smov 0  }
   0x7   :  { %s6108_s23 = smov 0   ;;  %s6110_s24 = smov 0  }
   0x8   :  { %s6112_s25 = smov 0  }
   0x9 LB: > { %7344 = sst [smem:[#allocation8_spill]] %s6047_s24  ;;  %s4741_s26 = sadd.s32 4294967295, %s6051_s25   ;;  %s6051_s25 = sphi %s6112_s25, %s20_s25   ;;  %s6047_s24 = sphi %s6110_s24, %s7357_s24   ;;  %s6043_s23 = sphi %s6108_s23, %s7365_s23   ;;  %s6039_s22 = sphi %s6106_s22, %s7355_s22   ;;  %s6035_s21 = sphi %s6104_s21, %s7364_s21   ;;  %s6031_s20 = sphi %s6102_s20, %s7363_s20   ;;  %s6027_s19 = sphi %s6100_s19, %s7362_s19   ;;  %s6023_s18 = sphi %s6098_s18, %s7361_s18   ;;  %s6019_s17 = sphi %s6096_s17, %s7360_s17   ;;  %s6015_s16 = sphi %s6094_s16, %s7359_s16   ;;  %s6011_s15 = sphi %s6092_s15, %s7358_s15  }
   0xa   : > { %s4742_s27 = sadd.s32 4294967294, %s6051_s25   ;;  %s29_s28 = sadd.s32 1, %s6043_s23 }
   0xb   : > { %s32_s29 = sadd.s32 1, %s6047_s24  ;;  %p30_p0 = scmp.ge.s32.totalorder %s29_s28, 2 }
   0xc   : > { %s39_s30 = sadd.s32 1, %s6031_s20  ;;  %p46_p1 = scmp.ne.s32.totalorder %s6031_s20, %s6027_s19 }
   0xd   : > { %p47_p2 = scmp.eq.s32.totalorder %s6051_s25, 0  ;;  %s7367_s28 = smov (%p30_p0, %s29_s28), 0 }
   0xe   : > { %7345 = sst [smem:[#allocation9_spill]] %s7367_s28  ;;  %s7369_s29 = smov (!%p30_p0, %s32_s29), %s6047_s24 }
   0xf   : > { %p6156_p3 = por %p47_p2, %p46_p1  ;;  %p52_p4 = scmp.ne.s32.totalorder %s6027_s19, %s6023_s18 }
  0x10   : > { %p34_p5 = scmp.ge.s32.totalorder %s7369_s29, 2  ;;  %p53_p6 = scmp.eq.s32.totalorder %s4741_s26, 0 }
  0x11   : > { %s126_s6 = ssub.s32 %s6043_s23, %s7367_s28  ;;  %s130_s7 = sadd.s32 1, %s6019_s17 }
  0x12   : > { %s7371_s29 = smov (%p34_p5, %s7369_s29), 0  ;;  %p6166_p7 = por %p53_p6, %p52_p4 }
  0x13   : > { %7347 = sst [smem:[#allocation10_spill]] %s7371_s29  ;;  %p140_p8 = scmp.ne.s32.totalorder %s6019_s17, %s6015_s16 }
  0x14   : > { %s36_s9 = ssub.s32 %s6047_s24, %s7371_s29  ;;  %p141_p9 = scmp.eq.s32.totalorder %s4741_s26, 3 }
  0x15   : > { %p37_p10 = scmp.eq.s32.totalorder %s36_s9, 0  ;;  %s127_s10 = sor.u32 %s126_s6, %s36_s9 }
  0x16   : > { %p128_p11 = scmp.eq.s32.totalorder %s127_s10, 0  ;;  %p6174_p12 = por %p141_p9, %p140_p8 }
  0x17   : > { %s6179_s12 = scalar_select %p37_p10, %s6031_s20, %s39_s30  }
  0x18   : > { %s7349_s11 = scalar_select %p6174_p12, 1, 0 }
  0x19   : > { %s6182_s13 = scalar_select %p128_p11, %s6019_s17, %s130_s7  }
  0x1a   : > { %p146_p13 = scmp.ne.s32.totalorder %s6015_s16, %s6011_s15  ;;  %p147_p0 = scmp.eq.s32.totalorder %s4742_s27, 3 }
  0x1b   : > { %p5795_p1 = scmp.lt.s32.totalorder %s6051_s25, 4  ;;  %s176_s18 = sand.u32 1, %s6031_s20  }
  0x1c   : > { %p6187_p2 = por %p147_p0, %p146_p13  ;;  %s5780_s26 = smul.u32 40, %s176_s18 }
  0x1d   : > { %s5781_s6 = smul.u32 640, %s6047_s24  ;;  %p6195_p4 = pnand %p5795_p1, %p6156_p3 }
  0x1e   : > { %s7350_s14 = scalar_select %p6187_p2, 1, 0 }
  0x1f   : > { %s6202_s7 = scalar_lea.hbm %s7335_s0, %s5781_s6  ;;  %s180_s27 = scalar_lea.vmem [#allocation2], %s5780_s26 }
  0x20   : > { %s187_s29 = sshll.u32 %s180_s27, 4  ;;  %s6207_s5 = scalar_lea.sflag [#allocation3], %s176_s18  ;;  %s6204_s29 = int_to_ptr.vmem [resolvable:$true] %s187_s29 }
  0x21   : > { %s5899_s28 = scalar_lea.hbm %s6202_s7, 640  ;;  %p5901_p6 = pneg %p6195_p4 }
  0x22   : > { %p5900_p3 = scmp.ne.s32.totalorder %s6202_s7, %s5899_s28  ;;  %s5904_s30 = scalar_lea.hbm %s7335_s0, 1280 }
  0x23   : > { %p5905_p10 = scmp.lt.u32.totalorder %s6202_s7, %s7335_s0  ;;  %p5906_p11 = scmp.lt.u32.totalorder %s5904_s30, %s5899_s28 }
  0x24   : > { %p5902_p8 = pnand %p5901_p6, %p5900_p3  ;;  %p5908_p0 = scmp.lt.u32.totalorder %s5899_s28, %s6202_s7 }
  0x25   : > { %p5907_p13 = por %p5906_p11, %p5905_p10 }
  0x26   : > { %p5903_p9 = pneg %p5902_p8 }
  0x27   : > { %p5909_p1 = por %p5908_p0, %p5907_p13 }
  0x29   : > { %p5910_p5 = pnand %p5909_p1, %p5903_p9 }
  0x2b   : > { %5913 = shalt.err (!%p5910_p5)
}
  0x2c   : > { %s5914_s18 = scalar_lea.vmem %s6204_s29, 640  ;;  %s6053_s27 = smov [#allocation2]  }
  0x2d   : > { %p5915_p3 = scmp.ne.s32.totalorder %s6204_s29, %s5914_s18  ;;  %s5919_s6 = sshll.u32 %s6053_s27, 4  ;;  %s5920_s6 = int_to_ptr.vmem [resolvable:$false] %s5919_s6 }
  0x2e   : > { %s5921_s24 = scalar_lea.vmem %s5920_s6, 1280  ;;  %p5922_p12 = scmp.lt.s32.totalorder %s6204_s29, %s5920_s6 }
  0x2f   : > { %p5917_p8 = pnand %p5915_p3, %p5901_p6  ;;  %p5923_p10 = scmp.lt.s32.totalorder %s5921_s24, %s5914_s18 }
  0x31   : > { %p5918_p2 = pneg %p5917_p8  ;;  %p5924_p11 = por %p5923_p10, %p5922_p12 }
  0x33   : > { %p5925_p13 = pnand %p5924_p11, %p5918_p2 }
  0x35   : > { %5928 = shalt.err (!%p5925_p13)
}
  0x36   : > { %s6054_s28 = smov 32   ;;  %s6055_s10 = smov 2  }
  0x37   : > { %5790 = dma.hbm_to_vmem [thread:$0]  (!%p6195_p4), %s6202_s7, 640, %s6204_s29, %s6207_s5, %s6054_s28, %s6054_s28, %s6055_s10  }
  0x38   : > { %p195_p5 = scmp.lt.s32.totalorder %s6051_s25, 5  ;;  %p7352_p6 = scmp.ge.s32.totalorder %s6051_s25, 1 }
  0x3a   : > { %p196_p9 = pnand %p7352_p6, %p195_p5 }
  0x3b   : > { %s201_s30 = sand.u32 (!%p196_p9), 1, %s6027_s19  }
  0x3c   : > { %199 = sbr.rel (%p196_p9) target bundleno = 853 (0x355), region = 36  ;;  %s202_s18 = scalar_lea.sflag (!%p196_p9), [#allocation3], %s201_s30 }
  0x3d   : > { %s5782_s26 = smul.u32 (!%p196_p9), 40, %s201_s30 }
  0x3f   : > { %s205_s27 = scalar_lea.vmem (!%p196_p9), [#allocation2], %s5782_s26 }
  0x43   : > { %6002 = dma.done.wait (%p6166_p7), %s202_s18, 640  }
  0x44   : > { %6004 = vsyncadd (%p6166_p7), %s202_s18, 4294966656  ;;  %v244_v0 = vlaneseq  ;;  %s4936_s6 = sshll.u32 %s6035_s21, 4  ;;  %v6056_v1 = vmov 1983009808   ;;  %v6057_v3 = vmov 0.0   ;;  %vm6058_vm0 = vmmov 0  }
  0x45   : > { %v242_v2 = vunpack.c.l.s4 %v6056_v1  ;;  %5092 = vmatprep.subr.bf16.mxu0 %v6057_v3  ;;  %5146 = vmatprep.subr.bf16.mxu1 %v6057_v3  ;;  %s6252_s29 = scalar_lea.vmem %s205_s27, %s4936_s6 [#allocation2]  ;;  %s6059_s8 = smov 126   ;;  %vm254_vm1 = vcmask 1041408   ;;  %v4750_v37 = vld [vmem:[%s7336_s1 + $0x4] sm:$0xf]  ;;  %vm250_vm2 = vcmask 31744   ;;  %vm792_vm3 = vcmask 122880  }
  0x46   : > { %v6246_v4 = vshrl.u32 %v244_v0, 7  ;;  %5094 = vmatprep.mubr.msk.bf16.mxu0 %vm6058_vm0, %v6057_v3  ;;  %5148 = vmatprep.mubr.msk.bf16.mxu1 %vm6058_vm0, %v6057_v3  ;;  %v6258_v7 = vld [vmem:[%s6252_s29] sm:$0x3]  ;;  %v6261_v8 = vld [vmem:[%s6252_s29 + $0x2] sm:$0x3]  ;;  %s6060_s9 = smov 124  }
  0x47   : > { %v243_v5 = vunpack.c.0.s8 %v242_v2  ;;  %v6270_v11 = vld [vmem:[%s6252_s29 + $0x6] sm:$0x3]  ;;  %v6273_v12 = vld [vmem:[%s6252_s29 + $0x4] sm:$0x3]  ;;  %v6284_v15 = vld [vmem:[%s6252_s29 + $0xa] sm:$0x3] }
  0x48   : > { %v6287_v16 = vld [vmem:[%s6252_s29 + $0x8] sm:$0x3]  ;;  %v6298_v19 = vld [vmem:[%s6252_s29 + $0x6] sm:$0x3]  ;;  %v6301_v20 = vld [vmem:[%s6252_s29 + $0x4] sm:$0x3] }
  0x49   : > { %v6255_v6 = vsub.s32 %v243_v5, %v6246_v4  ;;  %v6312_v23 = vld [vmem:[%s6252_s29 + $0xa] sm:$0x3]  ;;  %v6315_v24 = vld [vmem:[%s6252_s29 + $0x8] sm:$0x3]  ;;  %v6328_v27 = vld [vmem:[%s6252_s29 + $0xe] sm:$0x3] }
  0x4a   : > { %v6331_v28 = vld [vmem:[%s6252_s29 + $0xc] sm:$0x3]  ;;  %v6342_v31 = vld [vmem:[%s6252_s29 + $0x8] sm:$0x3]  ;;  %v6347_v33 = vld [vmem:[%s6252_s29 + $0xa] sm:$0x3] }
  0x4b   : > { %v247_v9 = vrot.slane %v6258_v7, %v6255_v6  ;;  %v814_v10 = vrot.slane %v6261_v8, %v6255_v6  ;;  %v1019_v13 = vrot.slane %v6270_v11, %v6255_v6  ;;  %v457_v14 = vrot.slane %v6273_v12, %v6255_v6  ;;  %v4776_v41 = vld [vmem:[%s7336_s1 + $0x4] sm:$0xf]  ;;  %v6375_v43 = vld [vmem:[%s6252_s29 + $0xe] sm:$0x3]  ;;  %v6378_v44 = vld [vmem:[%s6252_s29 + $0xc] sm:$0x3] }
  0x4c   : > { %v1179_v17 = vrot.slane %v6284_v15, %v6255_v6  ;;  %v620_v18 = vrot.slane %v6287_v16, %v6255_v6  ;;  %v1899_v21 = vrot.slane %v6298_v19, %v6255_v6  ;;  %v1358_v22 = vrot.slane %v6301_v20, %v6255_v6  ;;  %v237_v48 = vld [vmem:[%s7336_s1] sm:$0xf]  ;;  %v6407_v53 = vld [vmem:[%s6252_s29 + $0x10] sm:$0x3]  ;;  %v6410_v54 = vld [vmem:[%s6252_s29 + $0x12] sm:$0x3] }
  0x4d   : > { %248 = vrot.lane.b32.xlu0 %v247_v9, %s6059_s8  ;;  %346 = vrot.lane.b32.xlu1 %v247_v9, %s6060_s9  ;;  %v2101_v25 = vrot.slane %v6312_v23, %v6255_v6  ;;  %v1560_v26 = vrot.slane %v6315_v24, %v6255_v6  ;;  %v2261_v29 = vrot.slane %v6328_v27, %v6255_v6  ;;  %v302_v38 = vsel %vm254_vm1, %v6258_v7, 0  ;;  %v805_v51 = vld [vmem:[%s7336_s1] sm:$0xf]  ;;  %v4753_v57 = vld [vmem:[%s7336_s1 + $0x8] sm:$0xf]  ;;  %s227_s6 = sand.u32 1, %s6015_s16  }
  0x4e   : > { %v1720_v30 = vrot.slane %v6331_v28, %v6255_v6  ;;  %v2440_v32 = vrot.slane %v6342_v31, %v6255_v6  ;;  %v2981_v34 = vrot.slane %v6347_v33, %v6255_v6  ;;  %v867_v42 = vsel %vm254_vm1, %v6261_v8, 0  ;;  %v6427_v59 = vld [vmem:[%s6252_s29 + $0xc] sm:$0x3]  ;;  %v4779_v60 = vld [vmem:[%s7336_s1 + $0x8] sm:$0xf]  ;;  %s4932_s28 = sshll.u32 %s6039_s22, 4 }
  0x4f   : > { %v3183_v46 = vrot.slane %v6375_v43, %v6255_v6  ;;  %v2642_v47 = vrot.slane %v6378_v44, %v6255_v6  ;;  %v2802_v55 = vrot.slane %v6407_v53, %v6255_v6  ;;  %v3343_v56 = vrot.slane %v6410_v54, %v6255_v6  ;;  %v6441_v63 = vld [vmem:[%s6252_s29 + $0xe] sm:$0x3]  ;;  %v6450_v1 = vld [vmem:[%s6252_s29 + $0x10] sm:$0x3]  ;;  %s7225_s30 = sadd.s32 %s6035_s21, %s4932_s28  ;;  %s7274_s27 = scalar_lea.sflag [#allocation4], %s227_s6 }
  0x50   : > { %v405_v58 = vsel %vm254_vm1, %v6273_v12, 0  ;;  %v3522_v61 = vrot.slane %v6427_v59, %v6255_v6  ;;  %v968_v62 = vsel %vm254_vm1, %v6270_v11, 0  ;;  %v4063_v0 = vrot.slane %v6441_v63, %v6255_v6  ;;  %v4758_v7 = vld [vmem:[%s7336_s1 + $0xc] sm:$0xf]  ;;  %s4933_s21 = sshll.u32 %s7225_s30, 7  ;;  %p7353_p12 = scmp.ne.s32.totalorder %s7349_s11, 0 }
  0x51   : > { %815 = vrot.lane.b32.xlu0 %v814_v10, %s6059_s8  ;;  %910 = vrot.lane.b32.xlu1 %v814_v10, %s6060_s9  ;;  %v3724_v5 = vrot.slane %v6450_v1, %v6255_v6  ;;  %v6463_v10 = vld [vmem:[%s6252_s29 + $0x12] sm:$0x3]  ;;  %v4784_v12 = vld [vmem:[%s7336_s1 + $0xc] sm:$0xf]  ;;  %s6063_s7 = smov [#allocation5]  }
  0x52   : > { %v4265_v11 = vrot.slane %v6463_v10, %v6255_v6  ;;  %s5933_s5 = sshll.u32 %s6063_s7, 4  ;;  %s5934_s5 = int_to_ptr.vmem [resolvable:$false] %s5933_s5 }
  0x55   : > { %1020 = vrot.lane.b32.xlu1 %v1019_v13, %s6059_s8  ;;  %458 = vrot.lane.b32.xlu0 %v457_v14, %s6059_s8 }
  0x59   : > { %1070 = vrot.lane.b32.xlu1 %v1019_v13, %s6060_s9  ;;  %509 = vrot.lane.b32.xlu0 %v457_v14, %s6060_s9  ;;  %v6482_v14 = vld [vmem:[%s6252_s29 + $0x14] sm:$0x3] }
  0x5d   : > { %1180 = vrot.lane.b32.xlu1 %v1179_v17, %s6059_s8  ;;  %621 = vrot.lane.b32.xlu0 %v620_v18, %s6059_s8 }
  0x61   : > { %1230 = vrot.lane.b32.xlu1 %v1179_v17, %s6060_s9  ;;  %672 = vrot.lane.b32.xlu0 %v620_v18, %s6060_s9  ;;  %v6485_v17 = vld [vmem:[%s6252_s29 + $0x16] sm:$0x3]  ;;  %v3884_v18 = vrot.slane %v6482_v14, %v6255_v6  ;;  %s7260_s29 = scalar_lea.hbm %s7339_s4, %s4933_s21 }
  0x65   : > { %1900 = vrot.lane.b32.xlu1 %v1899_v21, %s6059_s8  ;;  %1359 = vrot.lane.b32.xlu0 %v1358_v22, %s6059_s8 }
  0x69   : > { %1995 = vrot.lane.b32.xlu1 %v1899_v21, %s6060_s9  ;;  %1454 = vrot.lane.b32.xlu0 %v1358_v22, %s6060_s9  ;;  %v4425_v21 = vrot.slane %v6485_v17, %v6255_v6  ;;  %v4786_v6 = vld [vmem:[%s7336_s1 + $0x10] sm:$0xf] }
  0x6d   : > { %2102 = vrot.lane.b32.xlu1 %v2101_v25, %s6059_s8  ;;  %1561 = vrot.lane.b32.xlu0 %v1560_v26, %s6059_s8 }
  0x71   : > { %2152 = vrot.lane.b32.xlu1 %v2101_v25, %s6060_s9  ;;  %1611 = vrot.lane.b32.xlu0 %v1560_v26, %s6060_s9  ;;  %v4760_v25 = vld [vmem:[%s7336_s1 + $0x10] sm:$0xf] }
  0x75   : > { %2262 = vrot.lane.b32.xlu1 %v2261_v29, %s6059_s8  ;;  %1721 = vrot.lane.b32.xlu0 %v1720_v30, %s6059_s8 }
  0x79   : > { %2312 = vrot.lane.b32.xlu1 %v2261_v29, %s6060_s9  ;;  %1771 = vrot.lane.b32.xlu0 %v1720_v30, %s6060_s9 }
  0x7d   : > { %2441 = vrot.lane.b32.xlu0 %v2440_v32, %s6059_s8  ;;  %2982 = vrot.lane.b32.xlu1 %v2981_v34, %s6059_s8 }
  0x81   : > { %2536 = vrot.lane.b32.xlu0 %v2440_v32, %s6060_s9  ;;  %3077 = vrot.lane.b32.xlu1 %v2981_v34, %s6060_s9  ;;  %v6061_v32 = vmov 0   ;;  %v232_v34 = vld [vmem:[%s7337_s2] sm:$0xff] }
  0x82   : > { %5897 = vset.pattern.permute.xlu0 %v6061_v32  ;;  %5898 = vset.pattern.permute.xlu1 %v6061_v32 }
  0x85   : > { %3184 = vrot.lane.b32.xlu1 %v3183_v46, %s6059_s8  ;;  %2643 = vrot.lane.b32.xlu0 %v2642_v47, %s6059_s8 }
  0x89   : > { %2693 = vrot.lane.b32.xlu0 %v2642_v47, %s6060_s9  ;;  %3234 = vrot.lane.b32.xlu1 %v3183_v46, %s6060_s9  ;;  %v4769_v47 = vld [vmem:[%s7336_s1 + $0x1c] sm:$0xf] }
  0x8d   : > { %2803 = vrot.lane.b32.xlu0 %v2802_v55, %s6059_s8  ;;  %3344 = vrot.lane.b32.xlu1 %v3343_v56, %s6059_s8 }
  0x91   : > { %2853 = vrot.lane.b32.xlu0 %v2802_v55, %s6060_s9  ;;  %3394 = vrot.lane.b32.xlu1 %v3343_v56, %s6060_s9  ;;  %v4771_v55 = vld [vmem:[%s7336_s1 + $0x20] sm:$0xf] }
  0x95   : > { %3523 = vrot.lane.b32.xlu0 %v3522_v61, %s6059_s8  ;;  %4064 = vrot.lane.b32.xlu1 %v4063_v0, %s6059_s8 }
  0x99   : > { %3618 = vrot.lane.b32.xlu0 %v3522_v61, %s6060_s9  ;;  %4159 = vrot.lane.b32.xlu1 %v4063_v0, %s6060_s9  ;;  %v4800_v61 = vld [vmem:[%s7336_s1 + $0x4] sm:$0xf] }
  0x9a   : > { %v4822_v0 = vld [vmem:[%s7336_s1 + $0x4] sm:$0xf] }
  0x9d   : > { %3725 = vrot.lane.b32.xlu0 %v3724_v5, %s6059_s8  ;;  %4266 = vrot.lane.b32.xlu1 %v4265_v11, %s6059_s8 }
  0xa1   : > { %3775 = vrot.lane.b32.xlu0 %v3724_v5, %s6060_s9  ;;  %4316 = vrot.lane.b32.xlu1 %v4265_v11, %s6060_s9  ;;  %v1349_v5 = vld [vmem:[%s7336_s1] sm:$0xf]  ;;  %v4803_v11 = vld [vmem:[%s7336_s1 + $0x8] sm:$0xf] }
  0xa5   : > { %3885 = vrot.lane.b32.xlu0 %v3884_v18, %s6059_s8  ;;  %4426 = vrot.lane.b32.xlu1 %v4425_v21, %s6059_s8 }
  0xa9   : > { %3935 = vrot.lane.b32.xlu0 %v3884_v18, %s6060_s9  ;;  %4476 = vrot.lane.b32.xlu1 %v4425_v21, %s6060_s9  ;;  %v2050_v18 = vsel %vm254_vm1, %v6312_v23, 0  ;;  %v4806_v21 = vld [vmem:[%s7336_s1 + $0xc] sm:$0xf]  ;;  %s4747_s9 = sshll.u32 %s227_s6, 6 }
  0xaa   : > { %v4828_v23 = vld [vmem:[%s7336_s1 + $0xc] sm:$0xf]  ;;  %s6941_s10 = scalar_lea.vmem [#allocation5], %s4747_s9  ;;  %s5935_s9 = scalar_lea.vmem %s5934_s5, 2048 }
  0xab   : > { %s4609_s22 = sshll.u32 %s6941_s10, 4  ;;  %s7262_s22 = int_to_ptr.vmem [resolvable:$true] %s4609_s22 }
  0xac   : > { %s5929_s8 = scalar_lea.vmem %s7262_s22, 1024  ;;  %p5936_p0 = scmp.lt.s32.totalorder %s7262_s22, %s5934_s5 }
  0xad   : > { %723 = vperm.xlu0 %5897, %v232_v34   ;;  %v4830_v34 = vld [vmem:[%s7336_s1 + $0x10] sm:$0xf]  ;;  %p5930_p7 = scmp.ne.s32.totalorder %s7262_s22, %s5929_s8  ;;  %p5937_p1 = scmp.lt.s32.totalorder %s5935_s9, %s5929_s8 }
  0xaf   : > { %p5931_p2 = pnand %p5930_p7, %p7353_p12  ;;  %p5938_p3 = por %p5937_p1, %p5936_p0 }
  0xb1   : > { %p5932_p4 = pneg %p5931_p2 }
  0xb3   : > { %p5939_p8 = pnand %p5938_p3, %p5932_p4 }
  0xbf   : > { %v249_v35 = vpop.permute.xlu0 %248  ;;  %v347_v45 = vpop.permute.xlu1 %346 }
  0xc0   : > { %v256_v36 = vsel %vm254_vm1, %v249_v35, 0  ;;  %v352_v49 = vsel %vm254_vm1, %v347_v45, 0  ;;  %v233_v35 = vld [vmem:[%s7338_s3] sm:$0xff] }
  0xc1   : > { %5093 = vmatpush3.bf16.msra.mxu0 %v256_v36  ;;  %729 = vperm.xlu1 %5898, %v233_v35   ;;  %v4762_v36 = vld [vmem:[%s7336_s1 + $0x14] sm:$0xf] }
  0xc2   : > { %5098 = vmatprep.subr.bf16.mxu0 %v6057_v3 }
  0xc3   : > { %v816_v39 = vpop.permute.xlu0 %815  ;;  %v911_v50 = vpop.permute.xlu1 %910 }
  0xc4   : > { %5095 = vmatmul.mubr.msk.bf16.vlgmr.msra.gmra.mrb[0].mxu0 %vm250_vm2, %v4750_v37  ;;  %v821_v40 = vsel %vm254_vm1, %v816_v39, 0  ;;  %v916_v52 = vsel %vm254_vm1, %v911_v50, 0  ;;  %v568_v37 = vsel %vm254_vm1, %v6287_v16, 0  ;;  %v1128_v39 = vsel %vm254_vm1, %v6284_v15, 0  ;;  %v4793_v15 = vld [vmem:[%s7336_s1 + $0x18] sm:$0xf] }
  0xc5   : > { %5147 = vmatpush3.bf16.msra.mxu1 %v821_v40  ;;  %5099 = vmatpush3.bf16.msra.mxu0 %v302_v38  ;;  %v4788_v38 = vld [vmem:[%s7336_s1 + $0x14] sm:$0xf]  ;;  %v4767_v40 = vld [vmem:[%s7336_s1 + $0x18] sm:$0xf]  ;;  %v4795_v50 = vld [vmem:[%s7336_s1 + $0x1c] sm:$0xf] }
  0xc6   : > { %5152 = vmatprep.subr.bf16.mxu1 %v6057_v3  ;;  %5100 = vmatprep.mubr.msk.bf16.mxu0 %vm6058_vm0, %v6057_v3 }
  0xc7   : > { %5104 = vmatprep.subr.bf16.mxu0 %v6057_v3  ;;  %v459_v2 = vpop.permute.xlu0 %458  ;;  %v1021_v9 = vpop.permute.xlu1 %1020 }
  0xc8   : > { %5149 = vmatmul.mubr.msk.bf16.vlgmr.msra.gmra.mrb[0].mxu1 %vm250_vm2, %v4776_v41  ;;  %v464_v8 = vsel %vm254_vm1, %v459_v2, 0  ;;  %v1026_v13 = vsel %vm254_vm1, %v1021_v9, 0  ;;  %v1952_v2 = vsel %vm254_vm1, %v6298_v19, 0  ;;  %v1890_v19 = vld [vmem:[%s7336_s1] sm:$0xf] }
  0xc9   : > { %5153 = vmatpush3.bf16.msra.mxu1 %v867_v42  ;;  %5154 = vmatprep.mubr.msk.bf16.mxu1 %vm6058_vm0, %v6057_v3 }
  0xca   : > { %5158 = vmatprep.subr.bf16.mxu1 %v6057_v3 }
  0xcb   : > { %v510_v22 = vpop.permute.xlu0 %509  ;;  %v1071_v29 = vpop.permute.xlu1 %1070 }
  0xcc   : > { %v515_v26 = vsel %vm254_vm1, %v510_v22, 0  ;;  %v1076_v30 = vsel %vm254_vm1, %v1071_v29, 0 }
  0xcf   : > { %v622_v16 = vpop.permute.xlu0 %621  ;;  %v1181_v42 = vpop.permute.xlu1 %1180 }
  0xd0   : > { %5101 = vmatmul.mubr.msk.bf16.vlgmr.msra.gmra.mrb[0].mxu0 %vm250_vm2, %v237_v48  ;;  %v627_v41 = vsel %vm254_vm1, %v622_v16, 0  ;;  %v1186_v45 = vsel %vm254_vm1, %v1181_v42, 0  ;;  %v4815_v16 = vld [vmem:[%s7336_s1 + $0x18] sm:$0xf] }
  0xd1   : > { %5105 = vmatpush3.bf16.msra.mxu0 %v352_v49  ;;  %5106 = vmatprep.mubr.msk.bf16.mxu0 %vm6058_vm0, %v6057_v3 }
  0xd2   : > { %5110 = vmatprep.subr.bf16.mxu0 %v6057_v3 }
  0xd3   : > { %v673_v46 = vpop.permute.xlu0 %672  ;;  %v1231_v49 = vpop.permute.xlu1 %1230 }
  0xd4   : > { %5155 = vmatmul.mubr.msk.bf16.vlgmr.msra.gmra.mrb[0].mxu1 %vm250_vm2, %v805_v51  ;;  %v678_v48 = vsel %vm254_vm1, %v673_v46, 0  ;;  %v1236_v51 = vsel %vm254_vm1, %v1231_v49, 0 }
  0xd5   : > { %5159 = vmatpush3.bf16.msra.mxu1 %v916_v52  ;;  %5160 = vmatprep.mubr.msk.bf16.mxu1 %vm6058_vm0, %v6057_v3 }
  0xd6   : > { %5164 = vmatprep.subr.bf16.mxu1 %v6057_v3 }
  0xd7   : > { %v1360_v52 = vpop.permute.xlu0 %1359 }
  0xd8   : > { %v1365_v56 = vsel %vm254_vm1, %v1360_v52, 0 }
  0xdc   : > { %5107 = vmatmul.mubr.msk.bf16.vlgmr.msra.gmra.mrb[0].mxu0 %vm250_vm2, %v4753_v57  ;;  %v1901_v57 = vpop.permute.xlu1 %1900 }
  0xdd   : > { %5111 = vmatpush3.bf16.msra.mxu0 %v405_v58  ;;  %5112 = vmatprep.mubr.msk.bf16.mxu0 %vm6058_vm0, %v6057_v3  ;;  %v4797_v58 = vld [vmem:[%s7336_s1 + $0x20] sm:$0xf] }
  0xde   : > { %5116 = vmatprep.subr.bf16.mxu0 %v6057_v3 }
  0xe0   : > { %5161 = vmatmul.mubr.msk.bf16.vlgmr.msra.gmra.mrb[0].mxu1 %vm250_vm2, %v4779_v60  ;;  %v1906_v60 = vsel %vm254_vm1, %v1901_v57, 0 }
  0xe1   : > { %5165 = vmatpush3.bf16.msra.mxu1 %v968_v62  ;;  %5166 = vmatprep.mubr.msk.bf16.mxu1 %vm6058_vm0, %v6057_v3  ;;  %v1411_v62 = vsel %vm254_vm1, %v6301_v20, 0  ;;  %v1455_v20 = vpop.permute.xlu0 %1454 }
  0xe2   : > { %5170 = vmatprep.subr.bf16.mxu1 %v6057_v3 }
  0xe8   : > { %5113 = vmatmul.mubr.msk.bf16.vlgmr.msra.gmra.mrb[0].mxu0 %vm250_vm2, %v4758_v7  ;;  %v1460_v7 = vsel %vm254_vm1, %v1455_v20, 0 }
  0xe9   : > { %5117 = vmatpush3.bf16.msra.mxu0 %v464_v8  ;;  %5118 = vmatprep.mubr.msk.bf16.mxu0 %vm6058_vm0, %v6057_v3  ;;  %v1996_v8 = vpop.permute.xlu1 %1995 }
  0xea   : > { %5122 = vmatprep.subr.bf16.mxu0 %v6057_v3  ;;  %v2001_v9 = vsel %vm254_vm1, %v1996_v8, 0  ;;  %v2591_v8 = vsel %vm254_vm1, %v6378_v44, 0 }
  0xec   : > { %5167 = vmatmul.mubr.msk.bf16.vlgmr.msra.gmra.mrb[0].mxu1 %vm250_vm2, %v4784_v12  ;;  %v1509_v12 = vsel %vm254_vm1, %v6315_v24, 0  ;;  %v1562_v24 = vpop.permute.xlu0 %1561 }
  0xed   : > { %5171 = vmatpush3.bf16.msra.mxu1 %v1026_v13  ;;  %5172 = vmatprep.mubr.msk.bf16.mxu1 %vm6058_vm0, %v6057_v3  ;;  %v4825_v13 = vld [vmem:[%s7336_s1 + $0x8] sm:$0xf]  ;;  %v1567_v22 = vsel %vm254_vm1, %v1562_v24, 0 }
  0xee   : > { %5176 = vmatprep.subr.bf16.mxu1 %v6057_v3 }
  0xf0   : > { %v1612_v29 = vpop.permute.xlu0 %1611 }
  0xf4   : > { %5119 = vmatmul.mubr.msk.bf16.vlgmr.msra.gmra.mrb[0].mxu0 %vm250_vm2, %v4760_v25  ;;  %v2103_v25 = vpop.permute.xlu1 %2102 }
  0xf5   : > { %5123 = vmatpush3.bf16.msra.mxu0 %v515_v26  ;;  %5124 = vmatprep.mubr.msk.bf16.mxu0 %vm6058_vm0, %v6057_v3  ;;  %v2108_v26 = vsel %vm254_vm1, %v2103_v25, 0 }
  0xf6   : > { %5128 = vmatprep.subr.bf16.mxu0 %v6057_v3 }
  0xf8   : > { %5173 = vmatmul.mubr.msk.bf16.vlgmr.msra.gmra.mrb[0].mxu1 %vm250_vm2, %v4786_v6  ;;  %v4808_v6 = vld [vmem:[%s7336_s1 + $0x10] sm:$0xf]  ;;  %v2153_v32 = vpop.permute.xlu1 %2152 }
  0xf9   : > { %5177 = vmatpush3.bf16.msra.mxu1 %v1076_v30  ;;  %5178 = vmatprep.mubr.msk.bf16.mxu1 %vm6058_vm0, %v6057_v3  ;;  %v1617_v30 = vsel %vm254_vm1, %v1612_v29, 0  ;;  %v2158_v35 = vsel %vm254_vm1, %v2153_v32, 0  ;;  %v4854_v32 = vld [vmem:[%s7336_s1 + $0x14] sm:$0xf] }
  0xfa   : > { %5182 = vmatprep.subr.bf16.mxu1 %v6057_v3 }
 0x100   : > { %5125 = vmatmul.mubr.msk.bf16.vlgmr.msra.gmra.mrb[0].mxu0 %vm250_vm2, %v4762_v36  ;;  %v4810_v36 = vld [vmem:[%s7336_s1 + $0x14] sm:$0xf] }
 0x101   : > { %5129 = vmatpush3.bf16.msra.mxu0 %v568_v37  ;;  %5130 = vmatprep.mubr.msk.bf16.mxu0 %vm6058_vm0, %v6057_v3  ;;  %v1669_v37 = vsel %vm254_vm1, %v6331_v28, 0  ;;  %v1722_v28 = vpop.permute.xlu0 %1721 }
 0x102   : > { %5134 = vmatprep.subr.bf16.mxu0 %v6057_v3 }
 0x104   : > { %5179 = vmatmul.mubr.msk.bf16.vlgmr.msra.gmra.mrb[0].mxu1 %vm250_vm2, %v4788_v38  ;;  %v4832_v38 = vld [vmem:[%s7336_s1 + $0x14] sm:$0xf] }
 0x105   : > { %5183 = vmatpush3.bf16.msra.mxu1 %v1128_v39  ;;  %5184 = vmatprep.mubr.msk.bf16.mxu1 %vm6058_vm0, %v6057_v3  ;;  %v2210_v39 = vsel %vm254_vm1, %v6328_v27, 0  ;;  %v4837_v27 = vld [vmem:[%s7336_s1 + $0x18] sm:$0xf] }
 0x106   : > { %5188 = vmatprep.subr.bf16.mxu1 %v6057_v3 }
 0x10c   : > { %5131 = vmatmul.mubr.msk.bf16.vlgmr.msra.gmra.mrb[0].mxu0 %vm250_vm2, %v4767_v40  ;;  %v1727_v40 = vsel %vm254_vm1, %v1722_v28, 0  ;;  %v4859_v28 = vld [vmem:[%s7336_s1 + $0x18] sm:$0xf] }
 0x10d   : > { %5135 = vmatpush3.bf16.msra.mxu0 %v627_v41  ;;  %5136 = vmatprep.mubr.msk.bf16.mxu0 %vm6058_vm0, %v6057_v3  ;;  %v2263_v41 = vpop.permute.xlu1 %2262 }
 0x10e   : > { %5140 = vmatprep.subr.bf16.mxu0 %v6057_v3  ;;  %v2268_v42 = vsel %vm254_vm1, %v2263_v41, 0 }
 0x110   : > { %5185 = vmatmul.mubr.msk.bf16.vlgmr.msra.gmra.mrb[0].mxu1 %vm250_vm2, %v4793_v15  ;;  %v1772_v15 = vpop.permute.xlu0 %1771 }
 0x111   : > { %5189 = vmatpush3.bf16.msra.mxu1 %v1186_v45  ;;  %5190 = vmatprep.mubr.msk.bf16.mxu1 %vm6058_vm0, %v6057_v3  ;;  %v4817_v45 = vld [vmem:[%s7336_s1 + $0x1c] sm:$0xf]  ;;  %v1777_v46 = vsel %vm254_vm1, %v1772_v15, 0 }
 0x112   : > { %5194 = vmatprep.subr.bf16.mxu1 %v6057_v3 }
 0x118   : > { %5137 = vmatmul.mubr.msk.bf16.vlgmr.msra.gmra.mrb[0].mxu0 %vm250_vm2, %v4769_v47  ;;  %v2313_v47 = vpop.permute.xlu1 %2312 }
 0x119   : > { %5141 = vmatpush3.bf16.msra.mxu0 %v678_v48  ;;  %5142 = vmatprep.mubr.msk.bf16.mxu0 %vm6058_vm0, %v6057_v3  ;;  %v4839_v48 = vld [vmem:[%s7336_s1 + $0x1c] sm:$0xf]  ;;  %v2318_v49 = vsel %vm254_vm1, %v2313_v47, 0 }
 0x11a   : > { %5200 = vmatprep.subr.bf16.mxu0 %v6057_v3 }
 0x11c   : > { %5191 = vmatmul.mubr.msk.bf16.vlgmr.msra.gmra.mrb[0].mxu1 %vm250_vm2, %v4795_v50  ;;  %v2442_v50 = vpop.permute.xlu0 %2441 }
 0x11d   : > { %5195 = vmatpush3.bf16.msra.mxu1 %v1236_v51  ;;  %5196 = vmatprep.mubr.msk.bf16.mxu1 %vm6058_vm0, %v6057_v3  ;;  %v4819_v51 = vld [vmem:[%s7336_s1 + $0x20] sm:$0xf]  ;;  %v2447_v52 = vsel %vm254_vm1, %v2442_v50, 0 }
 0x11e   : > { %5254 = vmatprep.subr.bf16.mxu1 %v6057_v3 }
 0x124   : > { %5143 = vmatmul.mubr.msk.bf16.vlgmr.msra.gmra.mrb[0].mxu0 %vm250_vm2, %v4771_v55  ;;  %v2983_v55 = vpop.permute.xlu1 %2982 }
 0x125   : > { %5201 = vmatpush3.bf16.msra.mxu0 %v1365_v56  ;;  %5202 = vmatprep.mubr.msk.bf16.mxu0 %vm6058_vm0, %v6057_v3  ;;  %v4841_v56 = vld [vmem:[%s7336_s1 + $0x20] sm:$0xf]  ;;  %v2988_v57 = vsel %vm254_vm1, %v2983_v55, 0 }
 0x126   : > { %5206 = vmatprep.subr.bf16.mxu0 %v6057_v3  ;;  %v4863_v55 = vld [vmem:[%s7336_s1 + $0x20] sm:$0xf] }
 0x128   : > { %5197 = vmatmul.mubr.msk.bf16.vlgmr.msra.gmra.mrb[0].mxu1 %vm250_vm2, %v4797_v58  ;;  %v4844_v58 = vld [vmem:[%s7336_s1 + $0x4] sm:$0xf]  ;;  %v3078_v20 = vpop.permute.xlu1 %3077 }
 0x129   : > { %5255 = vmatpush3.bf16.msra.mxu1 %v1906_v60  ;;  %5256 = vmatprep.mubr.msk.bf16.mxu1 %vm6058_vm0, %v6057_v3  ;;  %v2493_v60 = vsel %vm254_vm1, %v6342_v31, 0  ;;  %v2537_v31 = vpop.permute.xlu0 %2536 }
 0x12a   : > { %5260 = vmatprep.subr.bf16.mxu1 %v6057_v3 }
 0x12c   : > { %5203 = vmatmul.mubr.msk.bf16.vlgmr.msra.gmra.mrb[4].mxu0 %vm250_vm2, %v4800_v61  ;;  %v4866_v61 = vld [vmem:[%s7336_s1 + $0x4] sm:$0xf] }
 0x12d   : > { %5207 = vmatpush3.bf16.msra.mxu0 %v1411_v62  ;;  %5208 = vmatprep.mubr.msk.bf16.mxu0 %vm6058_vm0, %v6057_v3  ;;  %v3034_v62 = vsel %vm254_vm1, %v6347_v33, 0  ;;  %v2972_v33 = vld [vmem:[%s7336_s1] sm:$0xf]  ;;  %v2644_v44 = vpop.permute.xlu0 %2643 }
 0x12e   : > { %5212 = vmatprep.subr.bf16.mxu0 %v6057_v3 }
 0x130   : > { %5257 = vmatmul.mubr.msk.bf16.vlgmr.msra.gmra.mrb[4].mxu1 %vm250_vm2, %v4822_v0  ;;  %v2431_v0 = vld [vmem:[%s7336_s1] sm:$0xf] }
 0x131   : > { %5261 = vmatpush3.bf16.msra.mxu1 %v1952_v2  ;;  %5262 = vmatprep.mubr.msk.bf16.mxu1 %vm6058_vm0, %v6057_v3  ;;  %v2542_v2 = vsel %vm254_vm1, %v2537_v31, 0  ;;  %v2694_v24 = vpop.permute.xlu0 %2693 }
 0x132   : > { %5266 = vmatprep.subr.bf16.mxu1 %v6057_v3 }
 0x138   : > { %5209 = vmatmul.mubr.msk.bf16.vlgmr.msra.gmra.mrb[4].mxu0 %vm250_vm2, %v1349_v5  ;;  %v3083_v5 = vsel %vm254_vm1, %v3078_v20, 0 }
 0x139   : > { %5213 = vmatpush3.bf16.msra.mxu0 %v1460_v7  ;;  %5214 = vmatprep.mubr.msk.bf16.mxu0 %vm6058_vm0, %v6057_v3  ;;  %v4847_v7 = vld [vmem:[%s7336_s1 + $0x8] sm:$0xf] }
 0x13a   : > { %5218 = vmatprep.subr.bf16.mxu0 %v6057_v3 }
 0x13c   : > { %5263 = vmatmul.mubr.msk.bf16.vlgmr.msra.gmra.mrb[4].mxu1 %vm250_vm2, %v1890_v19  ;;  %v4869_v19 = vld [vmem:[%s7336_s1 + $0x8] sm:$0xf] }
 0x13d   : > { %5267 = vmatpush3.bf16.msra.mxu1 %v2001_v9  ;;  %5268 = vmatprep.mubr.msk.bf16.mxu1 %vm6058_vm0, %v6057_v3  ;;  %v3132_v9 = vsel %vm254_vm1, %v6375_v43, 0  ;;  %v4872_v43 = vld [vmem:[%s7336_s1 + $0xc] sm:$0xf] }
 0x13e   : > { %5272 = vmatprep.subr.bf16.mxu1 %v6057_v3 }
 0x144   : > { %5215 = vmatmul.mubr.msk.bf16.vlgmr.msra.gmra.mrb[4].mxu0 %vm250_vm2, %v4803_v11  ;;  %v4850_v11 = vld [vmem:[%s7336_s1 + $0xc] sm:$0xf] }
 0x145   : > { %5219 = vmatpush3.bf16.msra.mxu0 %v1509_v12  ;;  %5220 = vmatprep.mubr.msk.bf16.mxu0 %vm6058_vm0, %v6057_v3  ;;  %v2649_v12 = vsel %vm254_vm1, %v2644_v44, 0 }
 0x146   : > { %5224 = vmatprep.subr.bf16.mxu0 %v6057_v3 }
 0x148   : > { %5269 = vmatmul.mubr.msk.bf16.vlgmr.msra.gmra.mrb[4].mxu1 %vm250_vm2, %v4825_v13  ;;  %v3185_v13 = vpop.permute.xlu1 %3184 }
 0x149   : > { %5273 = vmatpush3.bf16.msra.mxu1 %v2050_v18  ;;  %5274 = vmatprep.mubr.msk.bf16.mxu1 %vm6058_vm0, %v6057_v3  ;;  %v3190_v18 = vsel %vm254_vm1, %v3185_v13, 0 }
 0x14a   : > { %5278 = vmatprep.subr.bf16.mxu1 %v6057_v3 }
 0x14c   : > { %v3235_v25 = vpop.permute.xlu1 %3234 }
 0x14d   : > { %v3240_v29 = vsel %vm254_vm1, %v3235_v25, 0 }
 0x150   : > { %5221 = vmatmul.mubr.msk.bf16.vlgmr.msra.gmra.mrb[4].mxu0 %vm250_vm2, %v4806_v21  ;;  %v4852_v21 = vld [vmem:[%s7336_s1 + $0x10] sm:$0xf] }
 0x151   : > { %5225 = vmatpush3.bf16.msra.mxu0 %v1567_v22  ;;  %5226 = vmatprep.mubr.msk.bf16.mxu0 %vm6058_vm0, %v6057_v3  ;;  %v2699_v22 = vsel %vm254_vm1, %v2694_v24, 0 }
 0x152   : > { %5230 = vmatprep.subr.bf16.mxu0 %v6057_v3 }
 0x154   : > { %5275 = vmatmul.mubr.msk.bf16.vlgmr.msra.gmra.mrb[4].mxu1 %vm250_vm2, %v4828_v23  ;;  %v4874_v23 = vld [vmem:[%s7336_s1 + $0x10] sm:$0xf] }
 0x155   : > { %5279 = vmatpush3.bf16.msra.mxu1 %v2108_v26  ;;  %5280 = vmatprep.mubr.msk.bf16.mxu1 %vm6058_vm0, %v6057_v3  ;;  %v2804_v26 = vpop.permute.xlu0 %2803 }
 0x156   : > { %5284 = vmatprep.subr.bf16.mxu1 %v6057_v3 }
 0x15c   : > { %5227 = vmatmul.mubr.msk.bf16.vlgmr.msra.gmra.mrb[4].mxu0 %vm250_vm2, %v4808_v6  ;;  %v3345_v6 = vpop.permute.xlu1 %3344 }
 0x15d   : > { %5231 = vmatpush3.bf16.msra.mxu0 %v1617_v30  ;;  %5232 = vmatprep.mubr.msk.bf16.mxu0 %vm6058_vm0, %v6057_v3  ;;  %v2854_v30 = vpop.permute.xlu0 %2853 }
 0x15e   : > { %5236 = vmatprep.subr.bf16.mxu0 %v6057_v3  ;;  %v2859_v47 = vsel %vm254_vm1, %v2854_v30, 0 }
 0x160   : > { %5281 = vmatmul.mubr.msk.bf16.vlgmr.msra.gmra.mrb[4].mxu1 %vm250_vm2, %v4830_v34  ;;  %v3395_v34 = vpop.permute.xlu1 %3394 }
 0x161   : > { %5285 = vmatpush3.bf16.msra.mxu1 %v2158_v35  ;;  %5286 = vmatprep.mubr.msk.bf16.mxu1 %vm6058_vm0, %v6057_v3  ;;  %v2751_v35 = vsel %vm254_vm1, %v6407_v53, 0  ;;  %v3400_v50 = vsel %vm254_vm1, %v3395_v34, 0 }
 0x162   : > { %5290 = vmatprep.subr.bf16.mxu1 %v6057_v3 }
 0x168   : > { %5233 = vmatmul.mubr.msk.bf16.vlgmr.msra.gmra.mrb[4].mxu0 %vm250_vm2, %v4810_v36  ;;  %v4876_v36 = vld [vmem:[%s7336_s1 + $0x14] sm:$0xf] }
 0x169   : > { %5237 = vmatpush3.bf16.msra.mxu0 %v1669_v37  ;;  %5238 = vmatprep.mubr.msk.bf16.mxu0 %vm6058_vm0, %v6057_v3  ;;  %v3524_v37 = vpop.permute.xlu0 %3523 }
 0x16a   : > { %5242 = vmatprep.subr.bf16.mxu0 %v6057_v3 }
 0x16c   : > { %5287 = vmatmul.mubr.msk.bf16.vlgmr.msra.gmra.mrb[4].mxu1 %vm250_vm2, %v4832_v38  ;;  %v3292_v38 = vsel %vm254_vm1, %v6410_v54, 0  ;;  %v2809_v54 = vsel %vm254_vm1, %v2804_v26, 0 }
 0x16d   : > { %5291 = vmatpush3.bf16.msra.mxu1 %v2210_v39  ;;  %5292 = vmatprep.mubr.msk.bf16.mxu1 %vm6058_vm0, %v6057_v3  ;;  %v4065_v39 = vpop.permute.xlu1 %4064  ;;  %v6837_v53 = vpop.permute.xlu0 %3618 }
 0x16e   : > { %5296 = vmatprep.subr.bf16.mxu1 %v6057_v3 }
 0x171   : > { %v6851_v41 = vpop.permute.xlu0 %3725 }
 0x174   : > { %5239 = vmatmul.mubr.msk.bf16.vlgmr.msra.gmra.mrb[4].mxu0 %vm250_vm2, %v4815_v16  ;;  %v6842_v16 = vpop.permute.xlu1 %4159 }
 0x175   : > { %5243 = vmatpush3.bf16.msra.mxu0 %v1727_v40  ;;  %5244 = vmatprep.mubr.msk.bf16.mxu0 %vm6058_vm0, %v6057_v3  ;;  %v4881_v40 = vld [vmem:[%s7336_s1 + $0x18] sm:$0xf]  ;;  %v6861_v15 = vpop.permute.xlu0 %3775 }
 0x176   : > { %5248 = vmatprep.subr.bf16.mxu0 %v6057_v3 }
 0x178   : > { %5293 = vmatmul.mubr.msk.bf16.vlgmr.msra.gmra.mrb[4].mxu1 %vm250_vm2, %v4837_v27  ;;  %v3350_v27 = vsel %vm254_vm1, %v3345_v6, 0 }
 0x179   : > { %5297 = vmatpush3.bf16.msra.mxu1 %v2268_v42  ;;  %5298 = vmatprep.mubr.msk.bf16.mxu1 %vm6058_vm0, %v6057_v3  ;;  %v6855_v42 = vpop.permute.xlu1 %4266 }
 0x17a   : > { %5302 = vmatprep.subr.bf16.mxu1 %v6057_v3 }
 0x180   : > { %5245 = vmatmul.mubr.msk.bf16.vlgmr.msra.gmra.mrb[4].mxu0 %vm250_vm2, %v4817_v45  ;;  %v4861_v45 = vld [vmem:[%s7336_s1 + $0x1c] sm:$0xf] }
 0x181   : > { %5249 = vmatpush3.bf16.msra.mxu0 %v1777_v46  ;;  %5250 = vmatprep.mubr.msk.bf16.mxu0 %vm6058_vm0, %v6057_v3  ;;  %v6866_v46 = vpop.permute.xlu1 %4316 }
 0x182   : > { %5308 = vmatprep.subr.bf16.mxu0 %v6057_v3 }
 0x184   : > { %5299 = vmatmul.mubr.msk.bf16.vlgmr.msra.gmra.mrb[4].mxu1 %vm250_vm2, %v4839_v48  ;;  %v4883_v48 = vld [vmem:[%s7336_s1 + $0x1c] sm:$0xf] }
 0x185   : > { %5303 = vmatpush3.bf16.msra.mxu1 %v2318_v49  ;;  %5304 = vmatprep.mubr.msk.bf16.mxu1 %vm6058_vm0, %v6057_v3  ;;  %v6873_v49 = vpop.permute.xlu0 %3885 }
 0x186   : > { %5362 = vmatprep.subr.bf16.mxu1 %v6057_v3 }
 0x18c   : > { %5251 = vmatmul.mubr.msk.bf16.vlgmr.msra.gmra.mrb[4].mxu0 %vm250_vm2, %v4819_v51  ;;  %v6879_v51 = vpop.permute.xlu1 %4426 }
 0x18d   : > { %5309 = vmatpush3.bf16.msra.mxu0 %v2447_v52  ;;  %5310 = vmatprep.mubr.msk.bf16.mxu0 %vm6058_vm0, %v6057_v3  ;;  %v6885_v52 = vpop.permute.xlu0 %3935 }
 0x18e   : > { %5314 = vmatprep.subr.bf16.mxu0 %v6057_v3 }
 0x190   : > { %5305 = vmatmul.mubr.msk.bf16.vlgmr.msra.gmra.mrb[4].mxu1 %vm250_vm2, %v4841_v56  ;;  %v6890_v56 = vpop.permute.xlu1 %4476 }
 0x191   : > { %5363 = vmatpush3.bf16.msra.mxu1 %v2988_v57  ;;  %5364 = vmatprep.mubr.msk.bf16.mxu1 %vm6058_vm0, %v6057_v3  ;;  %v6062_v57 = vmov 1966171168  }
 0x192   : > { %5368 = vmatprep.subr.bf16.mxu1 %v6057_v3 }
 0x194   : > { %5311 = vmatmul.mubr.msk.bf16.vlgmr.msra.gmra.mrb[8].mxu0 %vm250_vm2, %v4844_v58  ;;  %v737_v58 = vunpack.c.l.s4 %v6062_v57  ;;  %v6903_v20 = vpop.permute.xlu1 %729 }
 0x195   : > { %5315 = vmatpush3.bf16.msra.mxu0 %v2493_v60  ;;  %5316 = vmatprep.mubr.msk.bf16.mxu0 %vm6058_vm0, %v6057_v3  ;;  %v3529_v60 = vsel %vm254_vm1, %v3524_v37, 0 }
 0x196   : > { %5320 = vmatprep.subr.bf16.mxu0 %v6057_v3  ;;  %v738_v31 = vunpack.c.0.s8 %v737_v58 }
 0x198   : > { %5365 = vmatmul.mubr.msk.bf16.vlgmr.msra.gmra.mrb[8].mxu1 %vm250_vm2, %v4866_v61  ;;  %v6894_v61 = vpop.permute.xlu0 %723 }
 0x199   : > { %5369 = vmatpush3.bf16.msra.mxu1 %v3034_v62  ;;  %5370 = vmatprep.mubr.msk.bf16.mxu1 %vm6058_vm0, %v6057_v3  ;;  %v4885_v62 = vld [vmem:[%s7336_s1 + $0x20] sm:$0xf] }
 0x19a   : > { %5374 = vmatprep.subr.bf16.mxu1 %v6057_v3 }
 0x1a0   : > { %5317 = vmatmul.mubr.msk.bf16.vlgmr.msra.gmra.mrb[8].mxu0 %vm250_vm2, %v2431_v0  ;;  %v4070_v0 = vsel %vm254_vm1, %v4065_v39, 0 }
 0x1a1   : > { %5321 = vmatpush3.bf16.msra.mxu0 %v2542_v2  ;;  %5322 = vmatprep.mubr.msk.bf16.mxu0 %vm6058_vm0, %v6057_v3 }
 0x1a2   : > { %5326 = vmatprep.subr.bf16.mxu0 %v6057_v3 }
 0x1a4   : > { %5371 = vmatmul.mubr.msk.bf16.vlgmr.msra.gmra.mrb[8].mxu1 %vm250_vm2, %v2972_v33 }
 0x1a5   : > { %5375 = vmatpush3.bf16.msra.mxu1 %v3083_v5  ;;  %5376 = vmatprep.mubr.msk.bf16.mxu1 %vm6058_vm0, %v6057_v3 }
 0x1a6   : > { %5380 = vmatprep.subr.bf16.mxu1 %v6057_v3 }
 0x1ac   : > { %5323 = vmatmul.mubr.msk.bf16.vlgmr.msra.gmra.mrb[8].mxu0 %vm250_vm2, %v4847_v7 }
 0x1ad   : > { %5327 = vmatpush3.bf16.msra.mxu0 %v2591_v8  ;;  %5328 = vmatprep.mubr.msk.bf16.mxu0 %vm6058_vm0, %v6057_v3  ;;  %v4888_v8 = vld [vmem:[%s7336_s1 + $0x4] sm:$0xf] }
 0x1ae   : > { %5332 = vmatprep.subr.bf16.mxu0 %v6057_v3 }
 0x1b0   : > { %5377 = vmatmul.mubr.msk.bf16.vlgmr.msra.gmra.mrb[8].mxu1 %vm250_vm2, %v4869_v19  ;;  %v6914_v19 = vsub.s32 %v738_v31, %v6246_v4  ;;  %v4910_v4 = vld [vmem:[%s7336_s1 + $0x4] sm:$0xf]  ;;  %v4054_v31 = vld [vmem:[%s7336_s1] sm:$0xf] }
 0x1b1   : > { %5381 = vmatpush3.bf16.msra.mxu1 %v3132_v9  ;;  %5382 = vmatprep.mubr.msk.bf16.mxu1 %vm6058_vm0, %v6057_v3 }
 0x1b2   : > { %5386 = vmatprep.subr.bf16.mxu1 %v6057_v3 }
 0x1b8   : > { %5329 = vmatmul.mubr.msk.bf16.vlgmr.msra.gmra.mrb[8].mxu0 %vm250_vm2, %v4850_v11  ;;  %v3575_v11 = vsel %vm254_vm1, %v6427_v59, 0 }
 0x1b9   : > { %5333 = vmatpush3.bf16.msra.mxu0 %v2649_v12  ;;  %5334 = vmatprep.mubr.msk.bf16.mxu0 %vm6058_vm0, %v6057_v3 }
 0x1ba   : > { %5338 = vmatprep.subr.bf16.mxu0 %v6057_v3 }
 0x1bc   : > { %5383 = vmatmul.mubr.msk.bf16.vlgmr.msra.gmra.mrb[8].mxu1 %vm250_vm2, %v4872_v43 }
 0x1bd   : > { %5387 = vmatpush3.bf16.msra.mxu1 %v3190_v18  ;;  %5388 = vmatprep.mubr.msk.bf16.mxu1 %vm6058_vm0, %v6057_v3 }
 0x1be   : > { %5392 = vmatprep.subr.bf16.mxu1 %v6057_v3 }
 0x1c4   : > { %5335 = vmatmul.mubr.msk.bf16.vlgmr.msra.gmra.mrb[8].mxu0 %vm250_vm2, %v4852_v21 }
 0x1c5   : > { %5339 = vmatpush3.bf16.msra.mxu0 %v2699_v22  ;;  %5340 = vmatprep.mubr.msk.bf16.mxu0 %vm6058_vm0, %v6057_v3 }
 0x1c6   : > { %5344 = vmatprep.subr.bf16.mxu0 %v6057_v3 }
 0x1c8   : > { %5389 = vmatmul.mubr.msk.bf16.vlgmr.msra.gmra.mrb[8].mxu1 %vm250_vm2, %v4874_v23  ;;  %v4116_v23 = vsel %vm254_vm1, %v6441_v63, 0 }
 0x1c9   : > { %5393 = vmatpush3.bf16.msra.mxu1 %v3240_v29  ;;  %5394 = vmatprep.mubr.msk.bf16.mxu1 %vm6058_vm0, %v6057_v3 }
 0x1ca   : > { %5398 = vmatprep.subr.bf16.mxu1 %v6057_v3 }
 0x1d0   : > { %5341 = vmatmul.mubr.msk.bf16.vlgmr.msra.gmra.mrb[8].mxu0 %vm250_vm2, %v4854_v32 }
 0x1d1   : > { %5345 = vmatpush3.bf16.msra.mxu0 %v2751_v35  ;;  %5346 = vmatprep.mubr.msk.bf16.mxu0 %vm6058_vm0, %v6057_v3 }
 0x1d2   : > { %5350 = vmatprep.subr.bf16.mxu0 %v6057_v3 }
 0x1d4   : > { %5395 = vmatmul.mubr.msk.bf16.vlgmr.msra.gmra.mrb[8].mxu1 %vm250_vm2, %v4876_v36 }
 0x1d5   : > { %5399 = vmatpush3.bf16.msra.mxu1 %v3292_v38  ;;  %5400 = vmatprep.mubr.msk.bf16.mxu1 %vm6058_vm0, %v6057_v3 }
 0x1d6   : > { %5404 = vmatprep.subr.bf16.mxu1 %v6057_v3 }
 0x1dc   : > { %5347 = vmatmul.mubr.msk.bf16.vlgmr.msra.gmra.mrb[8].mxu0 %vm250_vm2, %v4859_v28 }
 0x1dd   : > { %5351 = vmatpush3.bf16.msra.mxu0 %v2809_v54  ;;  %5352 = vmatprep.mubr.msk.bf16.mxu0 %vm6058_vm0, %v6057_v3 }
 0x1de   : > { %5356 = vmatprep.subr.bf16.mxu0 %v6057_v3 }
 0x1e0   : > { %5401 = vmatmul.mubr.msk.bf16.vlgmr.msra.gmra.mrb[8].mxu1 %vm250_vm2, %v4881_v40 }
 0x1e1   : > { %5405 = vmatpush3.bf16.msra.mxu1 %v3350_v27  ;;  %5406 = vmatprep.mubr.msk.bf16.mxu1 %vm6058_vm0, %v6057_v3 }
 0x1e2   : > { %5410 = vmatprep.subr.bf16.mxu1 %v6057_v3 }
 0x1e8   : > { %5353 = vmatmul.mubr.msk.bf16.vlgmr.msra.gmra.mrb[8].mxu0 %vm250_vm2, %v4861_v45  ;;  %v3513_v45 = vld [vmem:[%s7336_s1] sm:$0xf] }
 0x1e9   : > { %5357 = vmatpush3.bf16.msra.mxu0 %v2859_v47  ;;  %5358 = vmatprep.mubr.msk.bf16.mxu0 %vm6058_vm0, %v6057_v3  ;;  %v3624_v47 = vsel %vm254_vm1, %v6837_v53, 0 }
 0x1ea   : > { %5416 = vmatprep.subr.bf16.mxu0 %v6057_v3 }
 0x1ec   : > { %5407 = vmatmul.mubr.msk.bf16.vlgmr.msra.gmra.mrb[8].mxu1 %vm250_vm2, %v4883_v48 }
 0x1ed   : > { %5411 = vmatpush3.bf16.msra.mxu1 %v3400_v50  ;;  %5412 = vmatprep.mubr.msk.bf16.mxu1 %vm6058_vm0, %v6057_v3 }
 0x1ee   : > { %5470 = vmatprep.subr.bf16.mxu1 %v6057_v3 }
 0x1f4   : > { %5359 = vmatmul.mubr.msk.bf16.vlgmr.msra.gmra.mrb[8].mxu0 %vm250_vm2, %v4863_v55 }
 0x1f5   : > { %5417 = vmatpush3.bf16.msra.mxu0 %v3529_v60  ;;  %5418 = vmatprep.mubr.msk.bf16.mxu0 %vm6058_vm0, %v6057_v3 }
 0x1f6   : > { %5422 = vmatprep.subr.bf16.mxu0 %v6057_v3 }
 0x1f7   : > { %v714_v2 = vpop.f32.mrb[0].mxu0 }
 0x1f8   : > { %v726_v33 = vmul.f32 %v6894_v61, %v714_v2  ;;  %v5144_v5 = vpop.f32.mrb[1].mxu0  ;;  %5413 = vmatmul.mubr.msk.bf16.vlgmr.msra.gmra.mrb[8].mxu1 %vm250_vm2, %v4885_v62 }
 0x1f9   : > { %v717_v7 = vpop.f32.mrb[2].mxu0  ;;  %5471 = vmatpush3.bf16.msra.mxu1 %v4070_v0  ;;  %5472 = vmatprep.mubr.msk.bf16.mxu1 %vm6058_vm0, %v6057_v3  ;;  %v4165_v0 = vsel %vm254_vm1, %v6842_v16, 0  ;;  %v4891_v16 = vld [vmem:[%s7336_s1 + $0x8] sm:$0xf] }
 0x1fa   : > { %v732_v9 = vadd.f32 %v6903_v20, %v726_v33  ;;  %v5145_v44 = vpop.f32.mrb[3].mxu0  ;;  %5476 = vmatprep.subr.bf16.mxu1 %v6057_v3  ;;  %v3673_v33 = vsel %vm254_vm1, %v6450_v1, 0  ;;  %v4913_v5 = vld [vmem:[%s7336_s1 + $0x8] sm:$0xf]  ;;  %v4214_v7 = vsel %vm254_vm1, %v6463_v10, 0 }
 0x1fb   : > { %v1272_v12 = vpop.f32.mrb[0].mxu1  ;;  %v4894_v1 = vld [vmem:[%s7336_s1 + $0xc] sm:$0xf]  ;;  %v3781_v44 = vsel %vm254_vm1, %v6861_v15, 0  ;;  %v4898_v15 = vld [vmem:[%s7336_s1 + $0x14] sm:$0xf] }
 0x1fc   : > { %v733_v13 = vmax.f32 %v732_v9, 0.0  ;;  %v1279_v43 = vmul.f32 %v1272_v12, %v6894_v61  ;;  %v5198_v18 = vpop.f32.mrb[1].mxu1  ;;  %5419 = vmatmul.mubr.msk.bf16.vlgmr.msra.gmra.mrb[12].mxu0 %vm250_vm2, %v4888_v8  ;;  %v3731_v8 = vsel %vm254_vm1, %v6851_v41, 0  ;;  %v4916_v10 = vld [vmem:[%s7336_s1 + $0xc] sm:$0xf]  ;;  %v4272_v9 = vsel %vm254_vm1, %v6855_v42, 0 }
 0x1fd   : > { %v1275_v24 = vpop.f32.mrb[2].mxu1  ;;  %5423 = vmatpush3.bf16.msra.mxu0 %v3575_v11  ;;  %5424 = vmatprep.mubr.msk.bf16.mxu0 %vm6058_vm0, %v6057_v3  ;;  %v4896_v41 = vld [vmem:[%s7336_s1 + $0x10] sm:$0xf]  ;;  %v4322_v11 = vsel %vm254_vm1, %v6866_v46, 0  ;;  %v3833_v12 = vsel %vm254_vm1, %v6482_v14, 0  ;;  %v4432_v18 = vsel %vm254_vm1, %v6879_v51, 0 }
 0x1fe   : > { %v735_v21 = vcombine.high %v733_v13, %v733_v13  ;;  %v742_v59 = vrot.slane %v733_v13, %v6914_v19  ;;  %v1280_v22 = vadd.f32 %v1279_v43, %v6903_v20  ;;  %v5199_v25 = vpop.f32.mrb[3].mxu1  ;;  %5428 = vmatprep.subr.bf16.mxu0 %v6057_v3  ;;  %v4918_v42 = vld [vmem:[%s7336_s1 + $0x10] sm:$0xf]  ;;  %v4920_v46 = vld [vmem:[%s7336_s1 + $0x14] sm:$0xf]  ;;  %v4374_v13 = vsel %vm254_vm1, %v6485_v17, 0 }
 0x1ff   : > { %v4903_v14 = vld [vmem:[%s7336_s1 + $0x18] sm:$0xf]  ;;  %v3891_v43 = vsel %vm254_vm1, %v6873_v49, 0  ;;  %v4905_v49 = vld [vmem:[%s7336_s1 + $0x1c] sm:$0xf]  ;;  %v3941_v24 = vsel %vm254_vm1, %v6885_v52, 0 }
 0x200   : > { %v749_v26 = vrot.slane %v735_v21, %v6914_v19  ;;  %v750_v29 = vcombine.high %v742_v59, %v742_v59  ;;  %v758_v6 = vrot.slane %v742_v59, %v6914_v19  ;;  %v1281_v30 = vmax.f32 %v1280_v22, 0.0  ;;  %5473 = vmatmul.mubr.msk.bf16.vlgmr.msra.gmra.mrb[12].mxu1 %vm250_vm2, %v4910_v4  ;;  %v4925_v17 = vld [vmem:[%s7336_s1 + $0x18] sm:$0xf]  ;;  %v4927_v51 = vld [vmem:[%s7336_s1 + $0x1c] sm:$0xf] }
 0x201   : > { %5477 = vmatpush3.bf16.msra.mxu1 %v4116_v23  ;;  %5478 = vmatprep.mubr.msk.bf16.mxu1 %vm6058_vm0, %v6057_v3  ;;  %v4482_v4 = vsel %vm254_vm1, %v6890_v56, 0  ;;  %v4907_v52 = vld [vmem:[%s7336_s1 + $0x20] sm:$0xf] }
 0x202   : > { %v751_v32 = vcombine.high %v749_v26, %v749_v26  ;;  %v765_v34 = vrot.slane %v749_v26, %v6914_v19  ;;  %v772_v63 = vrot.slane %v750_v29, %v6914_v19  ;;  %v780_v35 = vcombine.high %v758_v6, %v758_v6  ;;  %793 = vst.msk [vmem:[%s6941_s10] sm:$0x1] %vm792_vm3, %v758_v6  ;;  %v4929_v21 = vld [vmem:[%s7336_s1 + $0x20] sm:$0xf] }
 0x203   : > { %5482 = vmatprep.subr.bf16.mxu1 %v6057_v3  ;;  %v1283_v36 = vcombine.high %v1281_v30, %v1281_v30  ;;  %v1290_v37 = vrot.slane %v1281_v30, %v6914_v19 }
 0x204   : > { %v779_v38 = vrot.slane %v751_v32, %v6914_v19  ;;  %v781_v39 = vcombine.high %v765_v34, %v765_v34  ;;  %v782_v28 = vcombine.high %v772_v63, %v772_v63  ;;  %794 = vst.msk [vmem:[%s6941_s10 + $0x8] sm:$0x1] %vm792_vm3, %v772_v63  ;;  %795 = vst.msk [vmem:[%s6941_s10 + $0x10] sm:$0x1] %vm792_vm3, %v780_v35 }
 0x205   : > { %797 = vst.msk [vmem:[%s6941_s10 + $0x20] sm:$0x1] %vm792_vm3, %v765_v34  ;;  %v1297_v54 = vrot.slane %v1283_v36, %v6914_v19  ;;  %v1298_v40 = vcombine.high %v1290_v37, %v1290_v37  ;;  %v1306_v27 = vrot.slane %v1290_v37, %v6914_v19 }
 0x206   : > { %v783_v48 = vcombine.high %v779_v38, %v779_v38  ;;  %796 = vst.msk [vmem:[%s6941_s10 + $0x18] sm:$0x1] %vm792_vm3, %v782_v28  ;;  %798 = vst.msk [vmem:[%s6941_s10 + $0x28] sm:$0x1] %vm792_vm3, %v779_v38 }
 0x207   : > { %799 = vst.msk [vmem:[%s6941_s10 + $0x30] sm:$0x1] %vm792_vm3, %v781_v39  ;;  %v1299_v50 = vcombine.high %v1297_v54, %v1297_v54  ;;  %v1313_v55 = vrot.slane %v1297_v54, %v6914_v19  ;;  %v1320_v57 = vrot.slane %v1298_v40, %v6914_v19  ;;  %v1328_v58 = vcombine.high %v1306_v27, %v1306_v27 }
 0x208   : > { %1340 = vst.msk [vmem:[%s6941_s10 + $0x1] sm:$0x1] %vm792_vm3, %v1306_v27  ;;  %800 = vst.msk [vmem:[%s6941_s10 + $0x38] sm:$0x1] %vm792_vm3, %v783_v48  ;;  %5425 = vmatmul.mubr.msk.bf16.vlgmr.msra.gmra.mrb[12].mxu0 %vm250_vm2, %v3513_v45 }
 0x209   : > { %v1327_v53 = vrot.slane %v1299_v50, %v6914_v19  ;;  %v1329_v60 = vcombine.high %v1313_v55, %v1313_v55  ;;  %v1330_v62 = vcombine.high %v1320_v57, %v1320_v57  ;;  %1341 = vst.msk [vmem:[%s6941_s10 + $0x9] sm:$0x1] %vm792_vm3, %v1320_v57  ;;  %1342 = vst.msk [vmem:[%s6941_s10 + $0x11] sm:$0x1] %vm792_vm3, %v1328_v58  ;;  %5429 = vmatpush3.bf16.msra.mxu0 %v3624_v47 }
 0x20a   : > { %1344 = vst.msk [vmem:[%s6941_s10 + $0x21] sm:$0x1] %vm792_vm3, %v1313_v55  ;;  %5430 = vmatprep.mubr.msk.bf16.mxu0 %vm6058_vm0, %v6057_v3  ;;  %5434 = vmatprep.subr.bf16.mxu0 %v6057_v3 }
 0x20b   : > { %v1331_v2 = vcombine.high %v1327_v53, %v1327_v53  ;;  %1343 = vst.msk [vmem:[%s6941_s10 + $0x19] sm:$0x1] %vm792_vm3, %v1330_v62  ;;  %1345 = vst.msk [vmem:[%s6941_s10 + $0x29] sm:$0x1] %vm792_vm3, %v1327_v53 }
 0x20c   : > { %1346 = vst.msk [vmem:[%s6941_s10 + $0x31] sm:$0x1] %vm792_vm3, %v1329_v60  ;;  %5479 = vmatmul.mubr.msk.bf16.vlgmr.msra.gmra.mrb[12].mxu1 %vm250_vm2, %v4054_v31 }
 0x20d   : > { %1347 = vst.msk [vmem:[%s6941_s10 + $0x39] sm:$0x1] %vm792_vm3, %v1331_v2  ;;  %5483 = vmatpush3.bf16.msra.mxu1 %v4165_v0  ;;  %5484 = vmatprep.mubr.msk.bf16.mxu1 %vm6058_vm0, %v6057_v3 }
 0x20e   : > { %5488 = vmatprep.subr.bf16.mxu1 %v6057_v3 }
 0x214   : > { %5431 = vmatmul.mubr.msk.bf16.vlgmr.msra.gmra.mrb[12].mxu0 %vm250_vm2, %v4891_v16 }
 0x215   : > { %5435 = vmatpush3.bf16.msra.mxu0 %v3673_v33  ;;  %5436 = vmatprep.mubr.msk.bf16.mxu0 %vm6058_vm0, %v6057_v3 }
 0x216   : > { %5440 = vmatprep.subr.bf16.mxu0 %v6057_v3 }
 0x218   : > { %5485 = vmatmul.mubr.msk.bf16.vlgmr.msra.gmra.mrb[12].mxu1 %vm250_vm2, %v4913_v5 }
 0x219   : > { %5489 = vmatpush3.bf16.msra.mxu1 %v4214_v7  ;;  %5490 = vmatprep.mubr.msk.bf16.mxu1 %vm6058_vm0, %v6057_v3 }
 0x21a   : > { %5494 = vmatprep.subr.bf16.mxu1 %v6057_v3 }
 0x220   : > { %5437 = vmatmul.mubr.msk.bf16.vlgmr.msra.gmra.mrb[12].mxu0 %vm250_vm2, %v4894_v1 }
 0x221   : > { %5441 = vmatpush3.bf16.msra.mxu0 %v3731_v8  ;;  %5442 = vmatprep.mubr.msk.bf16.mxu0 %vm6058_vm0, %v6057_v3 }
 0x222   : > { %5446 = vmatprep.subr.bf16.mxu0 %v6057_v3 }
 0x224   : > { %5491 = vmatmul.mubr.msk.bf16.vlgmr.msra.gmra.mrb[12].mxu1 %vm250_vm2, %v4916_v10 }
 0x225   : > { %5495 = vmatpush3.bf16.msra.mxu1 %v4272_v9  ;;  %5496 = vmatprep.mubr.msk.bf16.mxu1 %vm6058_vm0, %v6057_v3 }
 0x226   : > { %5500 = vmatprep.subr.bf16.mxu1 %v6057_v3 }
 0x22c   : > { %5443 = vmatmul.mubr.msk.bf16.vlgmr.msra.gmra.mrb[12].mxu0 %vm250_vm2, %v4896_v41 }
 0x22d   : > { %5447 = vmatpush3.bf16.msra.mxu0 %v3781_v44  ;;  %5448 = vmatprep.mubr.msk.bf16.mxu0 %vm6058_vm0, %v6057_v3 }
 0x22e   : > { %5452 = vmatprep.subr.bf16.mxu0 %v6057_v3 }
 0x230   : > { %5497 = vmatmul.mubr.msk.bf16.vlgmr.msra.gmra.mrb[12].mxu1 %vm250_vm2, %v4918_v42 }
 0x231   : > { %5501 = vmatpush3.bf16.msra.mxu1 %v4322_v11  ;;  %5502 = vmatprep.mubr.msk.bf16.mxu1 %vm6058_vm0, %v6057_v3 }
 0x232   : > { %5506 = vmatprep.subr.bf16.mxu1 %v6057_v3 }
 0x238   : > { %5449 = vmatmul.mubr.msk.bf16.vlgmr.msra.gmra.mrb[12].mxu0 %vm250_vm2, %v4898_v15 }
 0x239   : > { %5453 = vmatpush3.bf16.msra.mxu0 %v3833_v12  ;;  %5454 = vmatprep.mubr.msk.bf16.mxu0 %vm6058_vm0, %v6057_v3 }
 0x23a   : > { %5458 = vmatprep.subr.bf16.mxu0 %v6057_v3 }
 0x23c   : > { %5503 = vmatmul.mubr.msk.bf16.vlgmr.msra.gmra.mrb[12].mxu1 %vm250_vm2, %v4920_v46 }
 0x23d   : > { %5507 = vmatpush3.bf16.msra.mxu1 %v4374_v13  ;;  %5508 = vmatprep.mubr.msk.bf16.mxu1 %vm6058_vm0, %v6057_v3 }
 0x23e   : > { %5512 = vmatprep.subr.bf16.mxu1 %v6057_v3 }
 0x244   : > { %5455 = vmatmul.mubr.msk.bf16.vlgmr.msra.gmra.mrb[12].mxu0 %vm250_vm2, %v4903_v14 }
 0x245   : > { %5459 = vmatpush3.bf16.msra.mxu0 %v3891_v43  ;;  %5460 = vmatprep.mubr.msk.bf16.mxu0 %vm6058_vm0, %v6057_v3 }
 0x246   : > { %5464 = vmatprep.subr.bf16.mxu0 %v6057_v3 }
 0x248   : > { %5509 = vmatmul.mubr.msk.bf16.vlgmr.msra.gmra.mrb[12].mxu1 %vm250_vm2, %v4925_v17 }
 0x249   : > { %5513 = vmatpush3.bf16.msra.mxu1 %v4432_v18  ;;  %5514 = vmatprep.mubr.msk.bf16.mxu1 %vm6058_vm0, %v6057_v3 }
 0x24a   : > { %5518 = vmatprep.subr.bf16.mxu1 %v6057_v3 }
 0x250   : > { %5461 = vmatmul.mubr.msk.bf16.vlgmr.msra.gmra.mrb[12].mxu0 %vm250_vm2, %v4905_v49 }
 0x251   : > { %5465 = vmatpush3.bf16.msra.mxu0 %v3941_v24  ;;  %5466 = vmatprep.mubr.msk.bf16.mxu0 %vm6058_vm0, %v6057_v3 }
 0x254   : > { %5515 = vmatmul.mubr.msk.bf16.vlgmr.msra.gmra.mrb[12].mxu1 %vm250_vm2, %v4927_v51 }
 0x255   : > { %5519 = vmatpush3.bf16.msra.mxu1 %v4482_v4  ;;  %5520 = vmatprep.mubr.msk.bf16.mxu1 %vm6058_vm0, %v6057_v3 }
 0x25c   : > { %5467 = vmatmul.mubr.msk.bf16.vlgmr.msra.gmra.mrb[12].mxu0 %vm250_vm2, %v4907_v52 }
 0x25f   : > { %v1813_v59 = vpop.f32.mrb[4].mxu0 }
 0x260   : > { %v1820_v22 = vmul.f32 %v1813_v59, %v6894_v61  ;;  %v5252_v56 = vpop.f32.mrb[5].mxu0  ;;  %5521 = vmatmul.mubr.msk.bf16.vlgmr.msra.gmra.mrb[12].mxu1 %vm250_vm2, %v4929_v21 }
 0x261   : > { %v1816_v25 = vpop.f32.mrb[6].mxu0 }
 0x262   : > { %v1821_v23 = vadd.f32 %v1820_v22, %v6903_v20  ;;  %v5253_v3 = vpop.f32.mrb[7].mxu0 }
 0x263   : > { %v2354_v26 = vpop.f32.mrb[4].mxu1 }
 0x264   : > { %v1822_v29 = vmax.f32 %v1821_v23, 0.0  ;;  %v2361_v6 = vmul.f32 %v2354_v26, %v6894_v61  ;;  %v5306_v30 = vpop.f32.mrb[5].mxu1 }
 0x265   : > { %v2357_v32 = vpop.f32.mrb[6].mxu1 }
 0x266   : > { %v1824_v34 = vcombine.high %v1822_v29, %v1822_v29  ;;  %v1831_v63 = vrot.slane %v1822_v29, %v6914_v19  ;;  %v2362_v35 = vadd.f32 %v2361_v6, %v6903_v20  ;;  %v5307_v36 = vpop.f32.mrb[7].mxu1 }
 0x268   : > { %v1838_v37 = vrot.slane %v1824_v34, %v6914_v19  ;;  %v1839_v38 = vcombine.high %v1831_v63, %v1831_v63  ;;  %v1847_v39 = vrot.slane %v1831_v63, %v6914_v19  ;;  %v2363_v28 = vmax.f32 %v2362_v35, 0.0 }
 0x26a   : > { %v1840_v54 = vcombine.high %v1838_v37, %v1838_v37  ;;  %v1854_v40 = vrot.slane %v1838_v37, %v6914_v19  ;;  %v1861_v27 = vrot.slane %v1839_v38, %v6914_v19  ;;  %v1869_v45 = vcombine.high %v1847_v39, %v1847_v39  ;;  %1881 = vst.msk [vmem:[%s6941_s10 + $0x2] sm:$0x1] %vm792_vm3, %v1847_v39 }
 0x26b   : > { %v2365_v47 = vcombine.high %v2363_v28, %v2363_v28  ;;  %v2372_v48 = vrot.slane %v2363_v28, %v6914_v19 }
 0x26c   : > { %v1868_v50 = vrot.slane %v1840_v54, %v6914_v19  ;;  %v1870_v55 = vcombine.high %v1854_v40, %v1854_v40  ;;  %v1871_v57 = vcombine.high %v1861_v27, %v1861_v27  ;;  %1882 = vst.msk [vmem:[%s6941_s10 + $0xa] sm:$0x1] %vm792_vm3, %v1861_v27  ;;  %1883 = vst.msk [vmem:[%s6941_s10 + $0x12] sm:$0x1] %vm792_vm3, %v1869_v45 }
 0x26d   : > { %1885 = vst.msk [vmem:[%s6941_s10 + $0x22] sm:$0x1] %vm792_vm3, %v1854_v40  ;;  %v2379_v58 = vrot.slane %v2365_v47, %v6914_v19  ;;  %v2380_v53 = vcombine.high %v2372_v48, %v2372_v48  ;;  %v2388_v60 = vrot.slane %v2372_v48, %v6914_v19 }
 0x26e   : > { %v1872_v62 = vcombine.high %v1868_v50, %v1868_v50  ;;  %1884 = vst.msk [vmem:[%s6941_s10 + $0x1a] sm:$0x1] %vm792_vm3, %v1871_v57  ;;  %1886 = vst.msk [vmem:[%s6941_s10 + $0x2a] sm:$0x1] %vm792_vm3, %v1868_v50 }
 0x26f   : > { %1887 = vst.msk [vmem:[%s6941_s10 + $0x32] sm:$0x1] %vm792_vm3, %v1870_v55  ;;  %v2381_v31 = vcombine.high %v2379_v58, %v2379_v58  ;;  %v2395_v0 = vrot.slane %v2379_v58, %v6914_v19  ;;  %v2402_v2 = vrot.slane %v2380_v53, %v6914_v19  ;;  %v2410_v16 = vcombine.high %v2388_v60, %v2388_v60 }
 0x270   : > { %2422 = vst.msk [vmem:[%s6941_s10 + $0x3] sm:$0x1] %vm792_vm3, %v2388_v60  ;;  %1888 = vst.msk [vmem:[%s6941_s10 + $0x3a] sm:$0x1] %vm792_vm3, %v1872_v62 }
 0x271   : > { %v2409_v33 = vrot.slane %v2381_v31, %v6914_v19  ;;  %v2411_v5 = vcombine.high %v2395_v0, %v2395_v0  ;;  %v2412_v7 = vcombine.high %v2402_v2, %v2402_v2  ;;  %2423 = vst.msk [vmem:[%s6941_s10 + $0xb] sm:$0x1] %vm792_vm3, %v2402_v2  ;;  %2424 = vst.msk [vmem:[%s6941_s10 + $0x13] sm:$0x1] %vm792_vm3, %v2410_v16 }
 0x272   : > { %2426 = vst.msk [vmem:[%s6941_s10 + $0x23] sm:$0x1] %vm792_vm3, %v2395_v0 }
 0x273   : > { %v2413_v1 = vcombine.high %v2409_v33, %v2409_v33  ;;  %2425 = vst.msk [vmem:[%s6941_s10 + $0x1b] sm:$0x1] %vm792_vm3, %v2412_v7  ;;  %2427 = vst.msk [vmem:[%s6941_s10 + $0x2b] sm:$0x1] %vm792_vm3, %v2409_v33 }
 0x274   : > { %2428 = vst.msk [vmem:[%s6941_s10 + $0x33] sm:$0x1] %vm792_vm3, %v2411_v5 }
 0x275   : > { %2429 = vst.msk [vmem:[%s6941_s10 + $0x3b] sm:$0x1] %vm792_vm3, %v2413_v1 }
 0x2c7   : > { %v2895_v8 = vpop.f32.mrb[8].mxu0 }
 0x2c8   : > { %v2902_v10 = vmul.f32 %v2895_v8, %v6894_v61  ;;  %v5360_v9 = vpop.f32.mrb[9].mxu0 }
 0x2c9   : > { %v2898_v41 = vpop.f32.mrb[10].mxu0 }
 0x2ca   : > { %v2903_v44 = vadd.f32 %v2902_v10, %v6903_v20  ;;  %v5361_v42 = vpop.f32.mrb[11].mxu0 }
 0x2cb   : > { %v3436_v11 = vpop.f32.mrb[8].mxu1 }
 0x2cc   : > { %v2904_v15 = vmax.f32 %v2903_v44, 0.0  ;;  %v3443_v12 = vmul.f32 %v3436_v11, %v6894_v61  ;;  %v5414_v46 = vpop.f32.mrb[9].mxu1 }
 0x2cd   : > { %v3439_v13 = vpop.f32.mrb[10].mxu1 }
 0x2ce   : > { %v2906_v14 = vcombine.high %v2904_v15, %v2904_v15  ;;  %v2913_v43 = vrot.slane %v2904_v15, %v6914_v19  ;;  %v3444_v17 = vadd.f32 %v3443_v12, %v6903_v20  ;;  %v5415_v18 = vpop.f32.mrb[11].mxu1 }
 0x2d0   : > { %v2920_v49 = vrot.slane %v2906_v14, %v6914_v19  ;;  %v2921_v24 = vcombine.high %v2913_v43, %v2913_v43  ;;  %v2929_v51 = vrot.slane %v2913_v43, %v6914_v19  ;;  %v3445_v4 = vmax.f32 %v3444_v17, 0.0 }
 0x2d2   : > { %v2922_v52 = vcombine.high %v2920_v49, %v2920_v49  ;;  %v2936_v21 = vrot.slane %v2920_v49, %v6914_v19  ;;  %v2943_v59 = vrot.slane %v2921_v24, %v6914_v19  ;;  %v2951_v22 = vcombine.high %v2929_v51, %v2929_v51  ;;  %2963 = vst.msk [vmem:[%s6941_s10 + $0x4] sm:$0x1] %vm792_vm3, %v2929_v51 }
 0x2d3   : > { %v3447_v56 = vcombine.high %v3445_v4, %v3445_v4  ;;  %v3454_v25 = vrot.slane %v3445_v4, %v6914_v19 }
 0x2d4   : > { %v2950_v23 = vrot.slane %v2922_v52, %v6914_v19  ;;  %v2952_v3 = vcombine.high %v2936_v21, %v2936_v21  ;;  %v2953_v26 = vcombine.high %v2943_v59, %v2943_v59  ;;  %2964 = vst.msk [vmem:[%s6941_s10 + $0xc] sm:$0x1] %vm792_vm3, %v2943_v59  ;;  %2965 = vst.msk [vmem:[%s6941_s10 + $0x14] sm:$0x1] %vm792_vm3, %v2951_v22 }
 0x2d5   : > { %2967 = vst.msk [vmem:[%s6941_s10 + $0x24] sm:$0x1] %vm792_vm3, %v2936_v21  ;;  %v3461_v29 = vrot.slane %v3447_v56, %v6914_v19  ;;  %v3462_v6 = vcombine.high %v3454_v25, %v3454_v25  ;;  %v3470_v30 = vrot.slane %v3454_v25, %v6914_v19 }
 0x2d6   : > { %v2954_v32 = vcombine.high %v2950_v23, %v2950_v23  ;;  %2966 = vst.msk [vmem:[%s6941_s10 + $0x1c] sm:$0x1] %vm792_vm3, %v2953_v26  ;;  %2968 = vst.msk [vmem:[%s6941_s10 + $0x2c] sm:$0x1] %vm792_vm3, %v2950_v23 }
 0x2d7   : > { %2969 = vst.msk [vmem:[%s6941_s10 + $0x34] sm:$0x1] %vm792_vm3, %v2952_v3  ;;  %v3463_v34 = vcombine.high %v3461_v29, %v3461_v29  ;;  %v3477_v63 = vrot.slane %v3461_v29, %v6914_v19  ;;  %v3484_v35 = vrot.slane %v3462_v6, %v6914_v19  ;;  %v3492_v36 = vcombine.high %v3470_v30, %v3470_v30 }
 0x2d8   : > { %3504 = vst.msk [vmem:[%s6941_s10 + $0x5] sm:$0x1] %vm792_vm3, %v3470_v30  ;;  %2970 = vst.msk [vmem:[%s6941_s10 + $0x3c] sm:$0x1] %vm792_vm3, %v2954_v32 }
 0x2d9   : > { %v3491_v37 = vrot.slane %v3463_v34, %v6914_v19  ;;  %v3493_v38 = vcombine.high %v3477_v63, %v3477_v63  ;;  %v3494_v39 = vcombine.high %v3484_v35, %v3484_v35  ;;  %3505 = vst.msk [vmem:[%s6941_s10 + $0xd] sm:$0x1] %vm792_vm3, %v3484_v35  ;;  %3506 = vst.msk [vmem:[%s6941_s10 + $0x15] sm:$0x1] %vm792_vm3, %v3492_v36 }
 0x2da   : > { %3508 = vst.msk [vmem:[%s6941_s10 + $0x25] sm:$0x1] %vm792_vm3, %v3477_v63 }
 0x2db   : > { %v3495_v28 = vcombine.high %v3491_v37, %v3491_v37  ;;  %3507 = vst.msk [vmem:[%s6941_s10 + $0x1d] sm:$0x1] %vm792_vm3, %v3494_v39  ;;  %3509 = vst.msk [vmem:[%s6941_s10 + $0x2d] sm:$0x1] %vm792_vm3, %v3491_v37 }
 0x2dc   : > { %3510 = vst.msk [vmem:[%s6941_s10 + $0x35] sm:$0x1] %vm792_vm3, %v3493_v38 }
 0x2dd   : > { %3511 = vst.msk [vmem:[%s6941_s10 + $0x3d] sm:$0x1] %vm792_vm3, %v3495_v28 }
 0x32f   : > { %v3977_v54 = vpop.f32.mrb[12].mxu0 }
 0x330   : > { %v3984_v40 = vmul.f32 %v3977_v54, %v6894_v61  ;;  %v5468_v27 = vpop.f32.mrb[13].mxu0 }
 0x331   : > { %v3980_v45 = vpop.f32.mrb[14].mxu0 }
 0x332   : > { %v3985_v47 = vadd.f32 %v3984_v40, %v6903_v20  ;;  %v5469_v48 = vpop.f32.mrb[15].mxu0 }
 0x333   : > { %v4518_v50 = vpop.f32.mrb[12].mxu1 }
 0x334   : > { %v3986_v55 = vmax.f32 %v3985_v47, 0.0  ;;  %v4525_v57 = vmul.f32 %v4518_v50, %v6894_v61  ;;  %v5522_v58 = vpop.f32.mrb[13].mxu1 }
 0x335   : > { %v4521_v53 = vpop.f32.mrb[14].mxu1 }
 0x336   : > { %v3988_v60 = vcombine.high %v3986_v55, %v3986_v55  ;;  %v3995_v62 = vrot.slane %v3986_v55, %v6914_v19  ;;  %v4526_v31 = vadd.f32 %v4525_v57, %v6903_v20  ;;  %v5523_v0 = vpop.f32.mrb[15].mxu1 }
 0x338   : > { %v4002_v2 = vrot.slane %v3988_v60, %v6914_v19  ;;  %v4003_v16 = vcombine.high %v3995_v62, %v3995_v62  ;;  %v4011_v33 = vrot.slane %v3995_v62, %v6914_v19  ;;  %v4527_v5 = vmax.f32 %v4526_v31, 0.0 }
 0x33a   : > { %v4004_v61 = vcombine.high %v4002_v2, %v4002_v2  ;;  %v4018_v7 = vrot.slane %v4002_v2, %v6914_v19  ;;  %v4025_v1 = vrot.slane %v4003_v16, %v6914_v19  ;;  %v4033_v8 = vcombine.high %v4011_v33, %v4011_v33  ;;  %4045 = vst.msk [vmem:[%s6941_s10 + $0x6] sm:$0x1] %vm792_vm3, %v4011_v33 }
 0x33b   : > { %v4529_v20 = vcombine.high %v4527_v5, %v4527_v5  ;;  %v4536_v10 = vrot.slane %v4527_v5, %v6914_v19 }
 0x33c   : > { %v4032_v9 = vrot.slane %v4004_v61, %v6914_v19  ;;  %v4034_v41 = vcombine.high %v4018_v7, %v4018_v7  ;;  %v4035_v44 = vcombine.high %v4025_v1, %v4025_v1  ;;  %4046 = vst.msk [vmem:[%s6941_s10 + $0xe] sm:$0x1] %vm792_vm3, %v4025_v1  ;;  %4047 = vst.msk [vmem:[%s6941_s10 + $0x16] sm:$0x1] %vm792_vm3, %v4033_v8 }
 0x33d   : > { %4049 = vst.msk [vmem:[%s6941_s10 + $0x26] sm:$0x1] %vm792_vm3, %v4018_v7  ;;  %v4543_v42 = vrot.slane %v4529_v20, %v6914_v19  ;;  %v4544_v11 = vcombine.high %v4536_v10, %v4536_v10  ;;  %v4552_v15 = vrot.slane %v4536_v10, %v6914_v19 }
 0x33e   : > { %v4036_v12 = vcombine.high %v4032_v9, %v4032_v9  ;;  %4048 = vst.msk [vmem:[%s6941_s10 + $0x1e] sm:$0x1] %vm792_vm3, %v4035_v44  ;;  %4050 = vst.msk [vmem:[%s6941_s10 + $0x2e] sm:$0x1] %vm792_vm3, %v4032_v9 }
 0x33f   : > { %4051 = vst.msk [vmem:[%s6941_s10 + $0x36] sm:$0x1] %vm792_vm3, %v4034_v41  ;;  %v4545_v46 = vcombine.high %v4543_v42, %v4543_v42  ;;  %v4559_v13 = vrot.slane %v4543_v42, %v6914_v19  ;;  %v4566_v14 = vrot.slane %v4544_v11, %v6914_v19  ;;  %v4574_v43 = vcombine.high %v4552_v15, %v4552_v15 }
 0x340   : > { %4586 = vst.msk [vmem:[%s6941_s10 + $0x7] sm:$0x1] %vm792_vm3, %v4552_v15  ;;  %4052 = vst.msk [vmem:[%s6941_s10 + $0x3e] sm:$0x1] %vm792_vm3, %v4036_v12 }
 0x341   : > { %v4573_v17 = vrot.slane %v4545_v46, %v6914_v19  ;;  %v4575_v18 = vcombine.high %v4559_v13, %v4559_v13  ;;  %v4576_v49 = vcombine.high %v4566_v14, %v4566_v14  ;;  %4587 = vst.msk [vmem:[%s6941_s10 + $0xf] sm:$0x1] %vm792_vm3, %v4566_v14  ;;  %4588 = vst.msk [vmem:[%s6941_s10 + $0x17] sm:$0x1] %vm792_vm3, %v4574_v43 }
 0x342   : > { %4590 = vst.msk [vmem:[%s6941_s10 + $0x27] sm:$0x1] %vm792_vm3, %v4559_v13 }
 0x343   : > { %v4577_v19 = vcombine.high %v4573_v17, %v4573_v17  ;;  %4589 = vst.msk [vmem:[%s6941_s10 + $0x1f] sm:$0x1] %vm792_vm3, %v4576_v49  ;;  %4591 = vst.msk [vmem:[%s6941_s10 + $0x2f] sm:$0x1] %vm792_vm3, %v4573_v17 }
 0x344   : > { %4592 = vst.msk [vmem:[%s6941_s10 + $0x37] sm:$0x1] %vm792_vm3, %v4575_v18 }
 0x345   : > { %4593 = vst.msk [vmem:[%s6941_s10 + $0x3f] sm:$0x1] %vm792_vm3, %v4577_v19 }
 0x346   : > { %5942 = shalt.err (!%p5939_p8)
}
 0x347   : > { %s5943_s6 = scalar_lea.hbm %s7260_s29, 1024  ;;  %s5947_s28 = scalar_lea.hbm %s7339_s4, 4096 }
 0x348   : > { %p5944_p10 = scmp.ne.s32.totalorder %s7260_s29, %s5943_s6  ;;  %p5948_p5 = scmp.lt.u32.totalorder %s7260_s29, %s7339_s4 }
 0x349   : > { %p5949_p6 = scmp.lt.u32.totalorder %s5947_s28, %s5943_s6  ;;  %p5951_p7 = scmp.lt.u32.totalorder %s5943_s6, %s7260_s29 }
 0x34a   : > { %p5945_p11 = pnand %p5944_p10, %p7353_p12 }
 0x34b   : > { %p5950_p9 = por %p5949_p6, %p5948_p5 }
 0x34c   : > { %p5946_p13 = pneg %p5945_p11 }
 0x34d   : > { %p5952_p2 = por %p5951_p7, %p5950_p9 }
 0x34f   : > { %p5953_p4 = pnand %p5952_p2, %p5946_p13 }
 0x351   : > { %5956 = shalt.err (!%p5953_p4)
}
 0x352   : > { %s6064_s26 = smov 128   ;;  %s6065_s18 = smov 256  }
 0x353   : > { %s6066_s8 = smov 8  }
 0x354   : > { %5785 = dma.vmem_to_hbm [thread:$0]  (%p7353_p12), %s7262_s22, 1024, %s7260_s29, %s7274_s27, %s6064_s26, %s6065_s18, %s6066_s8  }
 0x355 PF: > { %p5796_p0 = scmp.ge.s32.totalorder %s6051_s25, 2  ;;  %s4624_s7 = sand.u32 1, %s6011_s15  }
 0x356   : > { %p7354_p1 = scmp.ne.s32.totalorder %s7350_s14, 0  ;;  %s4625_s5 = scalar_lea.sflag [#allocation4], %s4624_s7 }
 0x358   : > { %p5792_p3 = pnand %p5796_p0, %p7354_p1 }
 0x35a   : > { %6006 = dma.done.wait (!%p5792_p3), %s4625_s5, 1024  }
 0x35b   : > { %6008 = vsyncadd (!%p5792_p3), %s4625_s5, 4294966272  ;;  %s20_s25 = sadd.s32 1, %s6051_s25   ;;  %s7355_s22 = sld [smem:[#allocation8_spill]] }
 0x35c   : > { %p17_p8 = scmp.ge.s32.totalorder %s20_s25, 6   ;;  %s7356_s11 = sld [smem:[#allocation9_spill]] }
 0x35d   : > { %s7357_s24 = sld [smem:[#allocation10_spill]]  ;;  %s7358_s15 = smov %s6015_s16 }
 0x35e   : > { %s7359_s16 = smov %s6019_s17  ;;  %s7360_s17 = smov %s6182_s13 }
 0x35f   : > { %s7361_s18 = smov %s6027_s19  ;;  %s7362_s19 = smov %s6031_s20 }
 0x360   : > { %s7363_s20 = smov %s6179_s12  ;;  %s7364_s21 = smov %s6043_s23 }
 0x361   :  { %19 = sbr.rel (!%p17_p8) target bundleno = 9 (0x9), region = 101 }
 0x362   : > { %s7365_s23 = smov %s7356_s11 }
 0x368   :  { %4630 = vsyncpa [#allocation3], 1 }
 0x369   :  { %4632 = vsyncpa [#allocation3 + $0x1], 1 }
 0x36a   :  { %4633 = vsyncpa [#allocation4], 1 }
 0x36b   :  { %4635 = vsyncpa [#allocation4 + $0x1], 1 }

</bundles_post_ra>
